<compile_context>
chip_gen: v7x
topology: tpu7x:2x2x1
jax: 0.10.0
libtpu: 0.0.40
codegen_flags: <defaults>
</compile_context>

<pallas_src>
import numpy as np
import jax
import jax.numpy as jnp
from jax.experimental import pallas as pl
from jax.experimental.pallas import tpu as pltpu  # noqa: F401  (TPU backend assumed)


def conv_width(w, p, k, s):
    return 1 + (w + 2 * p - (k - 1) - 1) // s


# ------------------------------ Pallas kernel -------------------------------

def _discriminator_kernel(p1_ref, w1_ref,
                          s2_ref, w2_ref, g2_ref, b2_ref,
                          s3_ref, w3_ref, g3_ref, b3_ref,
                          s4_ref, w4_ref, g4_ref, b4_ref,
                          s5_ref, w5_ref, g5_ref, b5_ref,
                          wfc_ref, bsel_ref, bfc_ref, o_ref):
    # ---- Layer 1: conv-as-matmul on precomputed im2col patches + LeakyReLU(0.2)
    y = jnp.dot(p1_ref[...], w1_ref[...], preferred_element_type=jnp.float32)
    x = jnp.where(y > 0, y, 0.2 * y)                     # [N*H1*W1, C1], NHWC rows

    # ---- Layers 2..5: in-kernel patch extraction via per-tap 0/1 selection
    #      matmuls, then BatchNorm2d (training-mode batch stats) + LeakyReLU(0.2)
    for s_ref, w_ref, g_ref, b_ref in (
            (s2_ref, w2_ref, g2_ref, b2_ref),
            (s3_ref, w3_ref, g3_ref, b3_ref),
            (s4_ref, w4_ref, g4_ref, b4_ref),
            (s5_ref, w5_ref, g5_ref, b5_ref)):
        kk, rout, _ = s_ref.shape
        cout = w_ref.shape[2]
        y = jnp.zeros((rout, cout), jnp.float32)
        for t in range(kk):                              # static unroll over taps
            p_t = jnp.dot(s_ref[t], x, preferred_element_type=jnp.float32)
            y = y + jnp.dot(p_t, w_ref[t], preferred_element_type=jnp.float32)
        # BN: biased batch stats over N*Hout*Wout rows (matches PyTorch train mode)
        mean = jnp.mean(y, axis=0, keepdims=True)
        var = jnp.mean(y * y, axis=0, keepdims=True) - mean * mean
        y = (y - mean) * jax.lax.rsqrt(var + 1e-5)
        y = y * g_ref[...] + b_ref[...]
        x = jnp.where(y > 0, y, 0.2 * y)                 # [N*H*W, Cout]

    # ---- FC (NCHW flatten folded into the reordered weight) + Sigmoid
    prod = x * wfc_ref[...]                              # [R5, C5]   (VPU)
    y = jnp.dot(bsel_ref[...], prod, preferred_element_type=jnp.float32)  # [N, C5]
    y = jnp.sum(y, axis=1, keepdims=True) + bfc_ref[...]  # [N, 1]
    o_ref[...] = 1.0 / (1.0 + jnp.exp(-y))               # sigmoid (exp on EUP)


# ----------------------- one-time parameter preparation ----------------------

def _tap_select(batch, hin, win, k, s, p):
    """Per-tap 0/1 row-selection matrices mapping NHWC input rows to output rows.

    S[t, ro, ri] = 1 iff output position ro reads input row ri for kernel tap
    t = ki*k + kj; positions that fall in the zero padding stay all-zero rows."""
    hout = conv_width(hin, p, k, s)
    wout = conv_width(win, p, k, s)
    rin = batch * hin * win
    rout = batch * hout * wout
    S = np.zeros((k * k, rout, rin), np.float32)
    for ki in range(k):
        for kj in range(k):
            t = ki * k + kj
            for n in range(batch):
                for ho in range(hout):
                    hi = ho * s + ki - p
                    if hi < 0 or hi >= hin:
                        continue
                    for wo in range(wout):
                        wi = wo * s + kj - p
                        if wi < 0 or wi >= win:
                            continue
                        S[t, n * hout * wout + ho * wout + wo,
                          n * hin * win + hi * win + wi] = 1.0
    return S, hout, wout


def prepare_params(params, layer_cfg, batch, res):
    """One-time relayout: conv-weight flatten/transpose, per-tap selection
    matrices for layers 2-5, and the NCHW-flatten-folded FC weight."""
    prep = {}
    k1, s1, p1 = layer_cfg[0]
    w1 = params["conv1_w"]                                    # [C1, Cin, k, k]
    prep["w1"] = jnp.reshape(w1, (w1.shape[0], -1)).T         # [Cin*k*k, C1]
    h = conv_width(res, p1, k1, s1)
    w = conv_width(res, p1, k1, s1)
    c = w1.shape[0]
    for li in range(2, 6):
        k, s, p = layer_cfg[li - 1]
        cw = params[f"conv{li}_w"]                            # [Cout, Cin, k, k]
        cout, cin = cw.shape[0], cw.shape[1]
        S, hout, wout = _tap_select(batch, h, w, k, s, p)
        prep[f"S{li}"] = jnp.asarray(S)                       # [k*k, Rout, Rin]
        # W_t[c, co] = W[co, c, ki, kj], tap-major ordering t = ki*k + kj
        prep[f"Wt{li}"] = jnp.transpose(cw, (2, 3, 1, 0)).reshape(k * k, cin, cout)
        prep[f"g{li}"] = params[f"bn{li}_g"].reshape(1, cout).astype(jnp.float32)
        prep[f"b{li}"] = params[f"bn{li}_b"].reshape(1, cout).astype(jnp.float32)
        h, w, c = hout, wout, cout
    # FC: PyTorch flattens NCHW -> feature f = c*H*W + h*W + w.  Fold that order
    # into the weight so the kernel consumes the NHWC-row activation directly.
    wfc = params["fc_w"].reshape(c, h * w).T                  # [H*W, C]
    prep["wfc"] = jnp.tile(wfc, (batch, 1)).astype(jnp.float32)   # [N*H*W, C]
    bsel = np.zeros((batch, batch * h * w), np.float32)       # batch aggregation
    for n in range(batch):
        bsel[n, n * h * w:(n + 1) * h * w] = 1.0
    prep["bsel"] = jnp.asarray(bsel)                          # [N, N*H*W]
    prep["bfc"] = params["fc_b"].reshape(1, 1).astype(jnp.float32)
    return prep


# ------------------------------- forward glue --------------------------------

def _im2col_l1(x, k, s, p):
    """im2col for the first conv only, executed in XLA under jit.  Row order is
    (n, ho, wo) (NHWC rows); feature order is (c, ki, kj) to match PyTorch's
    weight.reshape(Cout, Cin*k*k)."""
    n, c, h, w = x.shape
    xp = jnp.pad(x, ((0, 0), (0, 0), (p, p), (p, p)))
    hout = conv_width(h, p, k, s)
    wout = conv_width(w, p, k, s)
    taps = []
    for i in range(k):
        for j in range(k):
            taps.append(xp[:, :, i:i + s * (hout - 1) + 1:s,
                           j:j + s * (wout - 1) + 1:s])
    pt = jnp.stack(taps, axis=2).reshape(n, c * k * k, hout, wout)
    return pt.transpose(0, 2, 3, 1).reshape(n * hout * wout, c * k * k)


def make_forward(layer_cfg):
    k1, s1, p1 = layer_cfg[0]

    @jax.jit
    def forward(x, prep):
        cols = _im2col_l1(x, k1, s1, p1)                  # [N*H1*W1, Cin*k*k]
        args = [cols, prep["w1"]]
        for li in range(2, 6):
            args += [prep[f"S{li}"], prep[f"Wt{li}"], prep[f"g{li}"], prep[f"b{li}"]]
        args += [prep["wfc"], prep["bsel"], prep["bfc"]]
        # Single fused kernel; default specs = whole arrays resident in VMEM
        # (total working set < 1 MiB, far under every generation's VMEM limit).
        return pl.pallas_call(
            _discriminator_kernel,
            out_shape=jax.ShapeDtypeStruct((x.shape[0], 1), jnp.float32),
        )(*args)

    return forward


# --------------------------- pure-JAX reference ------------------------------

def _reference_forward(x, params, layer_cfg):
    h = x
    for li, (k, s, p) in enumerate(layer_cfg):
        w = params[f"conv{li + 1}_w"]
        h = jax.lax.conv_general_dilated(
            h, w, window_strides=(s, s), padding=[(p, p), (p, p)],
            dimension_numbers=("NCHW", "OIHW", "NCHW"),
            precision=jax.lax.Precision.HIGHEST)
        if li > 0:
            g = params[f"bn{li + 1}_g"].reshape(1, -1, 1, 1)
            b = params[f"bn{li + 1}_b"].reshape(1, -1, 1, 1)
            mean = jnp.mean(h, axis=(0, 2, 3), keepdims=True)
            var = jnp.mean((h - mean) ** 2, axis=(0, 2, 3), keepdims=True)
            h = (h - mean) * jax.lax.rsqrt(var + 1e-5) * g + b
        h = jnp.where(h > 0, h, 0.2 * h)
    flat = h.reshape(h.shape[0], -1)
    y = jnp.dot(flat, params["fc_w"].T,
                precision=jax.lax.Precision.HIGHEST) + params["fc_b"]
    return jax.nn.sigmoid(y)


# ----------------------------------- main -------------------------------------

if __name__ == "__main__":
    RES, CHANNELS, BATCH = 16, 4, 2
    param = dict(
        kernal_1=4, padding_1=1, stride_1=2,
        kernal_2=4, padding_2=1, stride_2=2,
        kernal_3=3, padding_3=1, stride_3=1,
        kernal_4=3, padding_4=1, stride_4=1,
        kernal_5=4, padding_5=1, stride_5=2,
        Conv1=8, Conv2=16, Conv3=16, Conv4=16, Conv5=16,
    )
    layer_cfg = [
        (param["kernal_1"], param["stride_1"], param["padding_1"]),
        (param["kernal_2"], param["stride_2"], param["padding_2"]),
        (param["kernal_3"], param["stride_3"], param["padding_3"]),
        (param["kernal_4"], param["stride_4"], param["padding_4"]),
        (param["kernal_5"], param["stride_5"], param["padding_5"]),
    ]
    conv_ch = [CHANNELS, param["Conv1"], param["Conv2"], param["Conv3"],
               param["Conv4"], param["Conv5"]]

    width = RES
    for (k, s, p) in layer_cfg:
        width = conv_width(width, p, k, s)
    fc_in = width * width * conv_ch[-1]

    # Deterministic parameter init (nonzero BN/bias values so the self-check is strict).
    key = jax.random.PRNGKey(0)
    params = {}
    for li, (k, s, p) in enumerate(layer_cfg):
        key, sub = jax.random.split(key)
        params[f"conv{li + 1}_w"] = 0.02 * jax.random.normal(
            sub, (conv_ch[li + 1], conv_ch[li], k, k), dtype=jnp.float32)
        if li > 0:
            key, sg, sb = jax.random.split(key, 3)
            params[f"bn{li + 1}_g"] = 1.0 + 0.1 * jax.random.normal(
                sg, (conv_ch[li + 1],), dtype=jnp.float32)
            params[f"bn{li + 1}_b"] = 0.1 * jax.random.normal(
                sb, (conv_ch[li + 1],), dtype=jnp.float32)
    key, sub = jax.random.split(key)
    params["fc_w"] = 0.02 * jax.random.normal(sub, (1, fc_in), dtype=jnp.float32)
    key, sub = jax.random.split(key)
    params["fc_b"] = 0.1 * jax.random.normal(sub, (1,), dtype=jnp.float32)

    # Input image batch, NCHW like PyTorch.
    key, sub = jax.random.split(key)
    x = jax.random.normal(sub, (BATCH, CHANNELS, RES, RES), dtype=jnp.float32)

    prep = prepare_params(params, layer_cfg, BATCH, RES)   # one-time relayout
    forward = make_forward(layer_cfg)

    y = jax.block_until_ready(forward(x, prep))
    assert y.shape == (BATCH, 1)
    assert bool(jnp.all((y >= 0.0) & (y <= 1.0)))

    y_ref = jax.block_until_ready(_reference_forward(x, params, layer_cfg))
    assert bool(jnp.allclose(y, y_ref, rtol=1e-3, atol=1e-3)), (y, y_ref)
    print("KERNEL_OK")
</pallas_src>

<mosaic_0001>
module attributes {stable_mosaic.version = 11 : i64} {
  func.func @_discriminator_kernel(%arg0: memref<128x64xf32, #tpu.memory_space<vmem>>, %arg1: memref<64x8xf32, #tpu.memory_space<vmem>>, %arg2: memref<16x32x128xf32, #tpu.memory_space<vmem>>, %arg3: memref<16x8x16xf32, #tpu.memory_space<vmem>>, %arg4: memref<1x16xf32, #tpu.memory_space<vmem>>, %arg5: memref<1x16xf32, #tpu.memory_space<vmem>>, %arg6: memref<9x32x32xf32, #tpu.memory_space<vmem>>, %arg7: memref<9x16x16xf32, #tpu.memory_space<vmem>>, %arg8: memref<1x16xf32, #tpu.memory_space<vmem>>, %arg9: memref<1x16xf32, #tpu.memory_space<vmem>>, %arg10: memref<9x32x32xf32, #tpu.memory_space<vmem>>, %arg11: memref<9x16x16xf32, #tpu.memory_space<vmem>>, %arg12: memref<1x16xf32, #tpu.memory_space<vmem>>, %arg13: memref<1x16xf32, #tpu.memory_space<vmem>>, %arg14: memref<16x8x32xf32, #tpu.memory_space<vmem>>, %arg15: memref<16x16x16xf32, #tpu.memory_space<vmem>>, %arg16: memref<1x16xf32, #tpu.memory_space<vmem>>, %arg17: memref<1x16xf32, #tpu.memory_space<vmem>>, %arg18: memref<8x16xf32, #tpu.memory_space<vmem>>, %arg19: memref<2x8xf32, #tpu.memory_space<vmem>>, %arg20: memref<1x1xf32, #tpu.memory_space<vmem>>, %arg21: memref<2x1xf32, #tpu.memory_space<vmem>>) attributes {dimension_semantics = [], scalar_prefetch = 0 : i64, scratch_operands = 0 : i64, tpu.core_type = #tpu.core_type<tc>} {
    %c0 = arith.constant 0 : index
    %c0_0 = arith.constant 0 : index
    %0 = vector.load %arg0[%c0, %c0_0] : memref<128x64xf32, #tpu.memory_space<vmem>>, vector<128x64xf32>
    %c0_1 = arith.constant 0 : index
    %c0_2 = arith.constant 0 : index
    %1 = vector.load %arg1[%c0_1, %c0_2] : memref<64x8xf32, #tpu.memory_space<vmem>>, vector<64x8xf32>
    %cst = arith.constant dense<0.000000e+00> : vector<128x8xf32>
    %2 = tpu.matmul %0, %1, %cst {dimension_numbers = #tpu.dot_dimension_numbers<[1], [0], [0], [1], [0, 0, 1, 1], [], []>} : vector<128x64xf32>, vector<64x8xf32>, vector<128x8xf32> -> vector<128x8xf32>
    %cst_3 = arith.constant 0.000000e+00 : f32
    %3 = vector.broadcast %cst_3 : f32 to vector<128x8xf32>
    %4 = arith.cmpf ogt, %2, %3 : vector<128x8xf32>
    %cst_4 = arith.constant 2.000000e-01 : f32
    %5 = vector.broadcast %cst_4 : f32 to vector<128x8xf32>
    %6 = arith.mulf %5, %2 : vector<128x8xf32>
    %7 = arith.select %4, %2, %6 : vector<128x8xi1>, vector<128x8xf32>
    %cst_5 = arith.constant 0.000000e+00 : f32
    %8 = vector.broadcast %cst_5 : f32 to vector<32x16xf32>
    %c0_6 = arith.constant 0 : index
    %c0_7 = arith.constant 0 : index
    %c0_8 = arith.constant 0 : index
    %9 = vector.load %arg2[%c0_6, %c0_7, %c0_8] : memref<16x32x128xf32, #tpu.memory_space<vmem>>, vector<1x32x128xf32>
    %10 = vector.shape_cast %9 : vector<1x32x128xf32> to vector<32x128xf32>
    %cst_9 = arith.constant dense<0.000000e+00> : vector<32x8xf32>
    %11 = tpu.matmul %10, %7, %cst_9 {dimension_numbers = #tpu.dot_dimension_numbers<[1], [0], [0], [1], [0, 0, 1, 1], [], []>} : vector<32x128xf32>, vector<128x8xf32>, vector<32x8xf32> -> vector<32x8xf32>
    %c0_10 = arith.constant 0 : index
    %c0_11 = arith.constant 0 : index
    %c0_12 = arith.constant 0 : index
    %12 = vector.load %arg3[%c0_10, %c0_11, %c0_12] : memref<16x8x16xf32, #tpu.memory_space<vmem>>, vector<1x8x16xf32>
    %13 = vector.shape_cast %12 : vector<1x8x16xf32> to vector<8x16xf32>
    %cst_13 = arith.constant dense<0.000000e+00> : vector<32x16xf32>
    %14 = tpu.matmul %11, %13, %cst_13 {dimension_numbers = #tpu.dot_dimension_numbers<[1], [0], [0], [1], [0, 0, 1, 1], [], []>} : vector<32x8xf32>, vector<8x16xf32>, vector<32x16xf32> -> vector<32x16xf32>
    %15 = arith.addf %8, %14 : vector<32x16xf32>
    %c1 = arith.constant 1 : index
    %c0_14 = arith.constant 0 : index
    %c0_15 = arith.constant 0 : index
    %16 = vector.load %arg2[%c1, %c0_14, %c0_15] : memref<16x32x128xf32, #tpu.memory_space<vmem>>, vector<1x32x128xf32>
    %17 = vector.shape_cast %16 : vector<1x32x128xf32> to vector<32x128xf32>
    %cst_16 = arith.constant dense<0.000000e+00> : vector<32x8xf32>
    %18 = tpu.matmul %17, %7, %cst_16 {dimension_numbers = #tpu.dot_dimension_numbers<[1], [0], [0], [1], [0, 0, 1, 1], [], []>} : vector<32x128xf32>, vector<128x8xf32>, vector<32x8xf32> -> vector<32x8xf32>
    %c1_17 = arith.constant 1 : index
    %c0_18 = arith.constant 0 : index
    %c0_19 = arith.constant 0 : index
    %19 = vector.load %arg3[%c1_17, %c0_18, %c0_19] : memref<16x8x16xf32, #tpu.memory_space<vmem>>, vector<1x8x16xf32>
    %20 = vector.shape_cast %19 : vector<1x8x16xf32> to vector<8x16xf32>
    %cst_20 = arith.constant dense<0.000000e+00> : vector<32x16xf32>
    %21 = tpu.matmul %18, %20, %cst_20 {dimension_numbers = #tpu.dot_dimension_numbers<[1], [0], [0], [1], [0, 0, 1, 1], [], []>} : vector<32x8xf32>, vector<8x16xf32>, vector<32x16xf32> -> vector<32x16xf32>
    %22 = arith.addf %15, %21 : vector<32x16xf32>
    %c2 = arith.constant 2 : index
    %c0_21 = arith.constant 0 : index
    %c0_22 = arith.constant 0 : index
    %23 = vector.load %arg2[%c2, %c0_21, %c0_22] : memref<16x32x128xf32, #tpu.memory_space<vmem>>, vector<1x32x128xf32>
    %24 = vector.shape_cast %23 : vector<1x32x128xf32> to vector<32x128xf32>
    %cst_23 = arith.constant dense<0.000000e+00> : vector<32x8xf32>
    %25 = tpu.matmul %24, %7, %cst_23 {dimension_numbers = #tpu.dot_dimension_numbers<[1], [0], [0], [1], [0, 0, 1, 1], [], []>} : vector<32x128xf32>, vector<128x8xf32>, vector<32x8xf32> -> vector<32x8xf32>
    %c2_24 = arith.constant 2 : index
    %c0_25 = arith.constant 0 : index
    %c0_26 = arith.constant 0 : index
    %26 = vector.load %arg3[%c2_24, %c0_25, %c0_26] : memref<16x8x16xf32, #tpu.memory_space<vmem>>, vector<1x8x16xf32>
    %27 = vector.shape_cast %26 : vector<1x8x16xf32> to vector<8x16xf32>
    %cst_27 = arith.constant dense<0.000000e+00> : vector<32x16xf32>
    %28 = tpu.matmul %25, %27, %cst_27 {dimension_numbers = #tpu.dot_dimension_numbers<[1], [0], [0], [1], [0, 0, 1, 1], [], []>} : vector<32x8xf32>, vector<8x16xf32>, vector<32x16xf32> -> vector<32x16xf32>
    %29 = arith.addf %22, %28 : vector<32x16xf32>
    %c3 = arith.constant 3 : index
    %c0_28 = arith.constant 0 : index
    %c0_29 = arith.constant 0 : index
    %30 = vector.load %arg2[%c3, %c0_28, %c0_29] : memref<16x32x128xf32, #tpu.memory_space<vmem>>, vector<1x32x128xf32>
    %31 = vector.shape_cast %30 : vector<1x32x128xf32> to vector<32x128xf32>
    %cst_30 = arith.constant dense<0.000000e+00> : vector<32x8xf32>
    %32 = tpu.matmul %31, %7, %cst_30 {dimension_numbers = #tpu.dot_dimension_numbers<[1], [0], [0], [1], [0, 0, 1, 1], [], []>} : vector<32x128xf32>, vector<128x8xf32>, vector<32x8xf32> -> vector<32x8xf32>
    %c3_31 = arith.constant 3 : index
    %c0_32 = arith.constant 0 : index
    %c0_33 = arith.constant 0 : index
    %33 = vector.load %arg3[%c3_31, %c0_32, %c0_33] : memref<16x8x16xf32, #tpu.memory_space<vmem>>, vector<1x8x16xf32>
    %34 = vector.shape_cast %33 : vector<1x8x16xf32> to vector<8x16xf32>
    %cst_34 = arith.constant dense<0.000000e+00> : vector<32x16xf32>
    %35 = tpu.matmul %32, %34, %cst_34 {dimension_numbers = #tpu.dot_dimension_numbers<[1], [0], [0], [1], [0, 0, 1, 1], [], []>} : vector<32x8xf32>, vector<8x16xf32>, vector<32x16xf32> -> vector<32x16xf32>
    %36 = arith.addf %29, %35 : vector<32x16xf32>
    %c4 = arith.constant 4 : index
    %c0_35 = arith.constant 0 : index
    %c0_36 = arith.constant 0 : index
    %37 = vector.load %arg2[%c4, %c0_35, %c0_36] : memref<16x32x128xf32, #tpu.memory_space<vmem>>, vector<1x32x128xf32>
    %38 = vector.shape_cast %37 : vector<1x32x128xf32> to vector<32x128xf32>
    %cst_37 = arith.constant dense<0.000000e+00> : vector<32x8xf32>
    %39 = tpu.matmul %38, %7, %cst_37 {dimension_numbers = #tpu.dot_dimension_numbers<[1], [0], [0], [1], [0, 0, 1, 1], [], []>} : vector<32x128xf32>, vector<128x8xf32>, vector<32x8xf32> -> vector<32x8xf32>
    %c4_38 = arith.constant 4 : index
    %c0_39 = arith.constant 0 : index
    %c0_40 = arith.constant 0 : index
    %40 = vector.load %arg3[%c4_38, %c0_39, %c0_40] : memref<16x8x16xf32, #tpu.memory_space<vmem>>, vector<1x8x16xf32>
    %41 = vector.shape_cast %40 : vector<1x8x16xf32> to vector<8x16xf32>
    %cst_41 = arith.constant dense<0.000000e+00> : vector<32x16xf32>
    %42 = tpu.matmul %39, %41, %cst_41 {dimension_numbers = #tpu.dot_dimension_numbers<[1], [0], [0], [1], [0, 0, 1, 1], [], []>} : vector<32x8xf32>, vector<8x16xf32>, vector<32x16xf32> -> vector<32x16xf32>
    %43 = arith.addf %36, %42 : vector<32x16xf32>
    %c5 = arith.constant 5 : index
    %c0_42 = arith.constant 0 : index
    %c0_43 = arith.constant 0 : index
    %44 = vector.load %arg2[%c5, %c0_42, %c0_43] : memref<16x32x128xf32, #tpu.memory_space<vmem>>, vector<1x32x128xf32>
    %45 = vector.shape_cast %44 : vector<1x32x128xf32> to vector<32x128xf32>
    %cst_44 = arith.constant dense<0.000000e+00> : vector<32x8xf32>
    %46 = tpu.matmul %45, %7, %cst_44 {dimension_numbers = #tpu.dot_dimension_numbers<[1], [0], [0], [1], [0, 0, 1, 1], [], []>} : vector<32x128xf32>, vector<128x8xf32>, vector<32x8xf32> -> vector<32x8xf32>
    %c5_45 = arith.constant 5 : index
    %c0_46 = arith.constant 0 : index
    %c0_47 = arith.constant 0 : index
    %47 = vector.load %arg3[%c5_45, %c0_46, %c0_47] : memref<16x8x16xf32, #tpu.memory_space<vmem>>, vector<1x8x16xf32>
    %48 = vector.shape_cast %47 : vector<1x8x16xf32> to vector<8x16xf32>
    %cst_48 = arith.constant dense<0.000000e+00> : vector<32x16xf32>
    %49 = tpu.matmul %46, %48, %cst_48 {dimension_numbers = #tpu.dot_dimension_numbers<[1], [0], [0], [1], [0, 0, 1, 1], [], []>} : vector<32x8xf32>, vector<8x16xf32>, vector<32x16xf32> -> vector<32x16xf32>
    %50 = arith.addf %43, %49 : vector<32x16xf32>
    %c6 = arith.constant 6 : index
    %c0_49 = arith.constant 0 : index
    %c0_50 = arith.constant 0 : index
    %51 = vector.load %arg2[%c6, %c0_49, %c0_50] : memref<16x32x128xf32, #tpu.memory_space<vmem>>, vector<1x32x128xf32>
    %52 = vector.shape_cast %51 : vector<1x32x128xf32> to vector<32x128xf32>
    %cst_51 = arith.constant dense<0.000000e+00> : vector<32x8xf32>
    %53 = tpu.matmul %52, %7, %cst_51 {dimension_numbers = #tpu.dot_dimension_numbers<[1], [0], [0], [1], [0, 0, 1, 1], [], []>} : vector<32x128xf32>, vector<128x8xf32>, vector<32x8xf32> -> vector<32x8xf32>
    %c6_52 = arith.constant 6 : index
    %c0_53 = arith.constant 0 : index
    %c0_54 = arith.constant 0 : index
    %54 = vector.load %arg3[%c6_52, %c0_53, %c0_54] : memref<16x8x16xf32, #tpu.memory_space<vmem>>, vector<1x8x16xf32>
    %55 = vector.shape_cast %54 : vector<1x8x16xf32> to vector<8x16xf32>
    %cst_55 = arith.constant dense<0.000000e+00> : vector<32x16xf32>
    %56 = tpu.matmul %53, %55, %cst_55 {dimension_numbers = #tpu.dot_dimension_numbers<[1], [0], [0], [1], [0, 0, 1, 1], [], []>} : vector<32x8xf32>, vector<8x16xf32>, vector<32x16xf32> -> vector<32x16xf32>
    %57 = arith.addf %50, %56 : vector<32x16xf32>
    %c7 = arith.constant 7 : index
    %c0_56 = arith.constant 0 : index
    %c0_57 = arith.constant 0 : index
    %58 = vector.load %arg2[%c7, %c0_56, %c0_57] : memref<16x32x128xf32, #tpu.memory_space<vmem>>, vector<1x32x128xf32>
    %59 = vector.shape_cast %58 : vector<1x32x128xf32> to vector<32x128xf32>
    %cst_58 = arith.constant dense<0.000000e+00> : vector<32x8xf32>
    %60 = tpu.matmul %59, %7, %cst_58 {dimension_numbers = #tpu.dot_dimension_numbers<[1], [0], [0], [1], [0, 0, 1, 1], [], []>} : vector<32x128xf32>, vector<128x8xf32>, vector<32x8xf32> -> vector<32x8xf32>
    %c7_59 = arith.constant 7 : index
    %c0_60 = arith.constant 0 : index
    %c0_61 = arith.constant 0 : index
    %61 = vector.load %arg3[%c7_59, %c0_60, %c0_61] : memref<16x8x16xf32, #tpu.memory_space<vmem>>, vector<1x8x16xf32>
    %62 = vector.shape_cast %61 : vector<1x8x16xf32> to vector<8x16xf32>
    %cst_62 = arith.constant dense<0.000000e+00> : vector<32x16xf32>
    %63 = tpu.matmul %60, %62, %cst_62 {dimension_numbers = #tpu.dot_dimension_numbers<[1], [0], [0], [1], [0, 0, 1, 1], [], []>} : vector<32x8xf32>, vector<8x16xf32>, vector<32x16xf32> -> vector<32x16xf32>
    %64 = arith.addf %57, %63 : vector<32x16xf32>
    %c8 = arith.constant 8 : index
    %c0_63 = arith.constant 0 : index
    %c0_64 = arith.constant 0 : index
    %65 = vector.load %arg2[%c8, %c0_63, %c0_64] : memref<16x32x128xf32, #tpu.memory_space<vmem>>, vector<1x32x128xf32>
    %66 = vector.shape_cast %65 : vector<1x32x128xf32> to vector<32x128xf32>
    %cst_65 = arith.constant dense<0.000000e+00> : vector<32x8xf32>
    %67 = tpu.matmul %66, %7, %cst_65 {dimension_numbers = #tpu.dot_dimension_numbers<[1], [0], [0], [1], [0, 0, 1, 1], [], []>} : vector<32x128xf32>, vector<128x8xf32>, vector<32x8xf32> -> vector<32x8xf32>
    %c8_66 = arith.constant 8 : index
    %c0_67 = arith.constant 0 : index
    %c0_68 = arith.constant 0 : index
    %68 = vector.load %arg3[%c8_66, %c0_67, %c0_68] : memref<16x8x16xf32, #tpu.memory_space<vmem>>, vector<1x8x16xf32>
    %69 = vector.shape_cast %68 : vector<1x8x16xf32> to vector<8x16xf32>
    %cst_69 = arith.constant dense<0.000000e+00> : vector<32x16xf32>
    %70 = tpu.matmul %67, %69, %cst_69 {dimension_numbers = #tpu.dot_dimension_numbers<[1], [0], [0], [1], [0, 0, 1, 1], [], []>} : vector<32x8xf32>, vector<8x16xf32>, vector<32x16xf32> -> vector<32x16xf32>
    %71 = arith.addf %64, %70 : vector<32x16xf32>
    %c9 = arith.constant 9 : index
    %c0_70 = arith.constant 0 : index
    %c0_71 = arith.constant 0 : index
    %72 = vector.load %arg2[%c9, %c0_70, %c0_71] : memref<16x32x128xf32, #tpu.memory_space<vmem>>, vector<1x32x128xf32>
    %73 = vector.shape_cast %72 : vector<1x32x128xf32> to vector<32x128xf32>
    %cst_72 = arith.constant dense<0.000000e+00> : vector<32x8xf32>
    %74 = tpu.matmul %73, %7, %cst_72 {dimension_numbers = #tpu.dot_dimension_numbers<[1], [0], [0], [1], [0, 0, 1, 1], [], []>} : vector<32x128xf32>, vector<128x8xf32>, vector<32x8xf32> -> vector<32x8xf32>
    %c9_73 = arith.constant 9 : index
    %c0_74 = arith.constant 0 : index
    %c0_75 = arith.constant 0 : index
    %75 = vector.load %arg3[%c9_73, %c0_74, %c0_75] : memref<16x8x16xf32, #tpu.memory_space<vmem>>, vector<1x8x16xf32>
    %76 = vector.shape_cast %75 : vector<1x8x16xf32> to vector<8x16xf32>
    %cst_76 = arith.constant dense<0.000000e+00> : vector<32x16xf32>
    %77 = tpu.matmul %74, %76, %cst_76 {dimension_numbers = #tpu.dot_dimension_numbers<[1], [0], [0], [1], [0, 0, 1, 1], [], []>} : vector<32x8xf32>, vector<8x16xf32>, vector<32x16xf32> -> vector<32x16xf32>
    %78 = arith.addf %71, %77 : vector<32x16xf32>
    %c10 = arith.constant 10 : index
    %c0_77 = arith.constant 0 : index
    %c0_78 = arith.constant 0 : index
    %79 = vector.load %arg2[%c10, %c0_77, %c0_78] : memref<16x32x128xf32, #tpu.memory_space<vmem>>, vector<1x32x128xf32>
    %80 = vector.shape_cast %79 : vector<1x32x128xf32> to vector<32x128xf32>
    %cst_79 = arith.constant dense<0.000000e+00> : vector<32x8xf32>
    %81 = tpu.matmul %80, %7, %cst_79 {dimension_numbers = #tpu.dot_dimension_numbers<[1], [0], [0], [1], [0, 0, 1, 1], [], []>} : vector<32x128xf32>, vector<128x8xf32>, vector<32x8xf32> -> vector<32x8xf32>
    %c10_80 = arith.constant 10 : index
    %c0_81 = arith.constant 0 : index
    %c0_82 = arith.constant 0 : index
    %82 = vector.load %arg3[%c10_80, %c0_81, %c0_82] : memref<16x8x16xf32, #tpu.memory_space<vmem>>, vector<1x8x16xf32>
    %83 = vector.shape_cast %82 : vector<1x8x16xf32> to vector<8x16xf32>
    %cst_83 = arith.constant dense<0.000000e+00> : vector<32x16xf32>
    %84 = tpu.matmul %81, %83, %cst_83 {dimension_numbers = #tpu.dot_dimension_numbers<[1], [0], [0], [1], [0, 0, 1, 1], [], []>} : vector<32x8xf32>, vector<8x16xf32>, vector<32x16xf32> -> vector<32x16xf32>
    %85 = arith.addf %78, %84 : vector<32x16xf32>
    %c11 = arith.constant 11 : index
    %c0_84 = arith.constant 0 : index
    %c0_85 = arith.constant 0 : index
    %86 = vector.load %arg2[%c11, %c0_84, %c0_85] : memref<16x32x128xf32, #tpu.memory_space<vmem>>, vector<1x32x128xf32>
    %87 = vector.shape_cast %86 : vector<1x32x128xf32> to vector<32x128xf32>
    %cst_86 = arith.constant dense<0.000000e+00> : vector<32x8xf32>
    %88 = tpu.matmul %87, %7, %cst_86 {dimension_numbers = #tpu.dot_dimension_numbers<[1], [0], [0], [1], [0, 0, 1, 1], [], []>} : vector<32x128xf32>, vector<128x8xf32>, vector<32x8xf32> -> vector<32x8xf32>
    %c11_87 = arith.constant 11 : index
    %c0_88 = arith.constant 0 : index
    %c0_89 = arith.constant 0 : index
    %89 = vector.load %arg3[%c11_87, %c0_88, %c0_89] : memref<16x8x16xf32, #tpu.memory_space<vmem>>, vector<1x8x16xf32>
    %90 = vector.shape_cast %89 : vector<1x8x16xf32> to vector<8x16xf32>
    %cst_90 = arith.constant dense<0.000000e+00> : vector<32x16xf32>
    %91 = tpu.matmul %88, %90, %cst_90 {dimension_numbers = #tpu.dot_dimension_numbers<[1], [0], [0], [1], [0, 0, 1, 1], [], []>} : vector<32x8xf32>, vector<8x16xf32>, vector<32x16xf32> -> vector<32x16xf32>
    %92 = arith.addf %85, %91 : vector<32x16xf32>
    %c12 = arith.constant 12 : index
    %c0_91 = arith.constant 0 : index
    %c0_92 = arith.constant 0 : index
    %93 = vector.load %arg2[%c12, %c0_91, %c0_92] : memref<16x32x128xf32, #tpu.memory_space<vmem>>, vector<1x32x128xf32>
    %94 = vector.shape_cast %93 : vector<1x32x128xf32> to vector<32x128xf32>
    %cst_93 = arith.constant dense<0.000000e+00> : vector<32x8xf32>
    %95 = tpu.matmul %94, %7, %cst_93 {dimension_numbers = #tpu.dot_dimension_numbers<[1], [0], [0], [1], [0, 0, 1, 1], [], []>} : vector<32x128xf32>, vector<128x8xf32>, vector<32x8xf32> -> vector<32x8xf32>
    %c12_94 = arith.constant 12 : index
    %c0_95 = arith.constant 0 : index
    %c0_96 = arith.constant 0 : index
    %96 = vector.load %arg3[%c12_94, %c0_95, %c0_96] : memref<16x8x16xf32, #tpu.memory_space<vmem>>, vector<1x8x16xf32>
    %97 = vector.shape_cast %96 : vector<1x8x16xf32> to vector<8x16xf32>
    %cst_97 = arith.constant dense<0.000000e+00> : vector<32x16xf32>
    %98 = tpu.matmul %95, %97, %cst_97 {dimension_numbers = #tpu.dot_dimension_numbers<[1], [0], [0], [1], [0, 0, 1, 1], [], []>} : vector<32x8xf32>, vector<8x16xf32>, vector<32x16xf32> -> vector<32x16xf32>
    %99 = arith.addf %92, %98 : vector<32x16xf32>
    %c13 = arith.constant 13 : index
    %c0_98 = arith.constant 0 : index
    %c0_99 = arith.constant 0 : index
    %100 = vector.load %arg2[%c13, %c0_98, %c0_99] : memref<16x32x128xf32, #tpu.memory_space<vmem>>, vector<1x32x128xf32>
    %101 = vector.shape_cast %100 : vector<1x32x128xf32> to vector<32x128xf32>
    %cst_100 = arith.constant dense<0.000000e+00> : vector<32x8xf32>
    %102 = tpu.matmul %101, %7, %cst_100 {dimension_numbers = #tpu.dot_dimension_numbers<[1], [0], [0], [1], [0, 0, 1, 1], [], []>} : vector<32x128xf32>, vector<128x8xf32>, vector<32x8xf32> -> vector<32x8xf32>
    %c13_101 = arith.constant 13 : index
    %c0_102 = arith.constant 0 : index
    %c0_103 = arith.constant 0 : index
    %103 = vector.load %arg3[%c13_101, %c0_102, %c0_103] : memref<16x8x16xf32, #tpu.memory_space<vmem>>, vector<1x8x16xf32>
    %104 = vector.shape_cast %103 : vector<1x8x16xf32> to vector<8x16xf32>
    %cst_104 = arith.constant dense<0.000000e+00> : vector<32x16xf32>
    %105 = tpu.matmul %102, %104, %cst_104 {dimension_numbers = #tpu.dot_dimension_numbers<[1], [0], [0], [1], [0, 0, 1, 1], [], []>} : vector<32x8xf32>, vector<8x16xf32>, vector<32x16xf32> -> vector<32x16xf32>
    %106 = arith.addf %99, %105 : vector<32x16xf32>
    %c14 = arith.constant 14 : index
    %c0_105 = arith.constant 0 : index
    %c0_106 = arith.constant 0 : index
    %107 = vector.load %arg2[%c14, %c0_105, %c0_106] : memref<16x32x128xf32, #tpu.memory_space<vmem>>, vector<1x32x128xf32>
    %108 = vector.shape_cast %107 : vector<1x32x128xf32> to vector<32x128xf32>
    %cst_107 = arith.constant dense<0.000000e+00> : vector<32x8xf32>
    %109 = tpu.matmul %108, %7, %cst_107 {dimension_numbers = #tpu.dot_dimension_numbers<[1], [0], [0], [1], [0, 0, 1, 1], [], []>} : vector<32x128xf32>, vector<128x8xf32>, vector<32x8xf32> -> vector<32x8xf32>
    %c14_108 = arith.constant 14 : index
    %c0_109 = arith.constant 0 : index
    %c0_110 = arith.constant 0 : index
    %110 = vector.load %arg3[%c14_108, %c0_109, %c0_110] : memref<16x8x16xf32, #tpu.memory_space<vmem>>, vector<1x8x16xf32>
    %111 = vector.shape_cast %110 : vector<1x8x16xf32> to vector<8x16xf32>
    %cst_111 = arith.constant dense<0.000000e+00> : vector<32x16xf32>
    %112 = tpu.matmul %109, %111, %cst_111 {dimension_numbers = #tpu.dot_dimension_numbers<[1], [0], [0], [1], [0, 0, 1, 1], [], []>} : vector<32x8xf32>, vector<8x16xf32>, vector<32x16xf32> -> vector<32x16xf32>
    %113 = arith.addf %106, %112 : vector<32x16xf32>
    %c15 = arith.constant 15 : index
    %c0_112 = arith.constant 0 : index
    %c0_113 = arith.constant 0 : index
    %114 = vector.load %arg2[%c15, %c0_112, %c0_113] : memref<16x32x128xf32, #tpu.memory_space<vmem>>, vector<1x32x128xf32>
    %115 = vector.shape_cast %114 : vector<1x32x128xf32> to vector<32x128xf32>
    %cst_114 = arith.constant dense<0.000000e+00> : vector<32x8xf32>
    %116 = tpu.matmul %115, %7, %cst_114 {dimension_numbers = #tpu.dot_dimension_numbers<[1], [0], [0], [1], [0, 0, 1, 1], [], []>} : vector<32x128xf32>, vector<128x8xf32>, vector<32x8xf32> -> vector<32x8xf32>
    %c15_115 = arith.constant 15 : index
    %c0_116 = arith.constant 0 : index
    %c0_117 = arith.constant 0 : index
    %117 = vector.load %arg3[%c15_115, %c0_116, %c0_117] : memref<16x8x16xf32, #tpu.memory_space<vmem>>, vector<1x8x16xf32>
    %118 = vector.shape_cast %117 : vector<1x8x16xf32> to vector<8x16xf32>
    %cst_118 = arith.constant dense<0.000000e+00> : vector<32x16xf32>
    %119 = tpu.matmul %116, %118, %cst_118 {dimension_numbers = #tpu.dot_dimension_numbers<[1], [0], [0], [1], [0, 0, 1, 1], [], []>} : vector<32x8xf32>, vector<8x16xf32>, vector<32x16xf32> -> vector<32x16xf32>
    %120 = arith.addf %113, %119 : vector<32x16xf32>
    %cst_119 = arith.constant dense<0.000000e+00> : vector<16xf32>
    %121 = vector.multi_reduction <add>, %120, %cst_119 [0] : vector<32x16xf32> to vector<16xf32>
    %122 = vector.shape_cast %121 : vector<16xf32> to vector<1x16xf32>
    %cst_120 = arith.constant 3.200000e+01 : f32
    %123 = vector.broadcast %cst_120 : f32 to vector<1x16xf32>
    %124 = arith.divf %122, %123 : vector<1x16xf32>
    %125 = arith.mulf %120, %120 : vector<32x16xf32>
    %cst_121 = arith.constant dense<0.000000e+00> : vector<16xf32>
    %126 = vector.multi_reduction <add>, %125, %cst_121 [0] : vector<32x16xf32> to vector<16xf32>
    %127 = vector.shape_cast %126 : vector<16xf32> to vector<1x16xf32>
    %cst_122 = arith.constant 3.200000e+01 : f32
    %128 = vector.broadcast %cst_122 : f32 to vector<1x16xf32>
    %129 = arith.divf %127, %128 : vector<1x16xf32>
    %130 = arith.mulf %124, %124 : vector<1x16xf32>
    %131 = arith.subf %129, %130 : vector<1x16xf32>
    %132 = vector.broadcast %124 : vector<1x16xf32> to vector<32x16xf32>
    %133 = arith.subf %120, %132 : vector<32x16xf32>
    %cst_123 = arith.constant 9.99999974E-6 : f32
    %134 = vector.broadcast %cst_123 : f32 to vector<1x16xf32>
    %135 = arith.addf %131, %134 : vector<1x16xf32>
    %136 = math.rsqrt %135 : vector<1x16xf32>
    %137 = vector.broadcast %136 : vector<1x16xf32> to vector<32x16xf32>
    %138 = arith.mulf %133, %137 : vector<32x16xf32>
    %c0_124 = arith.constant 0 : index
    %c0_125 = arith.constant 0 : index
    %139 = vector.load %arg4[%c0_124, %c0_125] : memref<1x16xf32, #tpu.memory_space<vmem>>, vector<1x16xf32>
    %140 = vector.broadcast %139 : vector<1x16xf32> to vector<32x16xf32>
    %141 = arith.mulf %138, %140 : vector<32x16xf32>
    %c0_126 = arith.constant 0 : index
    %c0_127 = arith.constant 0 : index
    %142 = vector.load %arg5[%c0_126, %c0_127] : memref<1x16xf32, #tpu.memory_space<vmem>>, vector<1x16xf32>
    %143 = vector.broadcast %142 : vector<1x16xf32> to vector<32x16xf32>
    %144 = arith.addf %141, %143 : vector<32x16xf32>
    %cst_128 = arith.constant 0.000000e+00 : f32
    %145 = vector.broadcast %cst_128 : f32 to vector<32x16xf32>
    %146 = arith.cmpf ogt, %144, %145 : vector<32x16xf32>
    %cst_129 = arith.constant 2.000000e-01 : f32
    %147 = vector.broadcast %cst_129 : f32 to vector<32x16xf32>
    %148 = arith.mulf %147, %144 : vector<32x16xf32>
    %149 = arith.select %146, %144, %148 : vector<32x16xi1>, vector<32x16xf32>
    %cst_130 = arith.constant 0.000000e+00 : f32
    %150 = vector.broadcast %cst_130 : f32 to vector<32x16xf32>
    %c0_131 = arith.constant 0 : index
    %c0_132 = arith.constant 0 : index
    %c0_133 = arith.constant 0 : index
    %151 = vector.load %arg6[%c0_131, %c0_132, %c0_133] : memref<9x32x32xf32, #tpu.memory_space<vmem>>, vector<1x32x32xf32>
    %152 = vector.shape_cast %151 : vector<1x32x32xf32> to vector<32x32xf32>
    %cst_134 = arith.constant dense<0.000000e+00> : vector<32x16xf32>
    %153 = tpu.matmul %152, %149, %cst_134 {dimension_numbers = #tpu.dot_dimension_numbers<[1], [0], [0], [1], [0, 0, 1, 1], [], []>} : vector<32x32xf32>, vector<32x16xf32>, vector<32x16xf32> -> vector<32x16xf32>
    %c0_135 = arith.constant 0 : index
    %c0_136 = arith.constant 0 : index
    %c0_137 = arith.constant 0 : index
    %154 = vector.load %arg7[%c0_135, %c0_136, %c0_137] : memref<9x16x16xf32, #tpu.memory_space<vmem>>, vector<1x16x16xf32>
    %155 = vector.shape_cast %154 : vector<1x16x16xf32> to vector<16x16xf32>
    %cst_138 = arith.constant dense<0.000000e+00> : vector<32x16xf32>
    %156 = tpu.matmul %153, %155, %cst_138 {dimension_numbers = #tpu.dot_dimension_numbers<[1], [0], [0], [1], [0, 0, 1, 1], [], []>} : vector<32x16xf32>, vector<16x16xf32>, vector<32x16xf32> -> vector<32x16xf32>
    %157 = arith.addf %150, %156 : vector<32x16xf32>
    %c1_139 = arith.constant 1 : index
    %c0_140 = arith.constant 0 : index
    %c0_141 = arith.constant 0 : index
    %158 = vector.load %arg6[%c1_139, %c0_140, %c0_141] : memref<9x32x32xf32, #tpu.memory_space<vmem>>, vector<1x32x32xf32>
    %159 = vector.shape_cast %158 : vector<1x32x32xf32> to vector<32x32xf32>
    %cst_142 = arith.constant dense<0.000000e+00> : vector<32x16xf32>
    %160 = tpu.matmul %159, %149, %cst_142 {dimension_numbers = #tpu.dot_dimension_numbers<[1], [0], [0], [1], [0, 0, 1, 1], [], []>} : vector<32x32xf32>, vector<32x16xf32>, vector<32x16xf32> -> vector<32x16xf32>
    %c1_143 = arith.constant 1 : index
    %c0_144 = arith.constant 0 : index
    %c0_145 = arith.constant 0 : index
    %161 = vector.load %arg7[%c1_143, %c0_144, %c0_145] : memref<9x16x16xf32, #tpu.memory_space<vmem>>, vector<1x16x16xf32>
    %162 = vector.shape_cast %161 : vector<1x16x16xf32> to vector<16x16xf32>
    %cst_146 = arith.constant dense<0.000000e+00> : vector<32x16xf32>
    %163 = tpu.matmul %160, %162, %cst_146 {dimension_numbers = #tpu.dot_dimension_numbers<[1], [0], [0], [1], [0, 0, 1, 1], [], []>} : vector<32x16xf32>, vector<16x16xf32>, vector<32x16xf32> -> vector<32x16xf32>
    %164 = arith.addf %157, %163 : vector<32x16xf32>
    %c2_147 = arith.constant 2 : index
    %c0_148 = arith.constant 0 : index
    %c0_149 = arith.constant 0 : index
    %165 = vector.load %arg6[%c2_147, %c0_148, %c0_149] : memref<9x32x32xf32, #tpu.memory_space<vmem>>, vector<1x32x32xf32>
    %166 = vector.shape_cast %165 : vector<1x32x32xf32> to vector<32x32xf32>
    %cst_150 = arith.constant dense<0.000000e+00> : vector<32x16xf32>
    %167 = tpu.matmul %166, %149, %cst_150 {dimension_numbers = #tpu.dot_dimension_numbers<[1], [0], [0], [1], [0, 0, 1, 1], [], []>} : vector<32x32xf32>, vector<32x16xf32>, vector<32x16xf32> -> vector<32x16xf32>
    %c2_151 = arith.constant 2 : index
    %c0_152 = arith.constant 0 : index
    %c0_153 = arith.constant 0 : index
    %168 = vector.load %arg7[%c2_151, %c0_152, %c0_153] : memref<9x16x16xf32, #tpu.memory_space<vmem>>, vector<1x16x16xf32>
    %169 = vector.shape_cast %168 : vector<1x16x16xf32> to vector<16x16xf32>
    %cst_154 = arith.constant dense<0.000000e+00> : vector<32x16xf32>
    %170 = tpu.matmul %167, %169, %cst_154 {dimension_numbers = #tpu.dot_dimension_numbers<[1], [0], [0], [1], [0, 0, 1, 1], [], []>} : vector<32x16xf32>, vector<16x16xf32>, vector<32x16xf32> -> vector<32x16xf32>
    %171 = arith.addf %164, %170 : vector<32x16xf32>
    %c3_155 = arith.constant 3 : index
    %c0_156 = arith.constant 0 : index
    %c0_157 = arith.constant 0 : index
    %172 = vector.load %arg6[%c3_155, %c0_156, %c0_157] : memref<9x32x32xf32, #tpu.memory_space<vmem>>, vector<1x32x32xf32>
    %173 = vector.shape_cast %172 : vector<1x32x32xf32> to vector<32x32xf32>
    %cst_158 = arith.constant dense<0.000000e+00> : vector<32x16xf32>
    %174 = tpu.matmul %173, %149, %cst_158 {dimension_numbers = #tpu.dot_dimension_numbers<[1], [0], [0], [1], [0, 0, 1, 1], [], []>} : vector<32x32xf32>, vector<32x16xf32>, vector<32x16xf32> -> vector<32x16xf32>
    %c3_159 = arith.constant 3 : index
    %c0_160 = arith.constant 0 : index
    %c0_161 = arith.constant 0 : index
    %175 = vector.load %arg7[%c3_159, %c0_160, %c0_161] : memref<9x16x16xf32, #tpu.memory_space<vmem>>, vector<1x16x16xf32>
    %176 = vector.shape_cast %175 : vector<1x16x16xf32> to vector<16x16xf32>
    %cst_162 = arith.constant dense<0.000000e+00> : vector<32x16xf32>
    %177 = tpu.matmul %174, %176, %cst_162 {dimension_numbers = #tpu.dot_dimension_numbers<[1], [0], [0], [1], [0, 0, 1, 1], [], []>} : vector<32x16xf32>, vector<16x16xf32>, vector<32x16xf32> -> vector<32x16xf32>
    %178 = arith.addf %171, %177 : vector<32x16xf32>
    %c4_163 = arith.constant 4 : index
    %c0_164 = arith.constant 0 : index
    %c0_165 = arith.constant 0 : index
    %179 = vector.load %arg6[%c4_163, %c0_164, %c0_165] : memref<9x32x32xf32, #tpu.memory_space<vmem>>, vector<1x32x32xf32>
    %180 = vector.shape_cast %179 : vector<1x32x32xf32> to vector<32x32xf32>
    %cst_166 = arith.constant dense<0.000000e+00> : vector<32x16xf32>
    %181 = tpu.matmul %180, %149, %cst_166 {dimension_numbers = #tpu.dot_dimension_numbers<[1], [0], [0], [1], [0, 0, 1, 1], [], []>} : vector<32x32xf32>, vector<32x16xf32>, vector<32x16xf32> -> vector<32x16xf32>
    %c4_167 = arith.constant 4 : index
    %c0_168 = arith.constant 0 : index
    %c0_169 = arith.constant 0 : index
    %182 = vector.load %arg7[%c4_167, %c0_168, %c0_169] : memref<9x16x16xf32, #tpu.memory_space<vmem>>, vector<1x16x16xf32>
    %183 = vector.shape_cast %182 : vector<1x16x16xf32> to vector<16x16xf32>
    %cst_170 = arith.constant dense<0.000000e+00> : vector<32x16xf32>
    %184 = tpu.matmul %181, %183, %cst_170 {dimension_numbers = #tpu.dot_dimension_numbers<[1], [0], [0], [1], [0, 0, 1, 1], [], []>} : vector<32x16xf32>, vector<16x16xf32>, vector<32x16xf32> -> vector<32x16xf32>
    %185 = arith.addf %178, %184 : vector<32x16xf32>
    %c5_171 = arith.constant 5 : index
    %c0_172 = arith.constant 0 : index
    %c0_173 = arith.constant 0 : index
    %186 = vector.load %arg6[%c5_171, %c0_172, %c0_173] : memref<9x32x32xf32, #tpu.memory_space<vmem>>, vector<1x32x32xf32>
    %187 = vector.shape_cast %186 : vector<1x32x32xf32> to vector<32x32xf32>
    %cst_174 = arith.constant dense<0.000000e+00> : vector<32x16xf32>
    %188 = tpu.matmul %187, %149, %cst_174 {dimension_numbers = #tpu.dot_dimension_numbers<[1], [0], [0], [1], [0, 0, 1, 1], [], []>} : vector<32x32xf32>, vector<32x16xf32>, vector<32x16xf32> -> vector<32x16xf32>
    %c5_175 = arith.constant 5 : index
    %c0_176 = arith.constant 0 : index
    %c0_177 = arith.constant 0 : index
    %189 = vector.load %arg7[%c5_175, %c0_176, %c0_177] : memref<9x16x16xf32, #tpu.memory_space<vmem>>, vector<1x16x16xf32>
    %190 = vector.shape_cast %189 : vector<1x16x16xf32> to vector<16x16xf32>
    %cst_178 = arith.constant dense<0.000000e+00> : vector<32x16xf32>
    %191 = tpu.matmul %188, %190, %cst_178 {dimension_numbers = #tpu.dot_dimension_numbers<[1], [0], [0], [1], [0, 0, 1, 1], [], []>} : vector<32x16xf32>, vector<16x16xf32>, vector<32x16xf32> -> vector<32x16xf32>
    %192 = arith.addf %185, %191 : vector<32x16xf32>
    %c6_179 = arith.constant 6 : index
    %c0_180 = arith.constant 0 : index
    %c0_181 = arith.constant 0 : index
    %193 = vector.load %arg6[%c6_179, %c0_180, %c0_181] : memref<9x32x32xf32, #tpu.memory_space<vmem>>, vector<1x32x32xf32>
    %194 = vector.shape_cast %193 : vector<1x32x32xf32> to vector<32x32xf32>
    %cst_182 = arith.constant dense<0.000000e+00> : vector<32x16xf32>
    %195 = tpu.matmul %194, %149, %cst_182 {dimension_numbers = #tpu.dot_dimension_numbers<[1], [0], [0], [1], [0, 0, 1, 1], [], []>} : vector<32x32xf32>, vector<32x16xf32>, vector<32x16xf32> -> vector<32x16xf32>
    %c6_183 = arith.constant 6 : index
    %c0_184 = arith.constant 0 : index
    %c0_185 = arith.constant 0 : index
    %196 = vector.load %arg7[%c6_183, %c0_184, %c0_185] : memref<9x16x16xf32, #tpu.memory_space<vmem>>, vector<1x16x16xf32>
    %197 = vector.shape_cast %196 : vector<1x16x16xf32> to vector<16x16xf32>
    %cst_186 = arith.constant dense<0.000000e+00> : vector<32x16xf32>
    %198 = tpu.matmul %195, %197, %cst_186 {dimension_numbers = #tpu.dot_dimension_numbers<[1], [0], [0], [1], [0, 0, 1, 1], [], []>} : vector<32x16xf32>, vector<16x16xf32>, vector<32x16xf32> -> vector<32x16xf32>
    %199 = arith.addf %192, %198 : vector<32x16xf32>
    %c7_187 = arith.constant 7 : index
    %c0_188 = arith.constant 0 : index
    %c0_189 = arith.constant 0 : index
    %200 = vector.load %arg6[%c7_187, %c0_188, %c0_189] : memref<9x32x32xf32, #tpu.memory_space<vmem>>, vector<1x32x32xf32>
    %201 = vector.shape_cast %200 : vector<1x32x32xf32> to vector<32x32xf32>
    %cst_190 = arith.constant dense<0.000000e+00> : vector<32x16xf32>
    %202 = tpu.matmul %201, %149, %cst_190 {dimension_numbers = #tpu.dot_dimension_numbers<[1], [0], [0], [1], [0, 0, 1, 1], [], []>} : vector<32x32xf32>, vector<32x16xf32>, vector<32x16xf32> -> vector<32x16xf32>
    %c7_191 = arith.constant 7 : index
    %c0_192 = arith.constant 0 : index
    %c0_193 = arith.constant 0 : index
    %203 = vector.load %arg7[%c7_191, %c0_192, %c0_193] : memref<9x16x16xf32, #tpu.memory_space<vmem>>, vector<1x16x16xf32>
    %204 = vector.shape_cast %203 : vector<1x16x16xf32> to vector<16x16xf32>
    %cst_194 = arith.constant dense<0.000000e+00> : vector<32x16xf32>
    %205 = tpu.matmul %202, %204, %cst_194 {dimension_numbers = #tpu.dot_dimension_numbers<[1], [0], [0], [1], [0, 0, 1, 1], [], []>} : vector<32x16xf32>, vector<16x16xf32>, vector<32x16xf32> -> vector<32x16xf32>
    %206 = arith.addf %199, %205 : vector<32x16xf32>
    %c8_195 = arith.constant 8 : index
    %c0_196 = arith.constant 0 : index
    %c0_197 = arith.constant 0 : index
    %207 = vector.load %arg6[%c8_195, %c0_196, %c0_197] : memref<9x32x32xf32, #tpu.memory_space<vmem>>, vector<1x32x32xf32>
    %208 = vector.shape_cast %207 : vector<1x32x32xf32> to vector<32x32xf32>
    %cst_198 = arith.constant dense<0.000000e+00> : vector<32x16xf32>
    %209 = tpu.matmul %208, %149, %cst_198 {dimension_numbers = #tpu.dot_dimension_numbers<[1], [0], [0], [1], [0, 0, 1, 1], [], []>} : vector<32x32xf32>, vector<32x16xf32>, vector<32x16xf32> -> vector<32x16xf32>
    %c8_199 = arith.constant 8 : index
    %c0_200 = arith.constant 0 : index
    %c0_201 = arith.constant 0 : index
    %210 = vector.load %arg7[%c8_199, %c0_200, %c0_201] : memref<9x16x16xf32, #tpu.memory_space<vmem>>, vector<1x16x16xf32>
    %211 = vector.shape_cast %210 : vector<1x16x16xf32> to vector<16x16xf32>
    %cst_202 = arith.constant dense<0.000000e+00> : vector<32x16xf32>
    %212 = tpu.matmul %209, %211, %cst_202 {dimension_numbers = #tpu.dot_dimension_numbers<[1], [0], [0], [1], [0, 0, 1, 1], [], []>} : vector<32x16xf32>, vector<16x16xf32>, vector<32x16xf32> -> vector<32x16xf32>
    %213 = arith.addf %206, %212 : vector<32x16xf32>
    %cst_203 = arith.constant dense<0.000000e+00> : vector<16xf32>
    %214 = vector.multi_reduction <add>, %213, %cst_203 [0] : vector<32x16xf32> to vector<16xf32>
    %215 = vector.shape_cast %214 : vector<16xf32> to vector<1x16xf32>
    %cst_204 = arith.constant 3.200000e+01 : f32
    %216 = vector.broadcast %cst_204 : f32 to vector<1x16xf32>
    %217 = arith.divf %215, %216 : vector<1x16xf32>
    %218 = arith.mulf %213, %213 : vector<32x16xf32>
    %cst_205 = arith.constant dense<0.000000e+00> : vector<16xf32>
    %219 = vector.multi_reduction <add>, %218, %cst_205 [0] : vector<32x16xf32> to vector<16xf32>
    %220 = vector.shape_cast %219 : vector<16xf32> to vector<1x16xf32>
    %cst_206 = arith.constant 3.200000e+01 : f32
    %221 = vector.broadcast %cst_206 : f32 to vector<1x16xf32>
    %222 = arith.divf %220, %221 : vector<1x16xf32>
    %223 = arith.mulf %217, %217 : vector<1x16xf32>
    %224 = arith.subf %222, %223 : vector<1x16xf32>
    %225 = vector.broadcast %217 : vector<1x16xf32> to vector<32x16xf32>
    %226 = arith.subf %213, %225 : vector<32x16xf32>
    %cst_207 = arith.constant 9.99999974E-6 : f32
    %227 = vector.broadcast %cst_207 : f32 to vector<1x16xf32>
    %228 = arith.addf %224, %227 : vector<1x16xf32>
    %229 = math.rsqrt %228 : vector<1x16xf32>
    %230 = vector.broadcast %229 : vector<1x16xf32> to vector<32x16xf32>
    %231 = arith.mulf %226, %230 : vector<32x16xf32>
    %c0_208 = arith.constant 0 : index
    %c0_209 = arith.constant 0 : index
    %232 = vector.load %arg8[%c0_208, %c0_209] : memref<1x16xf32, #tpu.memory_space<vmem>>, vector<1x16xf32>
    %233 = vector.broadcast %232 : vector<1x16xf32> to vector<32x16xf32>
    %234 = arith.mulf %231, %233 : vector<32x16xf32>
    %c0_210 = arith.constant 0 : index
    %c0_211 = arith.constant 0 : index
    %235 = vector.load %arg9[%c0_210, %c0_211] : memref<1x16xf32, #tpu.memory_space<vmem>>, vector<1x16xf32>
    %236 = vector.broadcast %235 : vector<1x16xf32> to vector<32x16xf32>
    %237 = arith.addf %234, %236 : vector<32x16xf32>
    %cst_212 = arith.constant 0.000000e+00 : f32
    %238 = vector.broadcast %cst_212 : f32 to vector<32x16xf32>
    %239 = arith.cmpf ogt, %237, %238 : vector<32x16xf32>
    %cst_213 = arith.constant 2.000000e-01 : f32
    %240 = vector.broadcast %cst_213 : f32 to vector<32x16xf32>
    %241 = arith.mulf %240, %237 : vector<32x16xf32>
    %242 = arith.select %239, %237, %241 : vector<32x16xi1>, vector<32x16xf32>
    %cst_214 = arith.constant 0.000000e+00 : f32
    %243 = vector.broadcast %cst_214 : f32 to vector<32x16xf32>
    %c0_215 = arith.constant 0 : index
    %c0_216 = arith.constant 0 : index
    %c0_217 = arith.constant 0 : index
    %244 = vector.load %arg10[%c0_215, %c0_216, %c0_217] : memref<9x32x32xf32, #tpu.memory_space<vmem>>, vector<1x32x32xf32>
    %245 = vector.shape_cast %244 : vector<1x32x32xf32> to vector<32x32xf32>
    %cst_218 = arith.constant dense<0.000000e+00> : vector<32x16xf32>
    %246 = tpu.matmul %245, %242, %cst_218 {dimension_numbers = #tpu.dot_dimension_numbers<[1], [0], [0], [1], [0, 0, 1, 1], [], []>} : vector<32x32xf32>, vector<32x16xf32>, vector<32x16xf32> -> vector<32x16xf32>
    %c0_219 = arith.constant 0 : index
    %c0_220 = arith.constant 0 : index
    %c0_221 = arith.constant 0 : index
    %247 = vector.load %arg11[%c0_219, %c0_220, %c0_221] : memref<9x16x16xf32, #tpu.memory_space<vmem>>, vector<1x16x16xf32>
    %248 = vector.shape_cast %247 : vector<1x16x16xf32> to vector<16x16xf32>
    %cst_222 = arith.constant dense<0.000000e+00> : vector<32x16xf32>
    %249 = tpu.matmul %246, %248, %cst_222 {dimension_numbers = #tpu.dot_dimension_numbers<[1], [0], [0], [1], [0, 0, 1, 1], [], []>} : vector<32x16xf32>, vector<16x16xf32>, vector<32x16xf32> -> vector<32x16xf32>
    %250 = arith.addf %243, %249 : vector<32x16xf32>
    %c1_223 = arith.constant 1 : index
    %c0_224 = arith.constant 0 : index
    %c0_225 = arith.constant 0 : index
    %251 = vector.load %arg10[%c1_223, %c0_224, %c0_225] : memref<9x32x32xf32, #tpu.memory_space<vmem>>, vector<1x32x32xf32>
    %252 = vector.shape_cast %251 : vector<1x32x32xf32> to vector<32x32xf32>
    %cst_226 = arith.constant dense<0.000000e+00> : vector<32x16xf32>
    %253 = tpu.matmul %252, %242, %cst_226 {dimension_numbers = #tpu.dot_dimension_numbers<[1], [0], [0], [1], [0, 0, 1, 1], [], []>} : vector<32x32xf32>, vector<32x16xf32>, vector<32x16xf32> -> vector<32x16xf32>
    %c1_227 = arith.constant 1 : index
    %c0_228 = arith.constant 0 : index
    %c0_229 = arith.constant 0 : index
    %254 = vector.load %arg11[%c1_227, %c0_228, %c0_229] : memref<9x16x16xf32, #tpu.memory_space<vmem>>, vector<1x16x16xf32>
    %255 = vector.shape_cast %254 : vector<1x16x16xf32> to vector<16x16xf32>
    %cst_230 = arith.constant dense<0.000000e+00> : vector<32x16xf32>
    %256 = tpu.matmul %253, %255, %cst_230 {dimension_numbers = #tpu.dot_dimension_numbers<[1], [0], [0], [1], [0, 0, 1, 1], [], []>} : vector<32x16xf32>, vector<16x16xf32>, vector<32x16xf32> -> vector<32x16xf32>
    %257 = arith.addf %250, %256 : vector<32x16xf32>
    %c2_231 = arith.constant 2 : index
    %c0_232 = arith.constant 0 : index
    %c0_233 = arith.constant 0 : index
    %258 = vector.load %arg10[%c2_231, %c0_232, %c0_233] : memref<9x32x32xf32, #tpu.memory_space<vmem>>, vector<1x32x32xf32>
    %259 = vector.shape_cast %258 : vector<1x32x32xf32> to vector<32x32xf32>
    %cst_234 = arith.constant dense<0.000000e+00> : vector<32x16xf32>
    %260 = tpu.matmul %259, %242, %cst_234 {dimension_numbers = #tpu.dot_dimension_numbers<[1], [0], [0], [1], [0, 0, 1, 1], [], []>} : vector<32x32xf32>, vector<32x16xf32>, vector<32x16xf32> -> vector<32x16xf32>
    %c2_235 = arith.constant 2 : index
    %c0_236 = arith.constant 0 : index
    %c0_237 = arith.constant 0 : index
    %261 = vector.load %arg11[%c2_235, %c0_236, %c0_237] : memref<9x16x16xf32, #tpu.memory_space<vmem>>, vector<1x16x16xf32>
    %262 = vector.shape_cast %261 : vector<1x16x16xf32> to vector<16x16xf32>
    %cst_238 = arith.constant dense<0.000000e+00> : vector<32x16xf32>
    %263 = tpu.matmul %260, %262, %cst_238 {dimension_numbers = #tpu.dot_dimension_numbers<[1], [0], [0], [1], [0, 0, 1, 1], [], []>} : vector<32x16xf32>, vector<16x16xf32>, vector<32x16xf32> -> vector<32x16xf32>
    %264 = arith.addf %257, %263 : vector<32x16xf32>
    %c3_239 = arith.constant 3 : index
    %c0_240 = arith.constant 0 : index
    %c0_241 = arith.constant 0 : index
    %265 = vector.load %arg10[%c3_239, %c0_240, %c0_241] : memref<9x32x32xf32, #tpu.memory_space<vmem>>, vector<1x32x32xf32>
    %266 = vector.shape_cast %265 : vector<1x32x32xf32> to vector<32x32xf32>
    %cst_242 = arith.constant dense<0.000000e+00> : vector<32x16xf32>
    %267 = tpu.matmul %266, %242, %cst_242 {dimension_numbers = #tpu.dot_dimension_numbers<[1], [0], [0], [1], [0, 0, 1, 1], [], []>} : vector<32x32xf32>, vector<32x16xf32>, vector<32x16xf32> -> vector<32x16xf32>
    %c3_243 = arith.constant 3 : index
    %c0_244 = arith.constant 0 : index
    %c0_245 = arith.constant 0 : index
    %268 = vector.load %arg11[%c3_243, %c0_244, %c0_245] : memref<9x16x16xf32, #tpu.memory_space<vmem>>, vector<1x16x16xf32>
    %269 = vector.shape_cast %268 : vector<1x16x16xf32> to vector<16x16xf32>
    %cst_246 = arith.constant dense<0.000000e+00> : vector<32x16xf32>
    %270 = tpu.matmul %267, %269, %cst_246 {dimension_numbers = #tpu.dot_dimension_numbers<[1], [0], [0], [1], [0, 0, 1, 1], [], []>} : vector<32x16xf32>, vector<16x16xf32>, vector<32x16xf32> -> vector<32x16xf32>
    %271 = arith.addf %264, %270 : vector<32x16xf32>
    %c4_247 = arith.constant 4 : index
    %c0_248 = arith.constant 0 : index
    %c0_249 = arith.constant 0 : index
    %272 = vector.load %arg10[%c4_247, %c0_248, %c0_249] : memref<9x32x32xf32, #tpu.memory_space<vmem>>, vector<1x32x32xf32>
    %273 = vector.shape_cast %272 : vector<1x32x32xf32> to vector<32x32xf32>
    %cst_250 = arith.constant dense<0.000000e+00> : vector<32x16xf32>
    %274 = tpu.matmul %273, %242, %cst_250 {dimension_numbers = #tpu.dot_dimension_numbers<[1], [0], [0], [1], [0, 0, 1, 1], [], []>} : vector<32x32xf32>, vector<32x16xf32>, vector<32x16xf32> -> vector<32x16xf32>
    %c4_251 = arith.constant 4 : index
    %c0_252 = arith.constant 0 : index
    %c0_253 = arith.constant 0 : index
    %275 = vector.load %arg11[%c4_251, %c0_252, %c0_253] : memref<9x16x16xf32, #tpu.memory_space<vmem>>, vector<1x16x16xf32>
    %276 = vector.shape_cast %275 : vector<1x16x16xf32> to vector<16x16xf32>
    %cst_254 = arith.constant dense<0.000000e+00> : vector<32x16xf32>
    %277 = tpu.matmul %274, %276, %cst_254 {dimension_numbers = #tpu.dot_dimension_numbers<[1], [0], [0], [1], [0, 0, 1, 1], [], []>} : vector<32x16xf32>, vector<16x16xf32>, vector<32x16xf32> -> vector<32x16xf32>
    %278 = arith.addf %271, %277 : vector<32x16xf32>
    %c5_255 = arith.constant 5 : index
    %c0_256 = arith.constant 0 : index
    %c0_257 = arith.constant 0 : index
    %279 = vector.load %arg10[%c5_255, %c0_256, %c0_257] : memref<9x32x32xf32, #tpu.memory_space<vmem>>, vector<1x32x32xf32>
    %280 = vector.shape_cast %279 : vector<1x32x32xf32> to vector<32x32xf32>
    %cst_258 = arith.constant dense<0.000000e+00> : vector<32x16xf32>
    %281 = tpu.matmul %280, %242, %cst_258 {dimension_numbers = #tpu.dot_dimension_numbers<[1], [0], [0], [1], [0, 0, 1, 1], [], []>} : vector<32x32xf32>, vector<32x16xf32>, vector<32x16xf32> -> vector<32x16xf32>
    %c5_259 = arith.constant 5 : index
    %c0_260 = arith.constant 0 : index
    %c0_261 = arith.constant 0 : index
    %282 = vector.load %arg11[%c5_259, %c0_260, %c0_261] : memref<9x16x16xf32, #tpu.memory_space<vmem>>, vector<1x16x16xf32>
    %283 = vector.shape_cast %282 : vector<1x16x16xf32> to vector<16x16xf32>
    %cst_262 = arith.constant dense<0.000000e+00> : vector<32x16xf32>
    %284 = tpu.matmul %281, %283, %cst_262 {dimension_numbers = #tpu.dot_dimension_numbers<[1], [0], [0], [1], [0, 0, 1, 1], [], []>} : vector<32x16xf32>, vector<16x16xf32>, vector<32x16xf32> -> vector<32x16xf32>
    %285 = arith.addf %278, %284 : vector<32x16xf32>
    %c6_263 = arith.constant 6 : index
    %c0_264 = arith.constant 0 : index
    %c0_265 = arith.constant 0 : index
    %286 = vector.load %arg10[%c6_263, %c0_264, %c0_265] : memref<9x32x32xf32, #tpu.memory_space<vmem>>, vector<1x32x32xf32>
    %287 = vector.shape_cast %286 : vector<1x32x32xf32> to vector<32x32xf32>
    %cst_266 = arith.constant dense<0.000000e+00> : vector<32x16xf32>
    %288 = tpu.matmul %287, %242, %cst_266 {dimension_numbers = #tpu.dot_dimension_numbers<[1], [0], [0], [1], [0, 0, 1, 1], [], []>} : vector<32x32xf32>, vector<32x16xf32>, vector<32x16xf32> -> vector<32x16xf32>
    %c6_267 = arith.constant 6 : index
    %c0_268 = arith.constant 0 : index
    %c0_269 = arith.constant 0 : index
    %289 = vector.load %arg11[%c6_267, %c0_268, %c0_269] : memref<9x16x16xf32, #tpu.memory_space<vmem>>, vector<1x16x16xf32>
    %290 = vector.shape_cast %289 : vector<1x16x16xf32> to vector<16x16xf32>
    %cst_270 = arith.constant dense<0.000000e+00> : vector<32x16xf32>
    %291 = tpu.matmul %288, %290, %cst_270 {dimension_numbers = #tpu.dot_dimension_numbers<[1], [0], [0], [1], [0, 0, 1, 1], [], []>} : vector<32x16xf32>, vector<16x16xf32>, vector<32x16xf32> -> vector<32x16xf32>
    %292 = arith.addf %285, %291 : vector<32x16xf32>
    %c7_271 = arith.constant 7 : index
    %c0_272 = arith.constant 0 : index
    %c0_273 = arith.constant 0 : index
    %293 = vector.load %arg10[%c7_271, %c0_272, %c0_273] : memref<9x32x32xf32, #tpu.memory_space<vmem>>, vector<1x32x32xf32>
    %294 = vector.shape_cast %293 : vector<1x32x32xf32> to vector<32x32xf32>
    %cst_274 = arith.constant dense<0.000000e+00> : vector<32x16xf32>
    %295 = tpu.matmul %294, %242, %cst_274 {dimension_numbers = #tpu.dot_dimension_numbers<[1], [0], [0], [1], [0, 0, 1, 1], [], []>} : vector<32x32xf32>, vector<32x16xf32>, vector<32x16xf32> -> vector<32x16xf32>
    %c7_275 = arith.constant 7 : index
    %c0_276 = arith.constant 0 : index
    %c0_277 = arith.constant 0 : index
    %296 = vector.load %arg11[%c7_275, %c0_276, %c0_277] : memref<9x16x16xf32, #tpu.memory_space<vmem>>, vector<1x16x16xf32>
    %297 = vector.shape_cast %296 : vector<1x16x16xf32> to vector<16x16xf32>
    %cst_278 = arith.constant dense<0.000000e+00> : vector<32x16xf32>
    %298 = tpu.matmul %295, %297, %cst_278 {dimension_numbers = #tpu.dot_dimension_numbers<[1], [0], [0], [1], [0, 0, 1, 1], [], []>} : vector<32x16xf32>, vector<16x16xf32>, vector<32x16xf32> -> vector<32x16xf32>
    %299 = arith.addf %292, %298 : vector<32x16xf32>
    %c8_279 = arith.constant 8 : index
    %c0_280 = arith.constant 0 : index
    %c0_281 = arith.constant 0 : index
    %300 = vector.load %arg10[%c8_279, %c0_280, %c0_281] : memref<9x32x32xf32, #tpu.memory_space<vmem>>, vector<1x32x32xf32>
    %301 = vector.shape_cast %300 : vector<1x32x32xf32> to vector<32x32xf32>
    %cst_282 = arith.constant dense<0.000000e+00> : vector<32x16xf32>
    %302 = tpu.matmul %301, %242, %cst_282 {dimension_numbers = #tpu.dot_dimension_numbers<[1], [0], [0], [1], [0, 0, 1, 1], [], []>} : vector<32x32xf32>, vector<32x16xf32>, vector<32x16xf32> -> vector<32x16xf32>
    %c8_283 = arith.constant 8 : index
    %c0_284 = arith.constant 0 : index
    %c0_285 = arith.constant 0 : index
    %303 = vector.load %arg11[%c8_283, %c0_284, %c0_285] : memref<9x16x16xf32, #tpu.memory_space<vmem>>, vector<1x16x16xf32>
    %304 = vector.shape_cast %303 : vector<1x16x16xf32> to vector<16x16xf32>
    %cst_286 = arith.constant dense<0.000000e+00> : vector<32x16xf32>
    %305 = tpu.matmul %302, %304, %cst_286 {dimension_numbers = #tpu.dot_dimension_numbers<[1], [0], [0], [1], [0, 0, 1, 1], [], []>} : vector<32x16xf32>, vector<16x16xf32>, vector<32x16xf32> -> vector<32x16xf32>
    %306 = arith.addf %299, %305 : vector<32x16xf32>
    %cst_287 = arith.constant dense<0.000000e+00> : vector<16xf32>
    %307 = vector.multi_reduction <add>, %306, %cst_287 [0] : vector<32x16xf32> to vector<16xf32>
    %308 = vector.shape_cast %307 : vector<16xf32> to vector<1x16xf32>
    %cst_288 = arith.constant 3.200000e+01 : f32
    %309 = vector.broadcast %cst_288 : f32 to vector<1x16xf32>
    %310 = arith.divf %308, %309 : vector<1x16xf32>
    %311 = arith.mulf %306, %306 : vector<32x16xf32>
    %cst_289 = arith.constant dense<0.000000e+00> : vector<16xf32>
    %312 = vector.multi_reduction <add>, %311, %cst_289 [0] : vector<32x16xf32> to vector<16xf32>
    %313 = vector.shape_cast %312 : vector<16xf32> to vector<1x16xf32>
    %cst_290 = arith.constant 3.200000e+01 : f32
    %314 = vector.broadcast %cst_290 : f32 to vector<1x16xf32>
    %315 = arith.divf %313, %314 : vector<1x16xf32>
    %316 = arith.mulf %310, %310 : vector<1x16xf32>
    %317 = arith.subf %315, %316 : vector<1x16xf32>
    %318 = vector.broadcast %310 : vector<1x16xf32> to vector<32x16xf32>
    %319 = arith.subf %306, %318 : vector<32x16xf32>
    %cst_291 = arith.constant 9.99999974E-6 : f32
    %320 = vector.broadcast %cst_291 : f32 to vector<1x16xf32>
    %321 = arith.addf %317, %320 : vector<1x16xf32>
    %322 = math.rsqrt %321 : vector<1x16xf32>
    %323 = vector.broadcast %322 : vector<1x16xf32> to vector<32x16xf32>
    %324 = arith.mulf %319, %323 : vector<32x16xf32>
    %c0_292 = arith.constant 0 : index
    %c0_293 = arith.constant 0 : index
    %325 = vector.load %arg12[%c0_292, %c0_293] : memref<1x16xf32, #tpu.memory_space<vmem>>, vector<1x16xf32>
    %326 = vector.broadcast %325 : vector<1x16xf32> to vector<32x16xf32>
    %327 = arith.mulf %324, %326 : vector<32x16xf32>
    %c0_294 = arith.constant 0 : index
    %c0_295 = arith.constant 0 : index
    %328 = vector.load %arg13[%c0_294, %c0_295] : memref<1x16xf32, #tpu.memory_space<vmem>>, vector<1x16xf32>
    %329 = vector.broadcast %328 : vector<1x16xf32> to vector<32x16xf32>
    %330 = arith.addf %327, %329 : vector<32x16xf32>
    %cst_296 = arith.constant 0.000000e+00 : f32
    %331 = vector.broadcast %cst_296 : f32 to vector<32x16xf32>
    %332 = arith.cmpf ogt, %330, %331 : vector<32x16xf32>
    %cst_297 = arith.constant 2.000000e-01 : f32
    %333 = vector.broadcast %cst_297 : f32 to vector<32x16xf32>
    %334 = arith.mulf %333, %330 : vector<32x16xf32>
    %335 = arith.select %332, %330, %334 : vector<32x16xi1>, vector<32x16xf32>
    %cst_298 = arith.constant 0.000000e+00 : f32
    %336 = vector.broadcast %cst_298 : f32 to vector<8x16xf32>
    %c0_299 = arith.constant 0 : index
    %c0_300 = arith.constant 0 : index
    %c0_301 = arith.constant 0 : index
    %337 = vector.load %arg14[%c0_299, %c0_300, %c0_301] : memref<16x8x32xf32, #tpu.memory_space<vmem>>, vector<1x8x32xf32>
    %338 = vector.shape_cast %337 : vector<1x8x32xf32> to vector<8x32xf32>
    %cst_302 = arith.constant dense<0.000000e+00> : vector<8x16xf32>
    %339 = tpu.matmul %338, %335, %cst_302 {dimension_numbers = #tpu.dot_dimension_numbers<[1], [0], [0], [1], [0, 0, 1, 1], [], []>} : vector<8x32xf32>, vector<32x16xf32>, vector<8x16xf32> -> vector<8x16xf32>
    %c0_303 = arith.constant 0 : index
    %c0_304 = arith.constant 0 : index
    %c0_305 = arith.constant 0 : index
    %340 = vector.load %arg15[%c0_303, %c0_304, %c0_305] : memref<16x16x16xf32, #tpu.memory_space<vmem>>, vector<1x16x16xf32>
    %341 = vector.shape_cast %340 : vector<1x16x16xf32> to vector<16x16xf32>
    %cst_306 = arith.constant dense<0.000000e+00> : vector<8x16xf32>
    %342 = tpu.matmul %339, %341, %cst_306 {dimension_numbers = #tpu.dot_dimension_numbers<[1], [0], [0], [1], [0, 0, 1, 1], [], []>} : vector<8x16xf32>, vector<16x16xf32>, vector<8x16xf32> -> vector<8x16xf32>
    %343 = arith.addf %336, %342 : vector<8x16xf32>
    %c1_307 = arith.constant 1 : index
    %c0_308 = arith.constant 0 : index
    %c0_309 = arith.constant 0 : index
    %344 = vector.load %arg14[%c1_307, %c0_308, %c0_309] : memref<16x8x32xf32, #tpu.memory_space<vmem>>, vector<1x8x32xf32>
    %345 = vector.shape_cast %344 : vector<1x8x32xf32> to vector<8x32xf32>
    %cst_310 = arith.constant dense<0.000000e+00> : vector<8x16xf32>
    %346 = tpu.matmul %345, %335, %cst_310 {dimension_numbers = #tpu.dot_dimension_numbers<[1], [0], [0], [1], [0, 0, 1, 1], [], []>} : vector<8x32xf32>, vector<32x16xf32>, vector<8x16xf32> -> vector<8x16xf32>
    %c1_311 = arith.constant 1 : index
    %c0_312 = arith.constant 0 : index
    %c0_313 = arith.constant 0 : index
    %347 = vector.load %arg15[%c1_311, %c0_312, %c0_313] : memref<16x16x16xf32, #tpu.memory_space<vmem>>, vector<1x16x16xf32>
    %348 = vector.shape_cast %347 : vector<1x16x16xf32> to vector<16x16xf32>
    %cst_314 = arith.constant dense<0.000000e+00> : vector<8x16xf32>
    %349 = tpu.matmul %346, %348, %cst_314 {dimension_numbers = #tpu.dot_dimension_numbers<[1], [0], [0], [1], [0, 0, 1, 1], [], []>} : vector<8x16xf32>, vector<16x16xf32>, vector<8x16xf32> -> vector<8x16xf32>
    %350 = arith.addf %343, %349 : vector<8x16xf32>
    %c2_315 = arith.constant 2 : index
    %c0_316 = arith.constant 0 : index
    %c0_317 = arith.constant 0 : index
    %351 = vector.load %arg14[%c2_315, %c0_316, %c0_317] : memref<16x8x32xf32, #tpu.memory_space<vmem>>, vector<1x8x32xf32>
    %352 = vector.shape_cast %351 : vector<1x8x32xf32> to vector<8x32xf32>
    %cst_318 = arith.constant dense<0.000000e+00> : vector<8x16xf32>
    %353 = tpu.matmul %352, %335, %cst_318 {dimension_numbers = #tpu.dot_dimension_numbers<[1], [0], [0], [1], [0, 0, 1, 1], [], []>} : vector<8x32xf32>, vector<32x16xf32>, vector<8x16xf32> -> vector<8x16xf32>
    %c2_319 = arith.constant 2 : index
    %c0_320 = arith.constant 0 : index
    %c0_321 = arith.constant 0 : index
    %354 = vector.load %arg15[%c2_319, %c0_320, %c0_321] : memref<16x16x16xf32, #tpu.memory_space<vmem>>, vector<1x16x16xf32>
    %355 = vector.shape_cast %354 : vector<1x16x16xf32> to vector<16x16xf32>
    %cst_322 = arith.constant dense<0.000000e+00> : vector<8x16xf32>
    %356 = tpu.matmul %353, %355, %cst_322 {dimension_numbers = #tpu.dot_dimension_numbers<[1], [0], [0], [1], [0, 0, 1, 1], [], []>} : vector<8x16xf32>, vector<16x16xf32>, vector<8x16xf32> -> vector<8x16xf32>
    %357 = arith.addf %350, %356 : vector<8x16xf32>
    %c3_323 = arith.constant 3 : index
    %c0_324 = arith.constant 0 : index
    %c0_325 = arith.constant 0 : index
    %358 = vector.load %arg14[%c3_323, %c0_324, %c0_325] : memref<16x8x32xf32, #tpu.memory_space<vmem>>, vector<1x8x32xf32>
    %359 = vector.shape_cast %358 : vector<1x8x32xf32> to vector<8x32xf32>
    %cst_326 = arith.constant dense<0.000000e+00> : vector<8x16xf32>
    %360 = tpu.matmul %359, %335, %cst_326 {dimension_numbers = #tpu.dot_dimension_numbers<[1], [0], [0], [1], [0, 0, 1, 1], [], []>} : vector<8x32xf32>, vector<32x16xf32>, vector<8x16xf32> -> vector<8x16xf32>
    %c3_327 = arith.constant 3 : index
    %c0_328 = arith.constant 0 : index
    %c0_329 = arith.constant 0 : index
    %361 = vector.load %arg15[%c3_327, %c0_328, %c0_329] : memref<16x16x16xf32, #tpu.memory_space<vmem>>, vector<1x16x16xf32>
    %362 = vector.shape_cast %361 : vector<1x16x16xf32> to vector<16x16xf32>
    %cst_330 = arith.constant dense<0.000000e+00> : vector<8x16xf32>
    %363 = tpu.matmul %360, %362, %cst_330 {dimension_numbers = #tpu.dot_dimension_numbers<[1], [0], [0], [1], [0, 0, 1, 1], [], []>} : vector<8x16xf32>, vector<16x16xf32>, vector<8x16xf32> -> vector<8x16xf32>
    %364 = arith.addf %357, %363 : vector<8x16xf32>
    %c4_331 = arith.constant 4 : index
    %c0_332 = arith.constant 0 : index
    %c0_333 = arith.constant 0 : index
    %365 = vector.load %arg14[%c4_331, %c0_332, %c0_333] : memref<16x8x32xf32, #tpu.memory_space<vmem>>, vector<1x8x32xf32>
    %366 = vector.shape_cast %365 : vector<1x8x32xf32> to vector<8x32xf32>
    %cst_334 = arith.constant dense<0.000000e+00> : vector<8x16xf32>
    %367 = tpu.matmul %366, %335, %cst_334 {dimension_numbers = #tpu.dot_dimension_numbers<[1], [0], [0], [1], [0, 0, 1, 1], [], []>} : vector<8x32xf32>, vector<32x16xf32>, vector<8x16xf32> -> vector<8x16xf32>
    %c4_335 = arith.constant 4 : index
    %c0_336 = arith.constant 0 : index
    %c0_337 = arith.constant 0 : index
    %368 = vector.load %arg15[%c4_335, %c0_336, %c0_337] : memref<16x16x16xf32, #tpu.memory_space<vmem>>, vector<1x16x16xf32>
    %369 = vector.shape_cast %368 : vector<1x16x16xf32> to vector<16x16xf32>
    %cst_338 = arith.constant dense<0.000000e+00> : vector<8x16xf32>
    %370 = tpu.matmul %367, %369, %cst_338 {dimension_numbers = #tpu.dot_dimension_numbers<[1], [0], [0], [1], [0, 0, 1, 1], [], []>} : vector<8x16xf32>, vector<16x16xf32>, vector<8x16xf32> -> vector<8x16xf32>
    %371 = arith.addf %364, %370 : vector<8x16xf32>
    %c5_339 = arith.constant 5 : index
    %c0_340 = arith.constant 0 : index
    %c0_341 = arith.constant 0 : index
    %372 = vector.load %arg14[%c5_339, %c0_340, %c0_341] : memref<16x8x32xf32, #tpu.memory_space<vmem>>, vector<1x8x32xf32>
    %373 = vector.shape_cast %372 : vector<1x8x32xf32> to vector<8x32xf32>
    %cst_342 = arith.constant dense<0.000000e+00> : vector<8x16xf32>
    %374 = tpu.matmul %373, %335, %cst_342 {dimension_numbers = #tpu.dot_dimension_numbers<[1], [0], [0], [1], [0, 0, 1, 1], [], []>} : vector<8x32xf32>, vector<32x16xf32>, vector<8x16xf32> -> vector<8x16xf32>
    %c5_343 = arith.constant 5 : index
    %c0_344 = arith.constant 0 : index
    %c0_345 = arith.constant 0 : index
    %375 = vector.load %arg15[%c5_343, %c0_344, %c0_345] : memref<16x16x16xf32, #tpu.memory_space<vmem>>, vector<1x16x16xf32>
    %376 = vector.shape_cast %375 : vector<1x16x16xf32> to vector<16x16xf32>
    %cst_346 = arith.constant dense<0.000000e+00> : vector<8x16xf32>
    %377 = tpu.matmul %374, %376, %cst_346 {dimension_numbers = #tpu.dot_dimension_numbers<[1], [0], [0], [1], [0, 0, 1, 1], [], []>} : vector<8x16xf32>, vector<16x16xf32>, vector<8x16xf32> -> vector<8x16xf32>
    %378 = arith.addf %371, %377 : vector<8x16xf32>
    %c6_347 = arith.constant 6 : index
    %c0_348 = arith.constant 0 : index
    %c0_349 = arith.constant 0 : index
    %379 = vector.load %arg14[%c6_347, %c0_348, %c0_349] : memref<16x8x32xf32, #tpu.memory_space<vmem>>, vector<1x8x32xf32>
    %380 = vector.shape_cast %379 : vector<1x8x32xf32> to vector<8x32xf32>
    %cst_350 = arith.constant dense<0.000000e+00> : vector<8x16xf32>
    %381 = tpu.matmul %380, %335, %cst_350 {dimension_numbers = #tpu.dot_dimension_numbers<[1], [0], [0], [1], [0, 0, 1, 1], [], []>} : vector<8x32xf32>, vector<32x16xf32>, vector<8x16xf32> -> vector<8x16xf32>
    %c6_351 = arith.constant 6 : index
    %c0_352 = arith.constant 0 : index
    %c0_353 = arith.constant 0 : index
    %382 = vector.load %arg15[%c6_351, %c0_352, %c0_353] : memref<16x16x16xf32, #tpu.memory_space<vmem>>, vector<1x16x16xf32>
    %383 = vector.shape_cast %382 : vector<1x16x16xf32> to vector<16x16xf32>
    %cst_354 = arith.constant dense<0.000000e+00> : vector<8x16xf32>
    %384 = tpu.matmul %381, %383, %cst_354 {dimension_numbers = #tpu.dot_dimension_numbers<[1], [0], [0], [1], [0, 0, 1, 1], [], []>} : vector<8x16xf32>, vector<16x16xf32>, vector<8x16xf32> -> vector<8x16xf32>
    %385 = arith.addf %378, %384 : vector<8x16xf32>
    %c7_355 = arith.constant 7 : index
    %c0_356 = arith.constant 0 : index
    %c0_357 = arith.constant 0 : index
    %386 = vector.load %arg14[%c7_355, %c0_356, %c0_357] : memref<16x8x32xf32, #tpu.memory_space<vmem>>, vector<1x8x32xf32>
    %387 = vector.shape_cast %386 : vector<1x8x32xf32> to vector<8x32xf32>
    %cst_358 = arith.constant dense<0.000000e+00> : vector<8x16xf32>
    %388 = tpu.matmul %387, %335, %cst_358 {dimension_numbers = #tpu.dot_dimension_numbers<[1], [0], [0], [1], [0, 0, 1, 1], [], []>} : vector<8x32xf32>, vector<32x16xf32>, vector<8x16xf32> -> vector<8x16xf32>
    %c7_359 = arith.constant 7 : index
    %c0_360 = arith.constant 0 : index
    %c0_361 = arith.constant 0 : index
    %389 = vector.load %arg15[%c7_359, %c0_360, %c0_361] : memref<16x16x16xf32, #tpu.memory_space<vmem>>, vector<1x16x16xf32>
    %390 = vector.shape_cast %389 : vector<1x16x16xf32> to vector<16x16xf32>
    %cst_362 = arith.constant dense<0.000000e+00> : vector<8x16xf32>
    %391 = tpu.matmul %388, %390, %cst_362 {dimension_numbers = #tpu.dot_dimension_numbers<[1], [0], [0], [1], [0, 0, 1, 1], [], []>} : vector<8x16xf32>, vector<16x16xf32>, vector<8x16xf32> -> vector<8x16xf32>
    %392 = arith.addf %385, %391 : vector<8x16xf32>
    %c8_363 = arith.constant 8 : index
    %c0_364 = arith.constant 0 : index
    %c0_365 = arith.constant 0 : index
    %393 = vector.load %arg14[%c8_363, %c0_364, %c0_365] : memref<16x8x32xf32, #tpu.memory_space<vmem>>, vector<1x8x32xf32>
    %394 = vector.shape_cast %393 : vector<1x8x32xf32> to vector<8x32xf32>
    %cst_366 = arith.constant dense<0.000000e+00> : vector<8x16xf32>
    %395 = tpu.matmul %394, %335, %cst_366 {dimension_numbers = #tpu.dot_dimension_numbers<[1], [0], [0], [1], [0, 0, 1, 1], [], []>} : vector<8x32xf32>, vector<32x16xf32>, vector<8x16xf32> -> vector<8x16xf32>
    %c8_367 = arith.constant 8 : index
    %c0_368 = arith.constant 0 : index
    %c0_369 = arith.constant 0 : index
    %396 = vector.load %arg15[%c8_367, %c0_368, %c0_369] : memref<16x16x16xf32, #tpu.memory_space<vmem>>, vector<1x16x16xf32>
    %397 = vector.shape_cast %396 : vector<1x16x16xf32> to vector<16x16xf32>
    %cst_370 = arith.constant dense<0.000000e+00> : vector<8x16xf32>
    %398 = tpu.matmul %395, %397, %cst_370 {dimension_numbers = #tpu.dot_dimension_numbers<[1], [0], [0], [1], [0, 0, 1, 1], [], []>} : vector<8x16xf32>, vector<16x16xf32>, vector<8x16xf32> -> vector<8x16xf32>
    %399 = arith.addf %392, %398 : vector<8x16xf32>
    %c9_371 = arith.constant 9 : index
    %c0_372 = arith.constant 0 : index
    %c0_373 = arith.constant 0 : index
    %400 = vector.load %arg14[%c9_371, %c0_372, %c0_373] : memref<16x8x32xf32, #tpu.memory_space<vmem>>, vector<1x8x32xf32>
    %401 = vector.shape_cast %400 : vector<1x8x32xf32> to vector<8x32xf32>
    %cst_374 = arith.constant dense<0.000000e+00> : vector<8x16xf32>
    %402 = tpu.matmul %401, %335, %cst_374 {dimension_numbers = #tpu.dot_dimension_numbers<[1], [0], [0], [1], [0, 0, 1, 1], [], []>} : vector<8x32xf32>, vector<32x16xf32>, vector<8x16xf32> -> vector<8x16xf32>
    %c9_375 = arith.constant 9 : index
    %c0_376 = arith.constant 0 : index
    %c0_377 = arith.constant 0 : index
    %403 = vector.load %arg15[%c9_375, %c0_376, %c0_377] : memref<16x16x16xf32, #tpu.memory_space<vmem>>, vector<1x16x16xf32>
    %404 = vector.shape_cast %403 : vector<1x16x16xf32> to vector<16x16xf32>
    %cst_378 = arith.constant dense<0.000000e+00> : vector<8x16xf32>
    %405 = tpu.matmul %402, %404, %cst_378 {dimension_numbers = #tpu.dot_dimension_numbers<[1], [0], [0], [1], [0, 0, 1, 1], [], []>} : vector<8x16xf32>, vector<16x16xf32>, vector<8x16xf32> -> vector<8x16xf32>
    %406 = arith.addf %399, %405 : vector<8x16xf32>
    %c10_379 = arith.constant 10 : index
    %c0_380 = arith.constant 0 : index
    %c0_381 = arith.constant 0 : index
    %407 = vector.load %arg14[%c10_379, %c0_380, %c0_381] : memref<16x8x32xf32, #tpu.memory_space<vmem>>, vector<1x8x32xf32>
    %408 = vector.shape_cast %407 : vector<1x8x32xf32> to vector<8x32xf32>
    %cst_382 = arith.constant dense<0.000000e+00> : vector<8x16xf32>
    %409 = tpu.matmul %408, %335, %cst_382 {dimension_numbers = #tpu.dot_dimension_numbers<[1], [0], [0], [1], [0, 0, 1, 1], [], []>} : vector<8x32xf32>, vector<32x16xf32>, vector<8x16xf32> -> vector<8x16xf32>
    %c10_383 = arith.constant 10 : index
    %c0_384 = arith.constant 0 : index
    %c0_385 = arith.constant 0 : index
    %410 = vector.load %arg15[%c10_383, %c0_384, %c0_385] : memref<16x16x16xf32, #tpu.memory_space<vmem>>, vector<1x16x16xf32>
    %411 = vector.shape_cast %410 : vector<1x16x16xf32> to vector<16x16xf32>
    %cst_386 = arith.constant dense<0.000000e+00> : vector<8x16xf32>
    %412 = tpu.matmul %409, %411, %cst_386 {dimension_numbers = #tpu.dot_dimension_numbers<[1], [0], [0], [1], [0, 0, 1, 1], [], []>} : vector<8x16xf32>, vector<16x16xf32>, vector<8x16xf32> -> vector<8x16xf32>
    %413 = arith.addf %406, %412 : vector<8x16xf32>
    %c11_387 = arith.constant 11 : index
    %c0_388 = arith.constant 0 : index
    %c0_389 = arith.constant 0 : index
    %414 = vector.load %arg14[%c11_387, %c0_388, %c0_389] : memref<16x8x32xf32, #tpu.memory_space<vmem>>, vector<1x8x32xf32>
    %415 = vector.shape_cast %414 : vector<1x8x32xf32> to vector<8x32xf32>
    %cst_390 = arith.constant dense<0.000000e+00> : vector<8x16xf32>
    %416 = tpu.matmul %415, %335, %cst_390 {dimension_numbers = #tpu.dot_dimension_numbers<[1], [0], [0], [1], [0, 0, 1, 1], [], []>} : vector<8x32xf32>, vector<32x16xf32>, vector<8x16xf32> -> vector<8x16xf32>
    %c11_391 = arith.constant 11 : index
    %c0_392 = arith.constant 0 : index
    %c0_393 = arith.constant 0 : index
    %417 = vector.load %arg15[%c11_391, %c0_392, %c0_393] : memref<16x16x16xf32, #tpu.memory_space<vmem>>, vector<1x16x16xf32>
    %418 = vector.shape_cast %417 : vector<1x16x16xf32> to vector<16x16xf32>
    %cst_394 = arith.constant dense<0.000000e+00> : vector<8x16xf32>
    %419 = tpu.matmul %416, %418, %cst_394 {dimension_numbers = #tpu.dot_dimension_numbers<[1], [0], [0], [1], [0, 0, 1, 1], [], []>} : vector<8x16xf32>, vector<16x16xf32>, vector<8x16xf32> -> vector<8x16xf32>
    %420 = arith.addf %413, %419 : vector<8x16xf32>
    %c12_395 = arith.constant 12 : index
    %c0_396 = arith.constant 0 : index
    %c0_397 = arith.constant 0 : index
    %421 = vector.load %arg14[%c12_395, %c0_396, %c0_397] : memref<16x8x32xf32, #tpu.memory_space<vmem>>, vector<1x8x32xf32>
    %422 = vector.shape_cast %421 : vector<1x8x32xf32> to vector<8x32xf32>
    %cst_398 = arith.constant dense<0.000000e+00> : vector<8x16xf32>
    %423 = tpu.matmul %422, %335, %cst_398 {dimension_numbers = #tpu.dot_dimension_numbers<[1], [0], [0], [1], [0, 0, 1, 1], [], []>} : vector<8x32xf32>, vector<32x16xf32>, vector<8x16xf32> -> vector<8x16xf32>
    %c12_399 = arith.constant 12 : index
    %c0_400 = arith.constant 0 : index
    %c0_401 = arith.constant 0 : index
    %424 = vector.load %arg15[%c12_399, %c0_400, %c0_401] : memref<16x16x16xf32, #tpu.memory_space<vmem>>, vector<1x16x16xf32>
    %425 = vector.shape_cast %424 : vector<1x16x16xf32> to vector<16x16xf32>
    %cst_402 = arith.constant dense<0.000000e+00> : vector<8x16xf32>
    %426 = tpu.matmul %423, %425, %cst_402 {dimension_numbers = #tpu.dot_dimension_numbers<[1], [0], [0], [1], [0, 0, 1, 1], [], []>} : vector<8x16xf32>, vector<16x16xf32>, vector<8x16xf32> -> vector<8x16xf32>
    %427 = arith.addf %420, %426 : vector<8x16xf32>
    %c13_403 = arith.constant 13 : index
    %c0_404 = arith.constant 0 : index
    %c0_405 = arith.constant 0 : index
    %428 = vector.load %arg14[%c13_403, %c0_404, %c0_405] : memref<16x8x32xf32, #tpu.memory_space<vmem>>, vector<1x8x32xf32>
    %429 = vector.shape_cast %428 : vector<1x8x32xf32> to vector<8x32xf32>
    %cst_406 = arith.constant dense<0.000000e+00> : vector<8x16xf32>
    %430 = tpu.matmul %429, %335, %cst_406 {dimension_numbers = #tpu.dot_dimension_numbers<[1], [0], [0], [1], [0, 0, 1, 1], [], []>} : vector<8x32xf32>, vector<32x16xf32>, vector<8x16xf32> -> vector<8x16xf32>
    %c13_407 = arith.constant 13 : index
    %c0_408 = arith.constant 0 : index
    %c0_409 = arith.constant 0 : index
    %431 = vector.load %arg15[%c13_407, %c0_408, %c0_409] : memref<16x16x16xf32, #tpu.memory_space<vmem>>, vector<1x16x16xf32>
    %432 = vector.shape_cast %431 : vector<1x16x16xf32> to vector<16x16xf32>
    %cst_410 = arith.constant dense<0.000000e+00> : vector<8x16xf32>
    %433 = tpu.matmul %430, %432, %cst_410 {dimension_numbers = #tpu.dot_dimension_numbers<[1], [0], [0], [1], [0, 0, 1, 1], [], []>} : vector<8x16xf32>, vector<16x16xf32>, vector<8x16xf32> -> vector<8x16xf32>
    %434 = arith.addf %427, %433 : vector<8x16xf32>
    %c14_411 = arith.constant 14 : index
    %c0_412 = arith.constant 0 : index
    %c0_413 = arith.constant 0 : index
    %435 = vector.load %arg14[%c14_411, %c0_412, %c0_413] : memref<16x8x32xf32, #tpu.memory_space<vmem>>, vector<1x8x32xf32>
    %436 = vector.shape_cast %435 : vector<1x8x32xf32> to vector<8x32xf32>
    %cst_414 = arith.constant dense<0.000000e+00> : vector<8x16xf32>
    %437 = tpu.matmul %436, %335, %cst_414 {dimension_numbers = #tpu.dot_dimension_numbers<[1], [0], [0], [1], [0, 0, 1, 1], [], []>} : vector<8x32xf32>, vector<32x16xf32>, vector<8x16xf32> -> vector<8x16xf32>
    %c14_415 = arith.constant 14 : index
    %c0_416 = arith.constant 0 : index
    %c0_417 = arith.constant 0 : index
    %438 = vector.load %arg15[%c14_415, %c0_416, %c0_417] : memref<16x16x16xf32, #tpu.memory_space<vmem>>, vector<1x16x16xf32>
    %439 = vector.shape_cast %438 : vector<1x16x16xf32> to vector<16x16xf32>
    %cst_418 = arith.constant dense<0.000000e+00> : vector<8x16xf32>
    %440 = tpu.matmul %437, %439, %cst_418 {dimension_numbers = #tpu.dot_dimension_numbers<[1], [0], [0], [1], [0, 0, 1, 1], [], []>} : vector<8x16xf32>, vector<16x16xf32>, vector<8x16xf32> -> vector<8x16xf32>
    %441 = arith.addf %434, %440 : vector<8x16xf32>
    %c15_419 = arith.constant 15 : index
    %c0_420 = arith.constant 0 : index
    %c0_421 = arith.constant 0 : index
    %442 = vector.load %arg14[%c15_419, %c0_420, %c0_421] : memref<16x8x32xf32, #tpu.memory_space<vmem>>, vector<1x8x32xf32>
    %443 = vector.shape_cast %442 : vector<1x8x32xf32> to vector<8x32xf32>
    %cst_422 = arith.constant dense<0.000000e+00> : vector<8x16xf32>
    %444 = tpu.matmul %443, %335, %cst_422 {dimension_numbers = #tpu.dot_dimension_numbers<[1], [0], [0], [1], [0, 0, 1, 1], [], []>} : vector<8x32xf32>, vector<32x16xf32>, vector<8x16xf32> -> vector<8x16xf32>
    %c15_423 = arith.constant 15 : index
    %c0_424 = arith.constant 0 : index
    %c0_425 = arith.constant 0 : index
    %445 = vector.load %arg15[%c15_423, %c0_424, %c0_425] : memref<16x16x16xf32, #tpu.memory_space<vmem>>, vector<1x16x16xf32>
    %446 = vector.shape_cast %445 : vector<1x16x16xf32> to vector<16x16xf32>
    %cst_426 = arith.constant dense<0.000000e+00> : vector<8x16xf32>
    %447 = tpu.matmul %444, %446, %cst_426 {dimension_numbers = #tpu.dot_dimension_numbers<[1], [0], [0], [1], [0, 0, 1, 1], [], []>} : vector<8x16xf32>, vector<16x16xf32>, vector<8x16xf32> -> vector<8x16xf32>
    %448 = arith.addf %441, %447 : vector<8x16xf32>
    %cst_427 = arith.constant dense<0.000000e+00> : vector<16xf32>
    %449 = vector.multi_reduction <add>, %448, %cst_427 [0] : vector<8x16xf32> to vector<16xf32>
    %450 = vector.shape_cast %449 : vector<16xf32> to vector<1x16xf32>
    %cst_428 = arith.constant 8.000000e+00 : f32
    %451 = vector.broadcast %cst_428 : f32 to vector<1x16xf32>
    %452 = arith.divf %450, %451 : vector<1x16xf32>
    %453 = arith.mulf %448, %448 : vector<8x16xf32>
    %cst_429 = arith.constant dense<0.000000e+00> : vector<16xf32>
    %454 = vector.multi_reduction <add>, %453, %cst_429 [0] : vector<8x16xf32> to vector<16xf32>
    %455 = vector.shape_cast %454 : vector<16xf32> to vector<1x16xf32>
    %cst_430 = arith.constant 8.000000e+00 : f32
    %456 = vector.broadcast %cst_430 : f32 to vector<1x16xf32>
    %457 = arith.divf %455, %456 : vector<1x16xf32>
    %458 = arith.mulf %452, %452 : vector<1x16xf32>
    %459 = arith.subf %457, %458 : vector<1x16xf32>
    %460 = vector.broadcast %452 : vector<1x16xf32> to vector<8x16xf32>
    %461 = arith.subf %448, %460 : vector<8x16xf32>
    %cst_431 = arith.constant 9.99999974E-6 : f32
    %462 = vector.broadcast %cst_431 : f32 to vector<1x16xf32>
    %463 = arith.addf %459, %462 : vector<1x16xf32>
    %464 = math.rsqrt %463 : vector<1x16xf32>
    %465 = vector.broadcast %464 : vector<1x16xf32> to vector<8x16xf32>
    %466 = arith.mulf %461, %465 : vector<8x16xf32>
    %c0_432 = arith.constant 0 : index
    %c0_433 = arith.constant 0 : index
    %467 = vector.load %arg16[%c0_432, %c0_433] : memref<1x16xf32, #tpu.memory_space<vmem>>, vector<1x16xf32>
    %468 = vector.broadcast %467 : vector<1x16xf32> to vector<8x16xf32>
    %469 = arith.mulf %466, %468 : vector<8x16xf32>
    %c0_434 = arith.constant 0 : index
    %c0_435 = arith.constant 0 : index
    %470 = vector.load %arg17[%c0_434, %c0_435] : memref<1x16xf32, #tpu.memory_space<vmem>>, vector<1x16xf32>
    %471 = vector.broadcast %470 : vector<1x16xf32> to vector<8x16xf32>
    %472 = arith.addf %469, %471 : vector<8x16xf32>
    %cst_436 = arith.constant 0.000000e+00 : f32
    %473 = vector.broadcast %cst_436 : f32 to vector<8x16xf32>
    %474 = arith.cmpf ogt, %472, %473 : vector<8x16xf32>
    %cst_437 = arith.constant 2.000000e-01 : f32
    %475 = vector.broadcast %cst_437 : f32 to vector<8x16xf32>
    %476 = arith.mulf %475, %472 : vector<8x16xf32>
    %477 = arith.select %474, %472, %476 : vector<8x16xi1>, vector<8x16xf32>
    %c0_438 = arith.constant 0 : index
    %c0_439 = arith.constant 0 : index
    %478 = vector.load %arg18[%c0_438, %c0_439] : memref<8x16xf32, #tpu.memory_space<vmem>>, vector<8x16xf32>
    %479 = arith.mulf %477, %478 : vector<8x16xf32>
    %c0_440 = arith.constant 0 : index
    %c0_441 = arith.constant 0 : index
    %480 = vector.load %arg19[%c0_440, %c0_441] : memref<2x8xf32, #tpu.memory_space<vmem>>, vector<2x8xf32>
    %cst_442 = arith.constant dense<0.000000e+00> : vector<2x16xf32>
    %481 = tpu.matmul %480, %479, %cst_442 {dimension_numbers = #tpu.dot_dimension_numbers<[1], [0], [0], [1], [0, 0, 1, 1], [], []>} : vector<2x8xf32>, vector<8x16xf32>, vector<2x16xf32> -> vector<2x16xf32>
    %cst_443 = arith.constant dense<0.000000e+00> : vector<2xf32>
    %482 = vector.multi_reduction <add>, %481, %cst_443 [1] : vector<2x16xf32> to vector<2xf32>
    %483 = vector.shape_cast %482 : vector<2xf32> to vector<2x1xf32>
    %c0_444 = arith.constant 0 : index
    %c0_445 = arith.constant 0 : index
    %484 = vector.load %arg20[%c0_444, %c0_445] : memref<1x1xf32, #tpu.memory_space<vmem>>, vector<1x1xf32>
    %485 = vector.broadcast %484 : vector<1x1xf32> to vector<2x1xf32>
    %486 = arith.addf %483, %485 : vector<2x1xf32>
    %cst_446 = arith.constant 0.000000e+00 : f32
    %487 = vector.broadcast %cst_446 : f32 to vector<2x1xf32>
    %488 = arith.subf %487, %486 : vector<2x1xf32>
    %489 = math.exp %488 : vector<2x1xf32>
    %cst_447 = arith.constant 1.000000e+00 : f32
    %490 = vector.broadcast %cst_447 : f32 to vector<2x1xf32>
    %491 = arith.addf %490, %489 : vector<2x1xf32>
    %cst_448 = arith.constant 1.000000e+00 : f32
    %492 = vector.broadcast %cst_448 : f32 to vector<2x1xf32>
    %493 = arith.divf %492, %491 : vector<2x1xf32>
    %c0_449 = arith.constant 0 : index
    %c0_450 = arith.constant 0 : index
    %494 = vector.load %arg21[%c0_449, %c0_450] : memref<2x1xf32, #tpu.memory_space<vmem>>, vector<2x1xf32>
    tpu.vector_store %arg21[%c0_449, %c0_450], %493 {strides = array<i32>} : memref<2x1xf32, #tpu.memory_space<vmem>>, vector<2x1xf32>,
    return
  }
}

</mosaic_0001>

<bundles_post_ra>
// kernel: forward.1
= control target key start
LH: loop header
LB: loop body
LE: loop exit
PB: predicated region body
PF: predicated region fallthrough
CT: control target
= control target key end

     0   :  { %vm94_vm0 = vcmask 523264   ;;  %s15491_s1 = inlined_call_operand.vmem [shape: f32[64,8], index: 1, kind: input, shape index: {}]   ;;  %s15492_s0 = inlined_call_operand.vmem [shape: f32[128,64], index: 0, kind: input, shape index: {}]   ;;  %s15493_s2 = inlined_call_operand.vmem [shape: f32[16,32,128], index: 2, kind: input, shape index: {}]   ;;  %s15494_s3 = inlined_call_operand.vmem [shape: f32[16,8,16], index: 3, kind: input, shape index: {}]   ;;  %s15495_s6 = inlined_call_operand.vmem [shape: f32[9,32,32], index: 6, kind: input, shape index: {}]   ;;  %s15496_s4 = inlined_call_operand.vmem [shape: f32[1,16], index: 4, kind: input, shape index: {}]   ;;  %s15497_s5 = inlined_call_operand.vmem [shape: f32[1,16], index: 5, kind: input, shape index: {}]   ;;  %s15498_s7 = inlined_call_operand.vmem [shape: f32[9,16,16], index: 7, kind: input, shape index: {}]   ;;  %s15499_s10 = inlined_call_operand.vmem [shape: f32[9,32,32], index: 10, kind: input, shape index: {}]   ;;  %s15500_s8 = inlined_call_operand.vmem [shape: f32[1,16], index: 8, kind: input, shape index: {}]   ;;  %s15501_s9 = inlined_call_operand.vmem [shape: f32[1,16], index: 9, kind: input, shape index: {}]   ;;  %s15502_s11 = inlined_call_operand.vmem [shape: f32[9,16,16], index: 11, kind: input, shape index: {}]   ;;  %s15503_s12 = inlined_call_operand.vmem [shape: f32[1,16], index: 12, kind: input, shape index: {}]   ;;  %s15504_s13 = inlined_call_operand.vmem [shape: f32[1,16], index: 13, kind: input, shape index: {}]   ;;  %s15505_s14 = inlined_call_operand.vmem [shape: f32[16,8,32], index: 14, kind: input, shape index: {}]   ;;  %s15506_s15 = inlined_call_operand.vmem [shape: f32[16,16,16], index: 15, kind: input, shape index: {}]   ;;  %s15507_s16 = inlined_call_operand.vmem [shape: f32[1,16], index: 16, kind: input, shape index: {}]   ;;  %s15508_s17 = inlined_call_operand.vmem [shape: f32[1,16], index: 17, kind: input, shape index: {}]   ;;  %s15509_s18 = inlined_call_operand.vmem [shape: f32[8,16], index: 18, kind: input, shape index: {}]   ;;  %s15510_s19 = inlined_call_operand.vmem [shape: f32[2,8], index: 19, kind: input, shape index: {}]   ;;  %s15511_s20 = inlined_call_operand.<no memory space> [shape: f32[1,1], index: 20, kind: input, shape index: {}]   ;;  %s15512_s21 = inlined_call_operand.vmem [shape: f32[2,1], index: 21, kind: output, shape index: {}]  }
   0x1   :  { %15518 = sst [smem:[#allocation3_spill]] %s15491_s1 }
   0x2   :  { %15519 = sst [smem:[#allocation4_spill]] %s15492_s0  ;;  %s15524_s26 = sld [smem:[#allocation3_spill]] }
   0x3   :  { %15520 = sst [smem:[#allocation5_spill]] %s15493_s2  ;;  %s15525_s2 = sld [smem:[#allocation4_spill]] }
   0x4   :  { %15521 = sst [smem:[#allocation6_spill]] %s15494_s3 }
   0x5   :  { %15522 = sst [smem:[#allocation7_spill]] %s15495_s6  ;;  %s15527_s25 = sld [smem:[#allocation6_spill]] }
   0x6   :  { %15523 = sst [smem:[#allocation8_spill]] %s15496_s4  ;;  %s15526_s4 = sld [smem:[#allocation5_spill]] }
   0x7   :  { %s15529_s23 = sld [smem:[#allocation8_spill]] }
   0x8   :  { %v86_v0 = vld [vmem:[%s15524_s26] sm:$0xff]  ;;  %v87_v1 = vld [vmem:[%s15524_s26 + $0x8] sm:$0xff]  ;;  %v88_v2 = vld [vmem:[%s15524_s26 + $0x10] sm:$0xff] }
   0x9   :  { %v12700_v3 = vpack.c.bf16 %v87_v1, %v86_v0  ;;  %v89_v4 = vld [vmem:[%s15524_s26 + $0x18] sm:$0xff]  ;;  %v90_v6 = vld [vmem:[%s15524_s26 + $0x20] sm:$0xff]  ;;  %v91_v7 = vld [vmem:[%s15524_s26 + $0x28] sm:$0xff] }
   0xa   :  { %v12704_v5 = vpack.c.bf16 %v89_v4, %v88_v2  ;;  %v70_v8 = vld [vmem:[%s15525_s2] sm:$0xff]  ;;  %v12708_v9 = vpack.c.bf16 %v91_v7, %v90_v6  ;;  %v92_v10 = vld [vmem:[%s15524_s26 + $0x30] sm:$0xff]  ;;  %v93_v11 = vld [vmem:[%s15524_s26 + $0x38] sm:$0xff]  ;;  %s15528_s26 = sld [smem:[#allocation7_spill]] }
   0xb   :  { %12701 = vmatprep.subr.bf16.mxu0 %v12700_v3  ;;  %11215 = vmatprep.mubr.msk.f32.mxu0 %vm94_vm0, %v70_v8  ;;  %v12712_v12 = vpack.c.bf16 %v93_v11, %v92_v10  ;;  %v71_v13 = vld [vmem:[%s15525_s2 + $0x8] sm:$0xff]  ;;  %v72_v14 = vld [vmem:[%s15525_s2 + $0x10] sm:$0xff]  ;;  %v73_v15 = vld [vmem:[%s15525_s2 + $0x18] sm:$0xff] }
   0xc   :  { %12703 = vmatpush3.bf16.msra.mxu0 %v12700_v3  ;;  %v74_v16 = vld [vmem:[%s15525_s2 + $0x20] sm:$0xff]  ;;  %v75_v17 = vld [vmem:[%s15525_s2 + $0x28] sm:$0xff]  ;;  %v76_v18 = vld [vmem:[%s15525_s2 + $0x30] sm:$0xff] }
   0xd   :  { %12705 = vmatprep.subr.bf16.mxu0 %v12704_v5  ;;  %v77_v19 = vld [vmem:[%s15525_s2 + $0x38] sm:$0xff]  ;;  %v78_v20 = vld [vmem:[%s15525_s2 + $0x40] sm:$0xff]  ;;  %v79_v21 = vld [vmem:[%s15525_s2 + $0x48] sm:$0xff] }
   0xe   :  { %v80_v22 = vld [vmem:[%s15525_s2 + $0x50] sm:$0xff]  ;;  %v81_v23 = vld [vmem:[%s15525_s2 + $0x58] sm:$0xff]  ;;  %v82_v24 = vld [vmem:[%s15525_s2 + $0x60] sm:$0xff] }
   0xf   :  { %v83_v25 = vld [vmem:[%s15525_s2 + $0x68] sm:$0xff]  ;;  %v84_v26 = vld [vmem:[%s15525_s2 + $0x70] sm:$0xff]  ;;  %v85_v27 = vld [vmem:[%s15525_s2 + $0x78] sm:$0xff] }
  0x10   :  { %12707 = vmatpush3.bf16.msra.mxu0 %v12704_v5  ;;  %v9927_v28 = vld [vmem:[%s15526_s4 + $0x20] sm:$0xff] }
  0x11   :  { %12709 = vmatprep.subr.bf16.mxu0 %v12708_v9  ;;  %v336_v29 = vld [vmem:[%s15526_s4] sm:$0xff] }
  0x12   :  { %11271 = vmatprep.mubr.f32.mxu1 %v336_v29  ;;  %v9941_v29 = vld [vmem:[%s15526_s4 + $0x48] sm:$0xff] }
  0x14   :  { %12711 = vmatpush3.bf16.msra.mxu0 %v12708_v9 }
  0x15   :  { %12713 = vmatprep.subr.bf16.mxu0 %v12712_v12 }
  0x18   :  { %12715 = vmatpush3.bf16.msra.mxu0 %v12712_v12 }
  0x1b   :  { %11216 = vmatmul.mubr.msk.f32.vlgmr.msra.gmra.mrb[0].mxu0 %vm94_vm0, %v71_v13 }
  0x1c   :  { %11218 = vmatprep.mubr.msk.f32.mxu0 %vm94_vm0, %v72_v14 }
  0x1f   :  { %11219 = vmatmul.mubr.msk.f32.gmra.mrb[2].mxu0 %vm94_vm0, %v73_v15 }
  0x20   :  { %11221 = vmatprep.mubr.msk.f32.mxu0 %vm94_vm0, %v74_v16 }
  0x23   :  { %11222 = vmatmul.mubr.msk.f32.gmra.mrb[4].mxu0 %vm94_vm0, %v75_v17 }
  0x24   :  { %11224 = vmatprep.mubr.msk.f32.mxu0 %vm94_vm0, %v76_v18 }
  0x27   :  { %11225 = vmatmul.mubr.msk.f32.gmra.mrb[6].mxu0 %vm94_vm0, %v77_v19 }
  0x28   :  { %11227 = vmatprep.mubr.msk.f32.mxu0 %vm94_vm0, %v78_v20 }
  0x2b   :  { %11228 = vmatmul.mubr.msk.f32.gmra.mrb[8].mxu0 %vm94_vm0, %v79_v21 }
  0x2c   :  { %11230 = vmatprep.mubr.msk.f32.mxu0 %vm94_vm0, %v80_v22  ;;  %v9928_v22 = vld [vmem:[%s15526_s4 + $0x28] sm:$0xff] }
  0x2f   :  { %11231 = vmatmul.mubr.msk.f32.gmra.mrb[10].mxu0 %vm94_vm0, %v81_v23  ;;  %v337_v23 = vld [vmem:[%s15526_s4 + $0x8] sm:$0xff] }
  0x30   :  { %11233 = vmatprep.mubr.msk.f32.mxu0 %vm94_vm0, %v82_v24  ;;  %v9929_v24 = vld [vmem:[%s15526_s4 + $0x30] sm:$0xff] }
  0x33   :  { %11234 = vmatmul.mubr.msk.f32.gmra.mrb[12].mxu0 %vm94_vm0, %v83_v25  ;;  %v338_v25 = vld [vmem:[%s15526_s4 + $0x10] sm:$0xff] }
  0x34   :  { %11236 = vmatprep.mubr.msk.f32.mxu0 %vm94_vm0, %v84_v26  ;;  %v9930_v26 = vld [vmem:[%s15526_s4 + $0x38] sm:$0xff] }
  0x37   :  { %11237 = vmatmul.mubr.msk.f32.gmra.mrb[14].mxu0 %vm94_vm0, %v85_v27  ;;  %v339_v27 = vld [vmem:[%s15526_s4 + $0x18] sm:$0xff] }
  0x38   :  { %11309 = vmatprep.mubr.f32.mxu0 %v9927_v28  ;;  %v9940_v28 = vld [vmem:[%s15526_s4 + $0x40] sm:$0xff] }
  0xee   :  { %v11217_v30 = vpop.f32.mrb[0].mxu0 }
  0xef   :  { %vm289_vm1 = vcmp.gt.f32.partialorder %v11217_v30, 0.0  ;;  %v305_v31 = vmul.f32 0.2, %v11217_v30  ;;  %v209_v32 = vpop.f32.mrb[1].mxu0 }
  0xf0   :  { %vm288_vm2 = vcmp.gt.f32.partialorder %v209_v32, 0.0  ;;  %v304_v33 = vmul.f32 0.2, %v209_v32 }
  0xf1   :  { %v321_v34 = vsel %vm289_vm1, %v11217_v30, %v305_v31  ;;  %v9942_v30 = vld [vmem:[%s15526_s4 + $0x50] sm:$0xff]  ;;  %v9943_v31 = vld [vmem:[%s15526_s4 + $0x58] sm:$0xff]  ;;  %vm518_vm1 = vcmask 64512  }
  0xf2   :  { %v320_v35 = vsel %vm288_vm2, %v209_v32, %v304_v33  ;;  %v11220_v36 = vpop.f32.mrb[2].mxu0  ;;  %v9958_v32 = vld [vmem:[%s15526_s4 + $0x80] sm:$0xff]  ;;  %v9959_v33 = vld [vmem:[%s15526_s4 + $0x88] sm:$0xff]  ;;  %vm3499_vm2 = vcmask 261120  }
  0xf3   :  { %v13964_v37 = vpack.c.bf16 %v321_v34, %v320_v35  ;;  %vm291_vm3 = vcmp.gt.f32.partialorder %v11220_v36, 0.0  ;;  %v307_v38 = vmul.f32 0.2, %v11220_v36  ;;  %v219_v39 = vpop.f32.mrb[3].mxu0  ;;  %v9960_v34 = vld [vmem:[%s15526_s4 + $0x90] sm:$0xff]  ;;  %v9961_v35 = vld [vmem:[%s15526_s4 + $0x98] sm:$0xff] }
  0xf4   :  { %vm290_vm4 = vcmp.gt.f32.partialorder %v219_v39, 0.0  ;;  %v306_v40 = vmul.f32 0.2, %v219_v39 }
  0xf5   :  { %v323_v41 = vsel %vm291_vm3, %v11220_v36, %v307_v38  ;;  %12717 = vmatprep.subr.bf16.mxu1 %v13964_v37  ;;  %12749 = vmatprep.subr.bf16.mxu0 %v13964_v37  ;;  %v9976_v36 = vld [vmem:[%s15526_s4 + $0xc0] sm:$0xff]  ;;  %v9931_v38 = vld [vmem:[%s15527_s25 + $0x8] sm:$0xff]  ;;  %vm3415_vm3 = vcmask 130048  }
  0xf6   :  { %v322_v42 = vsel %vm290_vm4, %v219_v39, %v306_v40  ;;  %v11223_v43 = vpop.f32.mrb[4].mxu0  ;;  %12719 = vmatpush3.bf16.msra.mxu1 %v13964_v37  ;;  %12751 = vmatpush3.bf16.msra.mxu0 %v13964_v37  ;;  %v14110_v39 = vld [vmem:[%s15527_s25] sm:$0xff]  ;;  %v9977_v40 = vld [vmem:[%s15526_s4 + $0xc8] sm:$0xff] }
  0xf7   :  { %v13970_v44 = vpack.c.bf16 %v323_v41, %v322_v42  ;;  %vm293_vm5 = vcmp.gt.f32.partialorder %v11223_v43, 0.0  ;;  %v309_v45 = vmul.f32 0.2, %v11223_v43  ;;  %v229_v46 = vpop.f32.mrb[5].mxu0  ;;  %v9978_v41 = vld [vmem:[%s15526_s4 + $0xd0] sm:$0xff]  ;;  %v9979_v42 = vld [vmem:[%s15526_s4 + $0xd8] sm:$0xff] }
  0xf8   :  { %vm292_vm6 = vcmp.gt.f32.partialorder %v229_v46, 0.0  ;;  %v308_v47 = vmul.f32 0.2, %v229_v46 }
  0xf9   :  { %v325_v48 = vsel %vm293_vm5, %v11223_v43, %v309_v45  ;;  %12721 = vmatprep.subr.bf16.mxu1 %v13970_v44  ;;  %12753 = vmatprep.subr.bf16.mxu0 %v13970_v44  ;;  %v9985_v43 = vld [vmem:[%s15526_s4 + $0xe0] sm:$0xff]  ;;  %v9986_v45 = vld [vmem:[%s15526_s4 + $0xe8] sm:$0xff] }
  0xfa   :  { %v324_v49 = vsel %vm292_vm6, %v229_v46, %v308_v47  ;;  %v11226_v50 = vpop.f32.mrb[6].mxu0  ;;  %12723 = vmatpush3.bf16.msra.mxu1 %v13970_v44  ;;  %12755 = vmatpush3.bf16.msra.mxu0 %v13970_v44  ;;  %v9987_v46 = vld [vmem:[%s15526_s4 + $0xf0] sm:$0xff]  ;;  %v9988_v47 = vld [vmem:[%s15526_s4 + $0xf8] sm:$0xff] }
  0xfb   :  { %v13976_v51 = vpack.c.bf16 %v325_v48, %v324_v49  ;;  %vm295_vm7 = vcmp.gt.f32.partialorder %v11226_v50, 0.0  ;;  %v311_v52 = vmul.f32 0.2, %v11226_v50  ;;  %v239_v53 = vpop.f32.mrb[7].mxu0  ;;  %v10003_v48 = vld [vmem:[%s15526_s4 + $0x120] sm:$0xff]  ;;  %v10004_v49 = vld [vmem:[%s15526_s4 + $0x128] sm:$0xff] }
  0xfc   :  { %vm294_vm8 = vcmp.gt.f32.partialorder %v239_v53, 0.0  ;;  %v310_v54 = vmul.f32 0.2, %v239_v53 }
  0xfd   :  { %v327_v55 = vsel %vm295_vm7, %v11226_v50, %v311_v52  ;;  %12725 = vmatprep.subr.bf16.mxu1 %v13976_v51  ;;  %12757 = vmatprep.subr.bf16.mxu0 %v13976_v51  ;;  %v10005_v50 = vld [vmem:[%s15526_s4 + $0x130] sm:$0xff]  ;;  %v10006_v52 = vld [vmem:[%s15526_s4 + $0x138] sm:$0xff] }
  0xfe   :  { %v326_v56 = vsel %vm294_vm8, %v239_v53, %v310_v54  ;;  %v11229_v57 = vpop.f32.mrb[8].mxu0  ;;  %12727 = vmatpush3.bf16.msra.mxu1 %v13976_v51  ;;  %12759 = vmatpush3.bf16.msra.mxu0 %v13976_v51  ;;  %v10012_v53 = vld [vmem:[%s15526_s4 + $0x140] sm:$0xff]  ;;  %v10013_v54 = vld [vmem:[%s15526_s4 + $0x148] sm:$0xff] }
  0xff   :  { %v13982_v58 = vpack.c.bf16 %v327_v55, %v326_v56  ;;  %vm297_vm9 = vcmp.gt.f32.partialorder %v11229_v57, 0.0  ;;  %v313_v59 = vmul.f32 0.2, %v11229_v57  ;;  %v249_v60 = vpop.f32.mrb[9].mxu0  ;;  %v10014_v55 = vld [vmem:[%s15526_s4 + $0x150] sm:$0xff]  ;;  %v10015_v56 = vld [vmem:[%s15526_s4 + $0x158] sm:$0xff] }
 0x100   :  { %vm296_vm10 = vcmp.gt.f32.partialorder %v249_v60, 0.0  ;;  %v312_v61 = vmul.f32 0.2, %v249_v60 }
 0x101   :  { %v329_v62 = vsel %vm297_vm9, %v11229_v57, %v313_v59  ;;  %12729 = vmatprep.subr.bf16.mxu1 %v13982_v58  ;;  %12761 = vmatprep.subr.bf16.mxu0 %v13982_v58  ;;  %v10030_v57 = vld [vmem:[%s15526_s4 + $0x180] sm:$0xff] }
 0x102   :  { %v328_v63 = vsel %vm296_vm10, %v249_v60, %v312_v61  ;;  %v11232_v0 = vpop.f32.mrb[10].mxu0  ;;  %12731 = vmatpush3.bf16.msra.mxu1 %v13982_v58  ;;  %12763 = vmatpush3.bf16.msra.mxu0 %v13982_v58 }
 0x103   :  { %v13988_v1 = vpack.c.bf16 %v329_v62, %v328_v63  ;;  %vm299_vm11 = vcmp.gt.f32.partialorder %v11232_v0, 0.0  ;;  %v315_v2 = vmul.f32 0.2, %v11232_v0  ;;  %v259_v3 = vpop.f32.mrb[11].mxu0  ;;  %v9944_v63 = vld [vmem:[%s15527_s25 + $0x10] sm:$0xff] }
 0x104   :  { %vm298_vm12 = vcmp.gt.f32.partialorder %v259_v3, 0.0  ;;  %v314_v4 = vmul.f32 0.2, %v259_v3 }
 0x105   :  { %v331_v5 = vsel %vm299_vm11, %v11232_v0, %v315_v2  ;;  %12733 = vmatprep.subr.bf16.mxu1 %v13988_v1  ;;  %12765 = vmatprep.subr.bf16.mxu0 %v13988_v1 }
 0x106   :  { %v330_v6 = vsel %vm298_vm12, %v259_v3, %v314_v4  ;;  %v11235_v7 = vpop.f32.mrb[12].mxu0  ;;  %12735 = vmatpush3.bf16.msra.mxu1 %v13988_v1  ;;  %12767 = vmatpush3.bf16.msra.mxu0 %v13988_v1  ;;  %vm13758_vm12 = vmmov 0  }
 0x107   :  { %v13994_v8 = vpack.c.bf16 %v331_v5, %v330_v6  ;;  %vm301_vm13 = vcmp.gt.f32.partialorder %v11235_v7, 0.0  ;;  %v317_v9 = vmul.f32 0.2, %v11235_v7  ;;  %v269_v10 = vpop.f32.mrb[13].mxu0  ;;  %v10031_v5 = vld [vmem:[%s15526_s4 + $0x188] sm:$0xff]  ;;  %v10032_v6 = vld [vmem:[%s15526_s4 + $0x190] sm:$0xff] }
 0x108   :  { %vm300_vm14 = vcmp.gt.f32.partialorder %v269_v10, 0.0  ;;  %v316_v11 = vmul.f32 0.2, %v269_v10 }
 0x109   :  { %v333_v12 = vsel %vm301_vm13, %v11235_v7, %v317_v9  ;;  %12737 = vmatprep.subr.bf16.mxu1 %v13994_v8  ;;  %12769 = vmatprep.subr.bf16.mxu0 %v13994_v8  ;;  %v10033_v7 = vld [vmem:[%s15526_s4 + $0x198] sm:$0xff]  ;;  %v10048_v9 = vld [vmem:[%s15526_s4 + $0x1c0] sm:$0xff] }
 0x10a   :  { %v332_v13 = vsel %vm300_vm14, %v269_v10, %v316_v11  ;;  %v11238_v14 = vpop.f32.mrb[14].mxu0  ;;  %12739 = vmatpush3.bf16.msra.mxu1 %v13994_v8  ;;  %12771 = vmatpush3.bf16.msra.mxu0 %v13994_v8 }
 0x10b   :  { %v14000_v15 = vpack.c.bf16 %v333_v12, %v332_v13  ;;  %vm303_vm15 = vcmp.gt.f32.partialorder %v11238_v14, 0.0  ;;  %v319_v16 = vmul.f32 0.2, %v11238_v14  ;;  %v279_v17 = vpop.f32.mrb[15].mxu0 }
 0x10c   :  { %vm302_vm0 = vcmp.gt.f32.partialorder %v279_v17, 0.0  ;;  %v318_v18 = vmul.f32 0.2, %v279_v17 }
 0x10d   :  { %v335_v19 = vsel %vm303_vm15, %v11238_v14, %v319_v16  ;;  %12741 = vmatprep.subr.bf16.mxu1 %v14000_v15  ;;  %12773 = vmatprep.subr.bf16.mxu0 %v14000_v15  ;;  %v9949_v14 = vld [vmem:[%s15526_s4 + $0x60] sm:$0xff]  ;;  %v10049_v16 = vld [vmem:[%s15526_s4 + $0x1c8] sm:$0xff] }
 0x10e   :  { %v334_v20 = vsel %vm302_vm0, %v279_v17, %v318_v18  ;;  %12743 = vmatpush3.bf16.msra.mxu1 %v14000_v15  ;;  %12775 = vmatpush3.bf16.msra.mxu0 %v14000_v15  ;;  %v9953_v17 = vld [vmem:[%s15527_s25 + $0x18] sm:$0xff]  ;;  %v9950_v18 = vld [vmem:[%s15526_s4 + $0x68] sm:$0xff] }
 0x10f   :  { %v14006_v21 = vpack.c.bf16 %v335_v19, %v334_v20  ;;  %v9951_v19 = vld [vmem:[%s15526_s4 + $0x70] sm:$0xff]  ;;  %v9952_v20 = vld [vmem:[%s15526_s4 + $0x78] sm:$0xff] }
 0x111   :  { %12745 = vmatprep.subr.bf16.mxu1 %v14006_v21  ;;  %12777 = vmatprep.subr.bf16.mxu0 %v14006_v21 }
 0x112   :  { %12747 = vmatpush3.bf16.msra.mxu1 %v14006_v21  ;;  %12779 = vmatpush3.bf16.msra.mxu0 %v14006_v21 }
 0x113   :  { %12781 = vmatprep.subr.bf16.mxu0 %v13964_v37  ;;  %11315 = vmatprep.subr.mxu1 %v9931_v38 }
 0x115   :  { %11310 = vmatmul.mubr.f32.vlgmr.msra.gmra.mrb[16].mxu0 %v9928_v22  ;;  %11272 = vmatmul.mubr.f32.vlgmr.msra.gmra.mrb[0].mxu1 %v337_v23  ;;  %v9962_v22 = vld [vmem:[%s15527_s25 + $0x20] sm:$0xff] }
 0x116   :  { %12783 = vmatpush3.bf16.msra.mxu0 %v13964_v37  ;;  %11312 = vmatprep.mubr.f32.mxu0 %v9929_v24 }
 0x117   :  { %12785 = vmatprep.subr.bf16.mxu0 %v13970_v44  ;;  %11274 = vmatprep.mubr.f32.mxu1 %v338_v25 }
 0x118   :  { %11316 = vmatpush3.msra.mxu1 %v9931_v38  ;;  %v9970_v38 = vld [vmem:[%s15526_s4 + $0xb8] sm:$0xff] }
 0x119   :  { %11313 = vmatmul.mubr.f32.gmra.mrb[18].mxu0 %v9930_v26  ;;  %11275 = vmatmul.mubr.f32.gmra.mrb[2].mxu1 %v339_v27 }
 0x11a   :  { %12787 = vmatpush3.bf16.msra.mxu0 %v13970_v44  ;;  %11363 = vmatprep.mubr.f32.mxu0 %v9940_v28 }
 0x11b   :  { %12789 = vmatprep.subr.bf16.mxu0 %v13976_v51  ;;  %11323 = vmatprep.subr.mxu1 %v14110_v39 }
 0x11e   :  { %12791 = vmatpush3.bf16.msra.mxu0 %v13976_v51 }
 0x11f   :  { %12793 = vmatprep.subr.bf16.mxu0 %v13982_v58 }
 0x122   :  { %12795 = vmatpush3.bf16.msra.mxu0 %v13982_v58 }
 0x123   :  { %12797 = vmatprep.subr.bf16.mxu0 %v13988_v1 }
 0x126   :  { %12799 = vmatpush3.bf16.msra.mxu0 %v13988_v1 }
 0x127   :  { %12801 = vmatprep.subr.bf16.mxu0 %v13994_v8 }
 0x12a   :  { %12803 = vmatpush3.bf16.msra.mxu0 %v13994_v8 }
 0x12b   :  { %12805 = vmatprep.subr.bf16.mxu0 %v14000_v15 }
 0x12e   :  { %12807 = vmatpush3.bf16.msra.mxu0 %v14000_v15 }
 0x12f   :  { %12809 = vmatprep.subr.bf16.mxu0 %v14006_v21 }
 0x132   :  { %12811 = vmatpush3.bf16.msra.mxu0 %v14006_v21 }
 0x133   :  { %12845 = vmatprep.subr.bf16.mxu0 %v13964_v37 }
 0x135   :  { %11364 = vmatmul.mubr.f32.vlgmr.msra.gmra.mrb[20].mxu0 %v9941_v29 }
 0x136   :  { %12847 = vmatpush3.bf16.msra.mxu0 %v13964_v37  ;;  %11366 = vmatprep.mubr.f32.mxu0 %v9942_v30 }
 0x137   :  { %12849 = vmatprep.subr.bf16.mxu0 %v13970_v44 }
 0x139   :  { %11367 = vmatmul.mubr.f32.gmra.mrb[22].mxu0 %v9943_v31 }
 0x13a   :  { %12851 = vmatpush3.bf16.msra.mxu0 %v13970_v44  ;;  %11455 = vmatprep.mubr.f32.mxu0 %v9958_v32 }
 0x13b   :  { %12853 = vmatprep.subr.bf16.mxu0 %v13976_v51 }
 0x13e   :  { %12855 = vmatpush3.bf16.msra.mxu0 %v13976_v51 }
 0x13f   :  { %12857 = vmatprep.subr.bf16.mxu0 %v13982_v58 }
 0x142   :  { %12859 = vmatpush3.bf16.msra.mxu0 %v13982_v58 }
 0x143   :  { %12861 = vmatprep.subr.bf16.mxu0 %v13988_v1 }
 0x146   :  { %12863 = vmatpush3.bf16.msra.mxu0 %v13988_v1 }
 0x147   :  { %12865 = vmatprep.subr.bf16.mxu0 %v13994_v8 }
 0x14a   :  { %12867 = vmatpush3.bf16.msra.mxu0 %v13994_v8 }
 0x14b   :  { %12869 = vmatprep.subr.bf16.mxu0 %v14000_v15 }
 0x14e   :  { %12871 = vmatpush3.bf16.msra.mxu0 %v14000_v15 }
 0x14f   :  { %12873 = vmatprep.subr.bf16.mxu0 %v14006_v21 }
 0x152   :  { %12875 = vmatpush3.bf16.msra.mxu0 %v14006_v21 }
 0x153   :  { %12909 = vmatprep.subr.bf16.mxu0 %v13964_v37 }
 0x155   :  { %11456 = vmatmul.mubr.f32.vlgmr.msra.gmra.mrb[24].mxu0 %v9959_v33  ;;  %v9967_v33 = vld [vmem:[%s15526_s4 + $0xa0] sm:$0xff] }
 0x156   :  { %12911 = vmatpush3.bf16.msra.mxu0 %v13964_v37  ;;  %11458 = vmatprep.mubr.f32.mxu0 %v9960_v34  ;;  %v9971_v34 = vld [vmem:[%s15527_s25 + $0x28] sm:$0xff] }
 0x157   :  { %12913 = vmatprep.subr.bf16.mxu0 %v13970_v44 }
 0x159   :  { %11459 = vmatmul.mubr.f32.gmra.mrb[26].mxu0 %v9961_v35  ;;  %v9968_v35 = vld [vmem:[%s15526_s4 + $0xa8] sm:$0xff] }
 0x15a   :  { %12915 = vmatpush3.bf16.msra.mxu0 %v13970_v44  ;;  %11547 = vmatprep.mubr.f32.mxu0 %v9976_v36  ;;  %v9969_v36 = vld [vmem:[%s15526_s4 + $0xb0] sm:$0xff] }
 0x15b   :  { %12917 = vmatprep.subr.bf16.mxu0 %v13976_v51 }
 0x15e   :  { %12919 = vmatpush3.bf16.msra.mxu0 %v13976_v51 }
 0x15f   :  { %12921 = vmatprep.subr.bf16.mxu0 %v13982_v58 }
 0x162   :  { %12923 = vmatpush3.bf16.msra.mxu0 %v13982_v58 }
 0x163   :  { %12925 = vmatprep.subr.bf16.mxu0 %v13988_v1 }
 0x166   :  { %12927 = vmatpush3.bf16.msra.mxu0 %v13988_v1 }
 0x167   :  { %12929 = vmatprep.subr.bf16.mxu0 %v13994_v8 }
 0x16a   :  { %12931 = vmatpush3.bf16.msra.mxu0 %v13994_v8 }
 0x16b   :  { %12933 = vmatprep.subr.bf16.mxu0 %v14000_v15 }
 0x16e   :  { %12935 = vmatpush3.bf16.msra.mxu0 %v14000_v15 }
 0x16f   :  { %12937 = vmatprep.subr.bf16.mxu0 %v14006_v21 }
 0x172   :  { %12939 = vmatpush3.bf16.msra.mxu0 %v14006_v21 }
 0x173   :  { %12941 = vmatprep.subr.bf16.mxu0 %v13964_v37 }
 0x175   :  { %11548 = vmatmul.mubr.f32.vlgmr.msra.gmra.mrb[28].mxu0 %v9977_v40 }
 0x176   :  { %12943 = vmatpush3.bf16.msra.mxu0 %v13964_v37  ;;  %11550 = vmatprep.mubr.f32.mxu0 %v9978_v41 }
 0x177   :  { %12945 = vmatprep.subr.bf16.mxu0 %v13970_v44 }
 0x179   :  { %11551 = vmatmul.mubr.f32.gmra.mrb[30].mxu0 %v9979_v42 }
 0x17a   :  { %12947 = vmatpush3.bf16.msra.mxu0 %v13970_v44  ;;  %11593 = vmatprep.mubr.f32.mxu0 %v9985_v43 }
 0x17b   :  { %12949 = vmatprep.subr.bf16.mxu0 %v13976_v51 }
 0x17e   :  { %12951 = vmatpush3.bf16.msra.mxu0 %v13976_v51 }
 0x17f   :  { %12953 = vmatprep.subr.bf16.mxu0 %v13982_v58 }
 0x182   :  { %12955 = vmatpush3.bf16.msra.mxu0 %v13982_v58 }
 0x183   :  { %12957 = vmatprep.subr.bf16.mxu0 %v13988_v1 }
 0x186   :  { %12959 = vmatpush3.bf16.msra.mxu0 %v13988_v1 }
 0x187   :  { %12961 = vmatprep.subr.bf16.mxu0 %v13994_v8 }
 0x18a   :  { %12963 = vmatpush3.bf16.msra.mxu0 %v13994_v8 }
 0x18b   :  { %12965 = vmatprep.subr.bf16.mxu0 %v14000_v15 }
 0x18e   :  { %12967 = vmatpush3.bf16.msra.mxu0 %v14000_v15 }
 0x18f   :  { %12969 = vmatprep.subr.bf16.mxu0 %v14006_v21 }
 0x192   :  { %12971 = vmatpush3.bf16.msra.mxu0 %v14006_v21 }
 0x193   :  { %13005 = vmatprep.subr.bf16.mxu0 %v13964_v37 }
 0x195   :  { %11594 = vmatmul.mubr.f32.vlgmr.msra.gmra.mrb[32].mxu0 %v9986_v45 }
 0x196   :  { %13007 = vmatpush3.bf16.msra.mxu0 %v13964_v37  ;;  %11596 = vmatprep.mubr.f32.mxu0 %v9987_v46 }
 0x197   :  { %13009 = vmatprep.subr.bf16.mxu0 %v13970_v44 }
 0x199   :  { %11597 = vmatmul.mubr.f32.gmra.mrb[34].mxu0 %v9988_v47 }
 0x19a   :  { %13011 = vmatpush3.bf16.msra.mxu0 %v13970_v44  ;;  %11685 = vmatprep.mubr.f32.mxu0 %v10003_v48 }
 0x19b   :  { %13013 = vmatprep.subr.bf16.mxu0 %v13976_v51 }
 0x19e   :  { %13015 = vmatpush3.bf16.msra.mxu0 %v13976_v51 }
 0x19f   :  { %13017 = vmatprep.subr.bf16.mxu0 %v13982_v58 }
 0x1a2   :  { %13019 = vmatpush3.bf16.msra.mxu0 %v13982_v58 }
 0x1a3   :  { %13021 = vmatprep.subr.bf16.mxu0 %v13988_v1 }
 0x1a6   :  { %13023 = vmatpush3.bf16.msra.mxu0 %v13988_v1 }
 0x1a7   :  { %13025 = vmatprep.subr.bf16.mxu0 %v13994_v8 }
 0x1aa   :  { %13027 = vmatpush3.bf16.msra.mxu0 %v13994_v8 }
 0x1ab   :  { %13029 = vmatprep.subr.bf16.mxu0 %v14000_v15 }
 0x1ae   :  { %13031 = vmatpush3.bf16.msra.mxu0 %v14000_v15 }
 0x1af   :  { %13033 = vmatprep.subr.bf16.mxu0 %v14006_v21 }
 0x1b2   :  { %13035 = vmatpush3.bf16.msra.mxu0 %v14006_v21 }
 0x1b3   :  { %13037 = vmatprep.subr.bf16.mxu0 %v13964_v37 }
 0x1b5   :  { %11686 = vmatmul.mubr.f32.vlgmr.msra.gmra.mrb[36].mxu0 %v10004_v49 }
 0x1b6   :  { %13039 = vmatpush3.bf16.msra.mxu0 %v13964_v37  ;;  %11688 = vmatprep.mubr.f32.mxu0 %v10005_v50 }
 0x1b7   :  { %13041 = vmatprep.subr.bf16.mxu0 %v13970_v44 }
 0x1b9   :  { %11689 = vmatmul.mubr.f32.gmra.mrb[38].mxu0 %v10006_v52  ;;  %v9989_v52 = vld [vmem:[%s15527_s25 + $0x38] sm:$0xff] }
 0x1ba   :  { %13043 = vmatpush3.bf16.msra.mxu0 %v13970_v44  ;;  %11731 = vmatprep.mubr.f32.mxu0 %v10012_v53 }
 0x1bb   :  { %13045 = vmatprep.subr.bf16.mxu0 %v13976_v51 }
 0x1be   :  { %13047 = vmatpush3.bf16.msra.mxu0 %v13976_v51 }
 0x1bf   :  { %13049 = vmatprep.subr.bf16.mxu0 %v13982_v58 }
 0x1c2   :  { %13051 = vmatpush3.bf16.msra.mxu0 %v13982_v58 }
 0x1c3   :  { %13053 = vmatprep.subr.bf16.mxu0 %v13988_v1 }
 0x1c6   :  { %13055 = vmatpush3.bf16.msra.mxu0 %v13988_v1 }
 0x1c7   :  { %13057 = vmatprep.subr.bf16.mxu0 %v13994_v8 }
 0x1ca   :  { %13059 = vmatpush3.bf16.msra.mxu0 %v13994_v8 }
 0x1cb   :  { %13061 = vmatprep.subr.bf16.mxu0 %v14000_v15 }
 0x1ce   :  { %13063 = vmatpush3.bf16.msra.mxu0 %v14000_v15 }
 0x1cf   :  { %13065 = vmatprep.subr.bf16.mxu0 %v14006_v21 }
 0x1d2   :  { %13067 = vmatpush3.bf16.msra.mxu0 %v14006_v21 }
 0x1d3   :  { %13101 = vmatprep.subr.bf16.mxu0 %v13964_v37 }
 0x1d5   :  { %11732 = vmatmul.mubr.f32.vlgmr.msra.gmra.mrb[40].mxu0 %v10013_v54 }
 0x1d6   :  { %13103 = vmatpush3.bf16.msra.mxu0 %v13964_v37  ;;  %11734 = vmatprep.mubr.f32.mxu0 %v10014_v55  ;;  %v9994_v55 = vld [vmem:[%s15526_s4 + $0x100] sm:$0xff] }
 0x1d7   :  { %13105 = vmatprep.subr.bf16.mxu0 %v13970_v44 }
 0x1d9   :  { %11735 = vmatmul.mubr.f32.gmra.mrb[42].mxu0 %v10015_v56  ;;  %v9998_v56 = vld [vmem:[%s15527_s25 + $0x40] sm:$0xff] }
 0x1da   :  { %13107 = vmatpush3.bf16.msra.mxu0 %v13970_v44  ;;  %11823 = vmatprep.mubr.f32.mxu0 %v10030_v57  ;;  %v9995_v57 = vld [vmem:[%s15526_s4 + $0x108] sm:$0xff] }
 0x1db   :  { %13109 = vmatprep.subr.bf16.mxu0 %v13976_v51 }
 0x1de   :  { %13111 = vmatpush3.bf16.msra.mxu0 %v13976_v51 }
 0x1df   :  { %13113 = vmatprep.subr.bf16.mxu0 %v13982_v58 }
 0x1e2   :  { %13115 = vmatpush3.bf16.msra.mxu0 %v13982_v58 }
 0x1e3   :  { %13117 = vmatprep.subr.bf16.mxu0 %v13988_v1 }
 0x1e6   :  { %13119 = vmatpush3.bf16.msra.mxu0 %v13988_v1 }
 0x1e7   :  { %13121 = vmatprep.subr.bf16.mxu0 %v13994_v8 }
 0x1e8   :  { %v11311_v59 = vpop.f32.mrb[16].mxu0  ;;  %v11273_v60 = vpop.f32.mrb[0].mxu1 }
 0x1e9   :  { %v497_v61 = vpop.f32.mrb[17].mxu0  ;;  %v406_v62 = vpop.f32.mrb[1].mxu1 }
 0x1ea   :  { %11317 = vmatprep.mubr.msk.f32.mxu1 %vm518_vm1, %v497_v61  ;;  %13123 = vmatpush3.bf16.msra.mxu0 %v13994_v8  ;;  %v10007_v61 = vld [vmem:[%s15527_s25 + $0x48] sm:$0xff] }
 0x1eb   :  { %11318 = vmatmul.mubr.msk.f32.vlgmr.msra.gmra.mrb[4].mxu1 %vm518_vm1, %v11311_v59  ;;  %13125 = vmatprep.subr.bf16.mxu0 %v14000_v15  ;;  %v9996_v59 = vld [vmem:[%s15526_s4 + $0x110] sm:$0xff] }
 0x1ec   :  { %v11314_v0 = vpop.f32.mrb[18].mxu0  ;;  %11324 = vmatpush3.msra.mxu1 %v14110_v39  ;;  %v11276_v2 = vpop.f32.mrb[2].mxu1  ;;  %v9980_v39 = vld [vmem:[%s15527_s25 + $0x30] sm:$0xff] }
 0x1ed   :  { %v507_v3 = vpop.f32.mrb[19].mxu0  ;;  %11369 = vmatprep.subr.mxu1 %v9944_v63  ;;  %v416_v4 = vpop.f32.mrb[3].mxu1 }
 0x1ee   :  { %11320 = vmatprep.mubr.msk.f32.mxu1 %vm518_vm1, %v507_v3  ;;  %13127 = vmatpush3.bf16.msra.mxu0 %v14000_v15 }
 0x1ef   :  { %11321 = vmatmul.mubr.msk.f32.gmra.mrb[6].mxu1 %vm518_vm1, %v11314_v0  ;;  %13129 = vmatprep.subr.bf16.mxu0 %v14006_v21 }
 0x1f0   :  { %11325 = vmatprep.mubr.msk.f32.mxu1 %vm518_vm1, %v406_v62 }
 0x1f2   :  { %13131 = vmatpush3.bf16.msra.mxu0 %v14006_v21 }
 0x1f3   :  { %11326 = vmatmul.mubr.msk.f32.vlgmr.msra.gmra.mrb[4].mxu1 %vm518_vm1, %v11273_v60  ;;  %13165 = vmatprep.subr.bf16.mxu0 %v13964_v37  ;;  %v9997_v60 = vld [vmem:[%s15526_s4 + $0x118] sm:$0xff] }
 0x1f4   :  { %11370 = vmatpush3.msra.mxu1 %v9944_v63  ;;  %11328 = vmatprep.mubr.msk.f32.mxu1 %vm518_vm1, %v416_v4 }
 0x1f5   :  { %12813 = vmatprep.subr.bf16.mxu1 %v13964_v37  ;;  %11824 = vmatmul.mubr.f32.vlgmr.msra.gmra.mrb[44].mxu0 %v10031_v5 }
 0x1f6   :  { %13167 = vmatpush3.bf16.msra.mxu0 %v13964_v37  ;;  %11826 = vmatprep.mubr.f32.mxu0 %v10032_v6 }
 0x1f7   :  { %13169 = vmatprep.subr.bf16.mxu0 %v13970_v44  ;;  %11329 = vmatmul.mubr.msk.f32.gmra.mrb[6].mxu1 %vm518_vm1, %v11276_v2 }
 0x1f9   :  { %11827 = vmatmul.mubr.f32.gmra.mrb[46].mxu0 %v10033_v7  ;;  %v10016_v7 = vld [vmem:[%s15527_s25 + $0x50] sm:$0xff] }
 0x1fa   :  { %13171 = vmatpush3.bf16.msra.mxu0 %v13970_v44  ;;  %11915 = vmatprep.mubr.f32.mxu0 %v10048_v9 }
 0x1fb   :  { %13173 = vmatprep.subr.bf16.mxu0 %v13976_v51 }
 0x1fe   :  { %13175 = vmatpush3.bf16.msra.mxu0 %v13976_v51 }
 0x1ff   :  { %13177 = vmatprep.subr.bf16.mxu0 %v13982_v58 }
 0x202   :  { %13179 = vmatpush3.bf16.msra.mxu0 %v13982_v58 }
 0x203   :  { %13181 = vmatprep.subr.bf16.mxu0 %v13988_v1 }
 0x206   :  { %13183 = vmatpush3.bf16.msra.mxu0 %v13988_v1 }
 0x207   :  { %13185 = vmatprep.subr.bf16.mxu0 %v13994_v8 }
 0x208   :  { %v11365_v10 = vpop.f32.mrb[20].mxu0 }
 0x209   :  { %v784_v11 = vpop.f32.mrb[21].mxu0 }
 0x20a   :  { %11371 = vmatprep.mubr.msk.f32.mxu1 %vm518_vm1, %v784_v11  ;;  %13187 = vmatpush3.bf16.msra.mxu0 %v13994_v8  ;;  %v10021_v11 = vld [vmem:[%s15526_s4 + $0x160] sm:$0xff] }
 0x20b   :  { %11372 = vmatmul.mubr.msk.f32.vlgmr.msra.gmra.mrb[4].mxu1 %vm518_vm1, %v11365_v10  ;;  %13189 = vmatprep.subr.bf16.mxu0 %v14000_v15 }
 0x20c   :  { %12815 = vmatpush3.bf16.msra.mxu1 %v13964_v37  ;;  %v11368_v12 = vpop.f32.mrb[22].mxu0 }
 0x20d   :  { %12817 = vmatprep.subr.bf16.mxu1 %v13970_v44  ;;  %v794_v13 = vpop.f32.mrb[23].mxu0 }
 0x20e   :  { %13191 = vmatpush3.bf16.msra.mxu0 %v14000_v15  ;;  %11374 = vmatprep.mubr.msk.f32.mxu1 %vm518_vm1, %v794_v13  ;;  %v10022_v13 = vld [vmem:[%s15526_s4 + $0x168] sm:$0xff] }
 0x20f   :  { %13193 = vmatprep.subr.bf16.mxu0 %v14006_v21  ;;  %11375 = vmatmul.mubr.msk.f32.gmra.mrb[6].mxu1 %vm518_vm1, %v11368_v12  ;;  %v10025_v12 = vld [vmem:[%s15527_s25 + $0x58] sm:$0xff] }
 0x210   :  { %12819 = vmatpush3.bf16.msra.mxu1 %v13970_v44  ;;  %11409 = vmatprep.mubr.f32.mxu1 %v9949_v14  ;;  %v10023_v14 = vld [vmem:[%s15526_s4 + $0x170] sm:$0xff] }
 0x211   :  { %12821 = vmatprep.subr.bf16.mxu1 %v13976_v51 }
 0x212   :  { %13195 = vmatpush3.bf16.msra.mxu0 %v14006_v21 }
 0x213   :  { %13197 = vmatprep.subr.bf16.mxu0 %v13964_v37 }
 0x214   :  { %12823 = vmatpush3.bf16.msra.mxu1 %v13976_v51 }
 0x215   :  { %12825 = vmatprep.subr.bf16.mxu1 %v13982_v58  ;;  %11916 = vmatmul.mubr.f32.vlgmr.msra.gmra.mrb[48].mxu0 %v10049_v16  ;;  %v10024_v16 = vld [vmem:[%s15526_s4 + $0x178] sm:$0xff] }
 0x216   :  { %13199 = vmatpush3.bf16.msra.mxu0 %v13964_v37 }
 0x217   :  { %13201 = vmatprep.subr.bf16.mxu0 %v13970_v44 }
 0x218   :  { %12827 = vmatpush3.bf16.msra.mxu1 %v13982_v58 }
 0x219   :  { %12829 = vmatprep.subr.bf16.mxu1 %v13988_v1 }
 0x21a   :  { %13203 = vmatpush3.bf16.msra.mxu0 %v13970_v44 }
 0x21b   :  { %13205 = vmatprep.subr.bf16.mxu0 %v13976_v51 }
 0x21c   :  { %12831 = vmatpush3.bf16.msra.mxu1 %v13988_v1 }
 0x21d   :  { %12833 = vmatprep.subr.bf16.mxu1 %v13994_v8 }
 0x21e   :  { %13207 = vmatpush3.bf16.msra.mxu0 %v13976_v51 }
 0x21f   :  { %13209 = vmatprep.subr.bf16.mxu0 %v13982_v58 }
 0x220   :  { %12835 = vmatpush3.bf16.msra.mxu1 %v13994_v8 }
 0x221   :  { %12837 = vmatprep.subr.bf16.mxu1 %v14000_v15 }
 0x222   :  { %13211 = vmatpush3.bf16.msra.mxu0 %v13982_v58 }
 0x223   :  { %13213 = vmatprep.subr.bf16.mxu0 %v13988_v1 }
 0x224   :  { %12839 = vmatpush3.bf16.msra.mxu1 %v14000_v15 }
 0x225   :  { %12841 = vmatprep.subr.bf16.mxu1 %v14006_v21 }
 0x226   :  { %13215 = vmatpush3.bf16.msra.mxu0 %v13988_v1 }
 0x227   :  { %13217 = vmatprep.subr.bf16.mxu0 %v13994_v8 }
 0x228   :  { %12843 = vmatpush3.bf16.msra.mxu1 %v14006_v21  ;;  %v11457_v23 = vpop.f32.mrb[24].mxu0 }
 0x229   :  { %11415 = vmatprep.subr.mxu1 %v9953_v17  ;;  %v1170_v24 = vpop.f32.mrb[25].mxu0 }
 0x22a   :  { %13219 = vmatpush3.bf16.msra.mxu0 %v13994_v8 }
 0x22b   :  { %11410 = vmatmul.mubr.f32.vlgmr.msra.gmra.mrb[8].mxu1 %v9950_v18  ;;  %13221 = vmatprep.subr.bf16.mxu0 %v14000_v15 }
 0x22c   :  { %11412 = vmatprep.mubr.f32.mxu1 %v9951_v19  ;;  %11416 = vmatpush3.msra.mxu1 %v9953_v17  ;;  %v11460_v25 = vpop.f32.mrb[26].mxu0  ;;  %v10034_v17 = vld [vmem:[%s15527_s25 + $0x60] sm:$0xff] }
 0x22d   :  { %11461 = vmatprep.subr.mxu1 %v9962_v22  ;;  %v1180_v26 = vpop.f32.mrb[27].mxu0 }
 0x22e   :  { %13223 = vmatpush3.bf16.msra.mxu0 %v14000_v15 }
 0x22f   :  { %11413 = vmatmul.mubr.f32.gmra.mrb[10].mxu1 %v9952_v20  ;;  %13225 = vmatprep.subr.bf16.mxu0 %v14006_v21 }
 0x232   :  { %13227 = vmatpush3.bf16.msra.mxu0 %v14006_v21 }
 0x248   :  { %v14323_v27 = vpop.f32.mrb[28].mxu0 }
 0x249   :  { %v1556_v28 = vpop.f32.mrb[29].mxu0 }
 0x24c   :  { %v11552_v40 = vpop.f32.mrb[30].mxu0 }
 0x24d   :  { %v1566_v41 = vpop.f32.mrb[31].mxu0 }
 0x268   :  { %v11595_v42 = vpop.f32.mrb[32].mxu0 }
 0x269   :  { %v1749_v43 = vpop.f32.mrb[33].mxu0 }
 0x26c   :  { %v11598_v45 = vpop.f32.mrb[34].mxu0 }
 0x26d   :  { %v1759_v46 = vpop.f32.mrb[35].mxu0 }
 0x288   :  { %v14367_v47 = vpop.f32.mrb[36].mxu0 }
 0x289   :  { %v14369_v48 = vpop.f32.mrb[37].mxu0 }
 0x28c   :  { %v11690_v62 = vpop.f32.mrb[38].mxu0 }
 0x28d   :  { %v2145_v63 = vpop.f32.mrb[39].mxu0 }
 0x2a8   :  { %v11733_v0 = vpop.f32.mrb[40].mxu0 }
 0x2a9   :  { %v2328_v2 = vpop.f32.mrb[41].mxu0 }
 0x2ac   :  { %v11736_v3 = vpop.f32.mrb[42].mxu0 }
 0x2ad   :  { %v2338_v4 = vpop.f32.mrb[43].mxu0 }
 0x2c8   :  { %v11825_v18 = vpop.f32.mrb[44].mxu0 }
 0x2c9   :  { %v2714_v19 = vpop.f32.mrb[45].mxu0 }
 0x2cc   :  { %v11828_v20 = vpop.f32.mrb[46].mxu0 }
 0x2fe   :  { %v11411_v29 = vpop.f32.mrb[8].mxu1 }
 0x2ff   :  { %v977_v30 = vpop.f32.mrb[9].mxu1 }
 0x300   :  { %11417 = vmatprep.mubr.msk.f32.mxu1 %vm518_vm1, %v977_v30  ;;  %v10060_v30 = vld [vmem:[%s15526_s4 + $0x1f8] sm:$0xff] }
 0x301   :  { %11418 = vmatmul.mubr.msk.f32.vlgmr.msra.gmra.mrb[4].mxu1 %vm518_vm1, %v11411_v29  ;;  %v10059_v29 = vld [vmem:[%s15526_s4 + $0x1f0] sm:$0xff] }
 0x302   :  { %11462 = vmatpush3.msra.mxu1 %v9962_v22  ;;  %v11414_v31 = vpop.f32.mrb[10].mxu1  ;;  %v2724_v22 = vpop.f32.mrb[47].mxu0 }
 0x303   :  { %12877 = vmatprep.subr.bf16.mxu1 %v13964_v37  ;;  %v987_v32 = vpop.f32.mrb[11].mxu1 }
 0x304   :  { %11420 = vmatprep.mubr.msk.f32.mxu1 %vm518_vm1, %v987_v32 }
 0x305   :  { %11421 = vmatmul.mubr.msk.f32.gmra.mrb[6].mxu1 %vm518_vm1, %v11414_v31 }
 0x306   :  { %11463 = vmatprep.mubr.msk.f32.mxu1 %vm518_vm1, %v1170_v24  ;;  %v10051_v24 = vld [vmem:[%s15526_s4 + $0x1d8] sm:$0xff] }
 0x309   :  { %11464 = vmatmul.mubr.msk.f32.vlgmr.msra.gmra.mrb[4].mxu1 %vm518_vm1, %v11457_v23  ;;  %v10050_v23 = vld [vmem:[%s15526_s4 + $0x1d0] sm:$0xff] }
 0x30a   :  { %12879 = vmatpush3.bf16.msra.mxu1 %v13964_v37  ;;  %11466 = vmatprep.mubr.msk.f32.mxu1 %vm518_vm1, %v1180_v26  ;;  %v14481_v26 = vpop.f32.mrb[48].mxu0 }
 0x30b   :  { %12881 = vmatprep.subr.bf16.mxu1 %v13970_v44  ;;  %11918 = vmatprep.mubr.f32.mxu0 %v10050_v23 }
 0x30c   :  { %11919 = vmatmul.mubr.f32.gmra.mrb[50].mxu0 %v10051_v24 }
 0x30d   :  { %11467 = vmatmul.mubr.msk.f32.gmra.mrb[6].mxu1 %vm518_vm1, %v11460_v25  ;;  %v10057_v25 = vld [vmem:[%s15526_s4 + $0x1e0] sm:$0xff] }
 0x30e   :  { %12883 = vmatpush3.bf16.msra.mxu1 %v13970_v44  ;;  %11501 = vmatprep.mubr.f32.mxu1 %v9967_v33 }
 0x30f   :  { %12885 = vmatprep.subr.bf16.mxu1 %v13976_v51  ;;  %11961 = vmatprep.mubr.f32.mxu0 %v10057_v25 }
 0x312   :  { %12887 = vmatpush3.bf16.msra.mxu1 %v13976_v51 }
 0x313   :  { %12889 = vmatprep.subr.bf16.mxu1 %v13982_v58 }
 0x316   :  { %12891 = vmatpush3.bf16.msra.mxu1 %v13982_v58 }
 0x317   :  { %12893 = vmatprep.subr.bf16.mxu1 %v13988_v1 }
 0x31a   :  { %12895 = vmatpush3.bf16.msra.mxu1 %v13988_v1 }
 0x31b   :  { %12897 = vmatprep.subr.bf16.mxu1 %v13994_v8 }
 0x31e   :  { %12899 = vmatpush3.bf16.msra.mxu1 %v13994_v8 }
 0x31f   :  { %12901 = vmatprep.subr.bf16.mxu1 %v14000_v15 }
 0x322   :  { %12903 = vmatpush3.bf16.msra.mxu1 %v14000_v15 }
 0x323   :  { %12905 = vmatprep.subr.bf16.mxu1 %v14006_v21 }
 0x326   :  { %12907 = vmatpush3.bf16.msra.mxu1 %v14006_v21 }
 0x327   :  { %11507 = vmatprep.subr.mxu1 %v9971_v34 }
 0x329   :  { %11502 = vmatmul.mubr.f32.vlgmr.msra.gmra.mrb[12].mxu1 %v9968_v35  ;;  %v10039_v35 = vld [vmem:[%s15526_s4 + $0x1a0] sm:$0xff] }
 0x32a   :  { %11504 = vmatprep.mubr.f32.mxu1 %v9969_v36  ;;  %11508 = vmatpush3.msra.mxu1 %v9971_v34 }
 0x32b   :  { %11553 = vmatprep.subr.mxu1 %v9980_v39 }
 0x32d   :  { %11505 = vmatmul.mubr.f32.gmra.mrb[14].mxu1 %v9970_v38 }
 0x3fc   :  { %v11503_v49 = vpop.f32.mrb[12].mxu1 }
 0x3fd   :  { %v1363_v50 = vpop.f32.mrb[13].mxu1 }
 0x3fe   :  { %11509 = vmatprep.mubr.msk.f32.mxu1 %vm518_vm1, %v1363_v50 }
 0x3ff   :  { %11510 = vmatmul.mubr.msk.f32.vlgmr.msra.gmra.mrb[4].mxu1 %vm518_vm1, %v11503_v49 }
 0x400   :  { %v11506_v53 = vpop.f32.mrb[14].mxu1  ;;  %11554 = vmatpush3.msra.mxu1 %v9980_v39 }
 0x401   :  { %v1373_v54 = vpop.f32.mrb[15].mxu1  ;;  %11599 = vmatprep.subr.mxu1 %v9989_v52 }
 0x402   :  { %11512 = vmatprep.mubr.msk.f32.mxu1 %vm518_vm1, %v1373_v54 }
 0x403   :  { %11513 = vmatmul.mubr.msk.f32.gmra.mrb[6].mxu1 %vm518_vm1, %v11506_v53 }
 0x404   :  { %11555 = vmatprep.mubr.msk.f32.mxu1 %vm518_vm1, %v1556_v28  ;;  %v10058_v28 = vld [vmem:[%s15526_s4 + $0x1e8] sm:$0xff] }
 0x405   :  { %11962 = vmatmul.mubr.f32.vlgmr.msra.gmra.mrb[52].mxu0 %v10058_v28 }
 0x406   :  { %11964 = vmatprep.mubr.f32.mxu0 %v10059_v29 }
 0x407   :  { %11556 = vmatmul.mubr.msk.f32.vlgmr.msra.gmra.mrb[4].mxu1 %vm518_vm1, %v14323_v27  ;;  %v14483_v27 = vpop.f32.mrb[49].mxu0 }
 0x408   :  { %11600 = vmatpush3.msra.mxu1 %v9989_v52  ;;  %11558 = vmatprep.mubr.msk.f32.mxu1 %vm518_vm1, %v1566_v41 }
 0x409   :  { %12973 = vmatprep.subr.bf16.mxu1 %v13964_v37  ;;  %11965 = vmatmul.mubr.f32.gmra.mrb[54].mxu0 %v10060_v30 }
 0x40b   :  { %11559 = vmatmul.mubr.msk.f32.gmra.mrb[6].mxu1 %vm518_vm1, %v11552_v40 }
 0x40c   :  { %11601 = vmatprep.mubr.msk.f32.mxu1 %vm518_vm1, %v1749_v43 }
 0x40f   :  { %11602 = vmatmul.mubr.msk.f32.vlgmr.msra.gmra.mrb[4].mxu1 %vm518_vm1, %v11595_v42  ;;  %v10061_v42 = vld [vmem:[%s15527_s25 + $0x78] sm:$0xff] }
 0x410   :  { %12975 = vmatpush3.bf16.msra.mxu1 %v13964_v37  ;;  %11604 = vmatprep.mubr.msk.f32.mxu1 %vm518_vm1, %v1759_v46  ;;  %v3495_v46 = vld [vmem:[%s15528_s26] sm:$0xff] }
 0x411   :  { %12977 = vmatprep.subr.bf16.mxu1 %v13970_v44 }
 0x413   :  { %11605 = vmatmul.mubr.msk.f32.gmra.mrb[6].mxu1 %vm518_vm1, %v11598_v45 }
 0x414   :  { %12979 = vmatpush3.bf16.msra.mxu1 %v13970_v44  ;;  %11639 = vmatprep.mubr.f32.mxu1 %v9994_v55 }
 0x415   :  { %12981 = vmatprep.subr.bf16.mxu1 %v13976_v51 }
 0x418   :  { %12983 = vmatpush3.bf16.msra.mxu1 %v13976_v51 }
 0x419   :  { %12985 = vmatprep.subr.bf16.mxu1 %v13982_v58 }
 0x41c   :  { %12987 = vmatpush3.bf16.msra.mxu1 %v13982_v58 }
 0x41d   :  { %12989 = vmatprep.subr.bf16.mxu1 %v13988_v1 }
 0x420   :  { %12991 = vmatpush3.bf16.msra.mxu1 %v13988_v1 }
 0x421   :  { %12993 = vmatprep.subr.bf16.mxu1 %v13994_v8 }
 0x424   :  { %12995 = vmatpush3.bf16.msra.mxu1 %v13994_v8 }
 0x425   :  { %12997 = vmatprep.subr.bf16.mxu1 %v14000_v15 }
 0x428   :  { %12999 = vmatpush3.bf16.msra.mxu1 %v14000_v15 }
 0x429   :  { %13001 = vmatprep.subr.bf16.mxu1 %v14006_v21 }
 0x42c   :  { %13003 = vmatpush3.bf16.msra.mxu1 %v14006_v21 }
 0x42d   :  { %11645 = vmatprep.subr.mxu1 %v9998_v56 }
 0x42f   :  { %11640 = vmatmul.mubr.f32.vlgmr.msra.gmra.mrb[16].mxu1 %v9995_v57 }
 0x430   :  { %11642 = vmatprep.mubr.f32.mxu1 %v9996_v59  ;;  %11646 = vmatpush3.msra.mxu1 %v9998_v56 }
 0x431   :  { %11691 = vmatprep.subr.mxu1 %v10007_v61 }
 0x433   :  { %11643 = vmatmul.mubr.f32.gmra.mrb[18].mxu1 %v9997_v60 }
 0x502   :  { %v11641_v5 = vpop.f32.mrb[16].mxu1 }
 0x503   :  { %v1942_v6 = vpop.f32.mrb[17].mxu1 }
 0x504   :  { %11647 = vmatprep.mubr.msk.f32.mxu1 %vm518_vm1, %v1942_v6 }
 0x505   :  { %11648 = vmatmul.mubr.msk.f32.vlgmr.msra.gmra.mrb[4].mxu1 %vm518_vm1, %v11641_v5 }
 0x506   :  { %v11644_v9 = vpop.f32.mrb[18].mxu1  ;;  %11692 = vmatpush3.msra.mxu1 %v10007_v61 }
 0x507   :  { %v1952_v10 = vpop.f32.mrb[19].mxu1  ;;  %11737 = vmatprep.subr.mxu1 %v10016_v7 }
 0x508   :  { %11650 = vmatprep.mubr.msk.f32.mxu1 %vm518_vm1, %v1952_v10 }
 0x509   :  { %11651 = vmatmul.mubr.msk.f32.gmra.mrb[6].mxu1 %vm518_vm1, %v11644_v9 }
 0x50a   :  { %11693 = vmatprep.mubr.msk.f32.mxu1 %vm518_vm1, %v14369_v48 }
 0x50d   :  { %11694 = vmatmul.mubr.msk.f32.vlgmr.msra.gmra.mrb[4].mxu1 %vm518_vm1, %v14367_v47 }
 0x50e   :  { %11738 = vmatpush3.msra.mxu1 %v10016_v7  ;;  %11696 = vmatprep.mubr.msk.f32.mxu1 %vm518_vm1, %v2145_v63 }
 0x50f   :  { %13069 = vmatprep.subr.bf16.mxu1 %v13964_v37 }
 0x511   :  { %11697 = vmatmul.mubr.msk.f32.gmra.mrb[6].mxu1 %vm518_vm1, %v11690_v62 }
 0x512   :  { %11739 = vmatprep.mubr.msk.f32.mxu1 %vm518_vm1, %v2328_v2 }
 0x515   :  { %11740 = vmatmul.mubr.msk.f32.vlgmr.msra.gmra.mrb[4].mxu1 %vm518_vm1, %v11733_v0 }
 0x516   :  { %13071 = vmatpush3.bf16.msra.mxu1 %v13964_v37  ;;  %11742 = vmatprep.mubr.msk.f32.mxu1 %vm518_vm1, %v2338_v4 }
 0x517   :  { %13073 = vmatprep.subr.bf16.mxu1 %v13970_v44 }
 0x519   :  { %11743 = vmatmul.mubr.msk.f32.gmra.mrb[6].mxu1 %vm518_vm1, %v11736_v3 }
 0x51a   :  { %13075 = vmatpush3.bf16.msra.mxu1 %v13970_v44  ;;  %11777 = vmatprep.mubr.f32.mxu1 %v10021_v11 }
 0x51b   :  { %13077 = vmatprep.subr.bf16.mxu1 %v13976_v51 }
 0x51e   :  { %13079 = vmatpush3.bf16.msra.mxu1 %v13976_v51 }
 0x51f   :  { %13081 = vmatprep.subr.bf16.mxu1 %v13982_v58 }
 0x522   :  { %13083 = vmatpush3.bf16.msra.mxu1 %v13982_v58 }
 0x523   :  { %13085 = vmatprep.subr.bf16.mxu1 %v13988_v1 }
 0x526   :  { %13087 = vmatpush3.bf16.msra.mxu1 %v13988_v1 }
 0x527   :  { %13089 = vmatprep.subr.bf16.mxu1 %v13994_v8 }
 0x52a   :  { %13091 = vmatpush3.bf16.msra.mxu1 %v13994_v8 }
 0x52b   :  { %13093 = vmatprep.subr.bf16.mxu1 %v14000_v15 }
 0x52e   :  { %13095 = vmatpush3.bf16.msra.mxu1 %v14000_v15 }
 0x52f   :  { %13097 = vmatprep.subr.bf16.mxu1 %v14006_v21 }
 0x532   :  { %13099 = vmatpush3.bf16.msra.mxu1 %v14006_v21 }
 0x533   :  { %11783 = vmatprep.subr.mxu1 %v10025_v12 }
 0x535   :  { %11778 = vmatmul.mubr.f32.vlgmr.msra.gmra.mrb[20].mxu1 %v10022_v13 }
 0x536   :  { %11780 = vmatprep.mubr.f32.mxu1 %v10023_v14  ;;  %11784 = vmatpush3.msra.mxu1 %v10025_v12 }
 0x537   :  { %11829 = vmatprep.subr.mxu1 %v10034_v17 }
 0x539   :  { %11781 = vmatmul.mubr.f32.gmra.mrb[22].mxu1 %v10024_v16 }
 0x608   :  { %v11779_v31 = vpop.f32.mrb[20].mxu1 }
 0x609   :  { %v2521_v32 = vpop.f32.mrb[21].mxu1 }
 0x60a   :  { %11785 = vmatprep.mubr.msk.f32.mxu1 %vm518_vm1, %v2521_v32 }
 0x60b   :  { %11786 = vmatmul.mubr.msk.f32.vlgmr.msra.gmra.mrb[4].mxu1 %vm518_vm1, %v11779_v31 }
 0x60c   :  { %11830 = vmatpush3.msra.mxu1 %v10034_v17  ;;  %v11782_v33 = vpop.f32.mrb[22].mxu1 }
 0x60d   :  { %13133 = vmatprep.subr.bf16.mxu1 %v13964_v37  ;;  %v2531_v34 = vpop.f32.mrb[23].mxu1 }
 0x60e   :  { %11788 = vmatprep.mubr.msk.f32.mxu1 %vm518_vm1, %v2531_v34 }
 0x60f   :  { %11789 = vmatmul.mubr.msk.f32.gmra.mrb[6].mxu1 %vm518_vm1, %v11782_v33  ;;  %v10066_v33 = vld [vmem:[%s15529_s23] ss:$0 sm:$0xff] }
 0x610   :  { %11831 = vmatprep.mubr.msk.f32.mxu1 %vm518_vm1, %v2714_v19 }
 0x613   :  { %11832 = vmatmul.mubr.msk.f32.vlgmr.msra.gmra.mrb[4].mxu1 %vm518_vm1, %v11825_v18 }
 0x614   :  { %13135 = vmatpush3.bf16.msra.mxu1 %v13964_v37  ;;  %11834 = vmatprep.mubr.msk.f32.mxu1 %vm518_vm1, %v2724_v22  ;;  %v10043_v37 = vld [vmem:[%s15527_s25 + $0x68] sm:$0xff] }
 0x615   :  { %13137 = vmatprep.subr.bf16.mxu1 %v13970_v44 }
 0x617   :  { %11835 = vmatmul.mubr.msk.f32.gmra.mrb[6].mxu1 %vm518_vm1, %v11828_v20 }
 0x618   :  { %13139 = vmatpush3.bf16.msra.mxu1 %v13970_v44  ;;  %11869 = vmatprep.mubr.f32.mxu1 %v10039_v35  ;;  %v10040_v44 = vld [vmem:[%s15526_s4 + $0x1a8] sm:$0xff] }
 0x619   :  { %13141 = vmatprep.subr.bf16.mxu1 %v13976_v51 }
 0x61c   :  { %13143 = vmatpush3.bf16.msra.mxu1 %v13976_v51  ;;  %v10041_v51 = vld [vmem:[%s15526_s4 + $0x1b0] sm:$0xff] }
 0x61d   :  { %13145 = vmatprep.subr.bf16.mxu1 %v13982_v58 }
 0x620   :  { %13147 = vmatpush3.bf16.msra.mxu1 %v13982_v58  ;;  %v10042_v58 = vld [vmem:[%s15526_s4 + $0x1b8] sm:$0xff] }
 0x621   :  { %13149 = vmatprep.subr.bf16.mxu1 %v13988_v1 }
 0x624   :  { %13151 = vmatpush3.bf16.msra.mxu1 %v13988_v1  ;;  %v10052_v1 = vld [vmem:[%s15527_s25 + $0x70] sm:$0xff] }
 0x625   :  { %13153 = vmatprep.subr.bf16.mxu1 %v13994_v8 }
 0x628   :  { %13155 = vmatpush3.bf16.msra.mxu1 %v13994_v8  ;;  %v11920_v8 = vpop.f32.mrb[50].mxu0 }
 0x629   :  { %13157 = vmatprep.subr.bf16.mxu1 %v14000_v15 }
 0x62c   :  { %13159 = vmatpush3.bf16.msra.mxu1 %v14000_v15  ;;  %v3110_v15 = vpop.f32.mrb[51].mxu0 }
 0x62d   :  { %13161 = vmatprep.subr.bf16.mxu1 %v14006_v21 }
 0x630   :  { %13163 = vmatpush3.bf16.msra.mxu1 %v14006_v21  ;;  %v11963_v21 = vpop.f32.mrb[52].mxu0 }
 0x631   :  { %11875 = vmatprep.subr.mxu1 %v10043_v37  ;;  %v3293_v36 = vpop.f32.mrb[53].mxu0 }
 0x632   :  { %v11966_v38 = vpop.f32.mrb[54].mxu0 }
 0x633   :  { %11870 = vmatmul.mubr.f32.vlgmr.msra.gmra.mrb[24].mxu1 %v10040_v44  ;;  %v3303_v39 = vpop.f32.mrb[55].mxu0 }
 0x634   :  { %11872 = vmatprep.mubr.f32.mxu1 %v10041_v51  ;;  %11876 = vmatpush3.msra.mxu1 %v10043_v37  ;;  %v10067_v51 = vld [vmem:[%s15497_s5] ss:$0 sm:$0xff] }
 0x635   :  { %11921 = vmatprep.subr.mxu1 %v10052_v1 }
 0x637   :  { %11873 = vmatmul.mubr.f32.gmra.mrb[26].mxu1 %v10042_v58 }
 0x706   :  { %v11871_v40 = vpop.f32.mrb[24].mxu1 }
 0x707   :  { %v2907_v41 = vpop.f32.mrb[25].mxu1 }
 0x708   :  { %11877 = vmatprep.mubr.msk.f32.mxu1 %vm518_vm1, %v2907_v41 }
 0x709   :  { %11878 = vmatmul.mubr.msk.f32.vlgmr.msra.gmra.mrb[4].mxu1 %vm518_vm1, %v11871_v40 }
 0x70a   :  { %v11874_v43 = vpop.f32.mrb[26].mxu1  ;;  %11922 = vmatpush3.msra.mxu1 %v10052_v1 }
 0x70b   :  { %v2917_v45 = vpop.f32.mrb[27].mxu1  ;;  %11967 = vmatprep.subr.mxu1 %v10061_v42 }
 0x70c   :  { %11880 = vmatprep.mubr.msk.f32.mxu1 %vm518_vm1, %v2917_v45 }
 0x70d   :  { %11881 = vmatmul.mubr.msk.f32.gmra.mrb[6].mxu1 %vm518_vm1, %v11874_v43 }
 0x70e   :  { %11923 = vmatprep.mubr.msk.f32.mxu1 %vm518_vm1, %v14483_v27 }
 0x711   :  { %11924 = vmatmul.mubr.msk.f32.vlgmr.msra.gmra.mrb[4].mxu1 %vm518_vm1, %v14481_v26 }
 0x712   :  { %11926 = vmatprep.mubr.msk.f32.mxu1 %vm518_vm1, %v3110_v15  ;;  %11968 = vmatpush3.msra.mxu1 %v10061_v42 }
 0x715   :  { %11927 = vmatmul.mubr.msk.f32.gmra.mrb[6].mxu1 %vm518_vm1, %v11920_v8 }
 0x716   :  { %11969 = vmatprep.mubr.msk.f32.mxu1 %vm518_vm1, %v3293_v36 }
 0x719   :  { %11970 = vmatmul.mubr.msk.f32.vlgmr.msra.gmra.mrb[4].mxu1 %vm518_vm1, %v11963_v21 }
 0x71a   :  { %11972 = vmatprep.mubr.msk.f32.mxu1 %vm518_vm1, %v3303_v39 }
 0x71d   :  { %11973 = vmatmul.mubr.msk.f32.gmra.mrb[6].mxu1 %vm518_vm1, %v11966_v38 }
 0x71e   :  { %11983 = vmatprep.mubr.msk.f32.mxu1 %vm3499_vm2, %v3495_v46 }
 0x7ec   :  { %v11971_v47 = vpop.f32.mrb[4].mxu1 }
 0x7ed   :  { %v3417_v48 = vsel %vm3415_vm3, %v11971_v47, 0.0  ;;  %v3432_v49 = vmul.f32 %v11971_v47, %v11971_v47  ;;  %v3392_v50 = vpop.f32.mrb[5].mxu1 }
 0x7ee   :  { %v3416_v52 = vsel %vm3415_vm3, %v3392_v50, 0.0  ;;  %v3431_v53 = vmul.f32 %v3392_v50, %v3392_v50 }
 0x7ef   :  { %v3436_v54 = vsel %vm3415_vm3, %v3432_v49, 0.0  ;;  %v3418_v55 = vadd.f32 %v3417_v48, %v3416_v52  ;;  %v3496_v52 = vld [vmem:[%s15528_s26 + $0x8] sm:$0xff] }
 0x7f0   :  { %v3435_v56 = vsel %vm3415_vm3, %v3431_v53, 0.0  ;;  %v11974_v57 = vpop.f32.mrb[6].mxu1  ;;  %v3497_v53 = vld [vmem:[%s15528_s26 + $0x10] sm:$0xff] }
 0x7f1   :  { %v3437_v59 = vadd.f32 %v3436_v54, %v3435_v56  ;;  %v3402_v60 = vpop.f32.mrb[7].mxu1  ;;  %v3434_v61 = vmul.f32 %v11974_v57, %v11974_v57  ;;  %v3421_v2 = vsel %vm3415_vm3, %v11974_v57, 0.0  ;;  %v3498_v54 = vld [vmem:[%s15528_s26 + $0x18] sm:$0xff]  ;;  %v10073_v56 = vld [vmem:[%s15528_s26 + $0x28] sm:$0xff] }
 0x7f2   :  { %v3419_v62 = vsel %vm3415_vm3, %v3402_v60, 0.0  ;;  %v3433_v63 = vmul.f32 %v3402_v60, %v3402_v60 }
 0x7f3   :  { %v3420_v0 = vadd.f32 %v3419_v62, %v3418_v55  ;;  %v3440_v6 = vsel %vm3415_vm3, %v3434_v61, 0.0  ;;  %v10072_v55 = vld [vmem:[%s15528_s26 + $0x20] sm:$0xff]  ;;  %v10091_v61 = vld [vmem:[%s15528_s26 + $0x48] sm:$0xff]  ;;  %v10092_v62 = vld [vmem:[%s15528_s26 + $0x50] sm:$0xff] }
 0x7f4   :  { %v3438_v3 = vsel %vm3415_vm3, %v3433_v63, 0.0  ;;  %v10093_v63 = vld [vmem:[%s15528_s26 + $0x58] sm:$0xff] }
 0x7f5   :  { %v3422_v4 = vadd.f32 %v3421_v2, %v3420_v0  ;;  %v3439_v5 = vadd.f32 %v3438_v3, %v3437_v59  ;;  %v10075_v59 = vld [vmem:[%s15528_s26 + $0x38] sm:$0xff]  ;;  %v10104_v0 = vld [vmem:[%s15528_s26 + $0x60] sm:$0xff]  ;;  %v10105_v2 = vld [vmem:[%s15528_s26 + $0x68] sm:$0xff] }
 0x7f6   :  { %v10106_v3 = vld [vmem:[%s15528_s26 + $0x70] sm:$0xff] }
 0x7f7   :  { %v3423_v7 = vrot.slane %v3422_v4, 4  ;;  %v3441_v9 = vadd.f32 %v3440_v6, %v3439_v5  ;;  %v10118_v5 = vld [vmem:[%s15528_s26 + $0x80] sm:$0xff]  ;;  %v10119_v6 = vld [vmem:[%s15528_s26 + $0x88] sm:$0xff] }
 0x7f9   :  { %v3424_v10 = vadd.f32 %v3423_v7, %v3422_v4  ;;  %v3442_v11 = vrot.slane %v3441_v9, 4  ;;  %v10107_v4 = vld [vmem:[%s15528_s26 + $0x78] sm:$0xff]  ;;  %v10120_v7 = vld [vmem:[%s15528_s26 + $0x90] sm:$0xff] }
 0x7fb   :  { %v3425_v12 = vrot.slane %v3424_v10, 2  ;;  %v3443_v13 = vadd.f32 %v3442_v11, %v3441_v9  ;;  %v10121_v9 = vld [vmem:[%s15528_s26 + $0x98] sm:$0xff]  ;;  %v10133_v11 = vld [vmem:[%s15528_s26 + $0xa8] sm:$0xff] }
 0x7fd   :  { %v3426_v14 = vadd.f32 %v3425_v12, %v3424_v10  ;;  %v3444_v16 = vrot.slane %v3443_v13, 2  ;;  %v10132_v10 = vld [vmem:[%s15528_s26 + $0xa0] sm:$0xff]  ;;  %v10134_v12 = vld [vmem:[%s15528_s26 + $0xb0] sm:$0xff] }
 0x7ff   :  { %v3427_v17 = vrot.slane %v3426_v14, 1  ;;  %v3445_v18 = vadd.f32 %v3444_v16, %v3443_v13  ;;  %v10135_v13 = vld [vmem:[%s15528_s26 + $0xb8] sm:$0xff]  ;;  %v10147_v16 = vld [vmem:[%s15528_s26 + $0xc8] sm:$0xff] }
 0x801   :  { %v3428_v19 = vadd.f32 %v3427_v17, %v3426_v14  ;;  %v3446_v20 = vrot.slane %v3445_v18, 1  ;;  %v10146_v14 = vld [vmem:[%s15528_s26 + $0xc0] sm:$0xff]  ;;  %v10148_v17 = vld [vmem:[%s15528_s26 + $0xd0] sm:$0xff] }
 0x803   :  { %v3430_v22 = vmul.f32 0.03125, %v3428_v19  ;;  %v3447_v23 = vadd.f32 %v3446_v20, %v3445_v18  ;;  %v10149_v18 = vld [vmem:[%s15528_s26 + $0xd8] sm:$0xff]  ;;  %v10160_v19 = vld [vmem:[%s15528_s26 + $0xe0] sm:$0xff]  ;;  %v10161_v20 = vld [vmem:[%s15528_s26 + $0xe8] sm:$0xff] }
 0x805   :  { %v3448_v24 = vmul.f32 0.03125, %v3447_v23  ;;  %v3449_v25 = vmul.f32 %v3430_v22, %v3430_v22  ;;  %v3451_v26 = vsub.f32 %v3392_v50, %v3430_v22  ;;  %v3452_v27 = vsub.f32 %v11971_v47, %v3430_v22  ;;  %v10163_v23 = vld [vmem:[%s15528_s26 + $0xf8] sm:$0xff] }
 0x806   :  { %v3453_v28 = vsub.f32 %v3402_v60, %v3430_v22  ;;  %v3454_v29 = vsub.f32 %v11974_v57, %v3430_v22  ;;  %v10074_v57 = vld [vmem:[%s15528_s26 + $0x30] sm:$0xff]  ;;  %v10090_v60 = vld [vmem:[%s15528_s26 + $0x40] sm:$0xff] }
 0x807   :  { %v3450_v30 = vsub.f32 %v3448_v24, %v3449_v25  ;;  %v10162_v22 = vld [vmem:[%s15528_s26 + $0xf0] sm:$0xff]  ;;  %v10174_v24 = vld [vmem:[%s15528_s26 + $0x100] sm:$0xff]  ;;  %v10175_v25 = vld [vmem:[%s15528_s26 + $0x108] sm:$0xff] }
 0x809   :  { %v3455_v31 = vadd.f32 1e-05, %v3450_v30 }
 0x80b   :  { %13745 = vrsqrt.f32 %v3455_v31  ;;  %v3597_v31 = vld [vmem:[%s15498_s7] sm:$0xff] }
 0x815   :  { %v13746_v32 = vpop.eup %13745 }
 0x816   :  { %v3457_v34 = vmul.f32 %v13746_v32, %v3451_v26  ;;  %v3458_v35 = vmul.f32 %v13746_v32, %v3452_v27  ;;  %v3459_v37 = vmul.f32 %v13746_v32, %v3453_v28  ;;  %v3460_v44 = vmul.f32 %v13746_v32, %v3454_v29  ;;  %v10176_v26 = vld [vmem:[%s15528_s26 + $0x110] sm:$0xff]  ;;  %v10177_v27 = vld [vmem:[%s15528_s26 + $0x118] sm:$0xff]  ;;  %v3598_v32 = vld [vmem:[%s15498_s7 + $0x8] sm:$0xff] }
 0x817   :  { %v10080_v28 = vld [vmem:[%s15498_s7 + $0x10] sm:$0xff]  ;;  %v10081_v29 = vld [vmem:[%s15498_s7 + $0x18] sm:$0xff] }
 0x818   :  { %v3468_v58 = vmul.f32 %v10066_v33, %v3457_v34  ;;  %v3469_v1 = vmul.f32 %v10066_v33, %v3458_v35  ;;  %v3470_v8 = vmul.f32 %v10066_v33, %v3459_v37  ;;  %v3471_v15 = vmul.f32 %v10066_v33, %v3460_v44 }
 0x819   :  { %v13244_v30 = vpack.c.bf16 %v10081_v29, %v10080_v28  ;;  %v13248_v33 = vpack.c.bf16 %v3598_v32, %v3597_v31 }
 0x81a   :  { %v3479_v21 = vadd.f32 %v10067_v51, %v3468_v58  ;;  %v3480_v36 = vadd.f32 %v10067_v51, %v3469_v1  ;;  %v3481_v38 = vadd.f32 %v10067_v51, %v3470_v8  ;;  %v3482_v39 = vadd.f32 %v10067_v51, %v3471_v15  ;;  %v10098_v51 = vld [vmem:[%s15498_s7 + $0x20] sm:$0xff]  ;;  %v10099_v58 = vld [vmem:[%s15498_s7 + $0x28] sm:$0xff] }
 0x81b   :  { %13245 = vmatprep.subr.bf16.mxu0 %v13244_v30  ;;  %v13260_v15 = vpack.c.bf16 %v10099_v58, %v10098_v51 }
 0x81c   :  { %vm3483_vm4 = vcmp.gt.f32.partialorder %v3479_v21, 0.0  ;;  %vm3484_vm5 = vcmp.gt.f32.partialorder %v3480_v36, 0.0  ;;  %vm3485_vm6 = vcmp.gt.f32.partialorder %v3481_v38, 0.0  ;;  %vm3486_vm7 = vcmp.gt.f32.partialorder %v3482_v39, 0.0  ;;  %13247 = vmatpush3.bf16.msra.mxu0 %v13244_v30 }
 0x81d   :  { %v3487_v40 = vmul.f32 0.2, %v3479_v21  ;;  %v3488_v41 = vmul.f32 0.2, %v3480_v36  ;;  %v3489_v42 = vmul.f32 0.2, %v3481_v38  ;;  %13249 = vmatprep.subr.bf16.mxu0 %v13248_v33 }
 0x81e   :  { %v3490_v43 = vmul.f32 0.2, %v3482_v39 }
 0x81f   :  { %v3491_v45 = vsel %vm3483_vm4, %v3479_v21, %v3487_v40  ;;  %v3492_v46 = vsel %vm3484_vm5, %v3480_v36, %v3488_v41  ;;  %v3493_v47 = vsel %vm3485_vm6, %v3481_v38, %v3489_v42  ;;  %v10112_v38 = vld [vmem:[%s15498_s7 + $0x30] sm:$0xff] }
 0x820   :  { %v3494_v48 = vsel %vm3486_vm7, %v3482_v39, %v3490_v43  ;;  %v14571_v49 = vpack.c.bf16 %v3492_v46, %v3491_v45  ;;  %v10113_v39 = vld [vmem:[%s15498_s7 + $0x38] sm:$0xff]  ;;  %v10126_v46 = vld [vmem:[%s15498_s7 + $0x40] sm:$0xff] }
 0x821   :  { %v14573_v50 = vpack.c.bf16 %v3494_v48, %v3493_v47  ;;  %v13272_v42 = vpack.c.bf16 %v10113_v39, %v10112_v38  ;;  %v10127_v47 = vld [vmem:[%s15498_s7 + $0x48] sm:$0xff] }
 0x822   :  { %13229 = vmatprep.subr.bf16.mxu1 %v14571_v49 }
 0x823   :  { %13231 = vmatpush3.bf16.msra.mxu1 %v14571_v49 }
 0x824   :  { %13233 = vmatprep.subr.bf16.mxu1 %v14573_v50 }
 0x827   :  { %13235 = vmatpush3.bf16.msra.mxu1 %v14573_v50 }
 0x828   :  { %13237 = vmatprep.subr.bf16.mxu1 %v14571_v49 }
 0x82a   :  { %11984 = vmatmul.mubr.msk.f32.vlgmr.msra.gmra.mrb[28].mxu1 %vm3499_vm2, %v3496_v52 }
 0x82b   :  { %13239 = vmatpush3.bf16.msra.mxu1 %v14571_v49  ;;  %11986 = vmatprep.mubr.msk.f32.mxu1 %vm3499_vm2, %v3497_v53 }
 0x82c   :  { %13241 = vmatprep.subr.bf16.mxu1 %v14573_v50 }
 0x82e   :  { %11987 = vmatmul.mubr.msk.f32.gmra.mrb[30].mxu1 %vm3499_vm2, %v3498_v54  ;;  %v10140_v54 = vld [vmem:[%s15498_s7 + $0x50] sm:$0xff] }
 0x82f   :  { %13243 = vmatpush3.bf16.msra.mxu1 %v14573_v50  ;;  %11997 = vmatprep.mubr.msk.f32.mxu1 %vm3499_vm2, %v10072_v55  ;;  %v10141_v55 = vld [vmem:[%s15498_s7 + $0x58] sm:$0xff] }
 0x830   :  { %13253 = vmatprep.subr.bf16.mxu1 %v14571_v49 }
 0x832   :  { %11998 = vmatmul.mubr.msk.f32.vlgmr.msra.gmra.mrb[32].mxu1 %vm3499_vm2, %v10073_v56 }
 0x833   :  { %13255 = vmatpush3.bf16.msra.mxu1 %v14571_v49  ;;  %12000 = vmatprep.mubr.msk.f32.mxu1 %vm3499_vm2, %v10074_v57 }
 0x834   :  { %13257 = vmatprep.subr.bf16.mxu1 %v14573_v50 }
 0x836   :  { %12001 = vmatmul.mubr.msk.f32.gmra.mrb[34].mxu1 %vm3499_vm2, %v10075_v59  ;;  %v13296_v59 = vpack.c.bf16 %v10141_v55, %v10140_v54 }
 0x837   :  { %13259 = vmatpush3.bf16.msra.mxu1 %v14573_v50  ;;  %12031 = vmatprep.mubr.msk.f32.mxu1 %vm3499_vm2, %v10090_v60 }
 0x838   :  { %13265 = vmatprep.subr.bf16.mxu1 %v14571_v49 }
 0x83a   :  { %12032 = vmatmul.mubr.msk.f32.vlgmr.msra.gmra.mrb[36].mxu1 %vm3499_vm2, %v10091_v61 }
 0x83b   :  { %13267 = vmatpush3.bf16.msra.mxu1 %v14571_v49  ;;  %12034 = vmatprep.mubr.msk.f32.mxu1 %vm3499_vm2, %v10092_v62  ;;  %v10154_v62 = vld [vmem:[%s15498_s7 + $0x60] sm:$0xff] }
 0x83c   :  { %13269 = vmatprep.subr.bf16.mxu1 %v14573_v50 }
 0x83e   :  { %12035 = vmatmul.mubr.msk.f32.gmra.mrb[38].mxu1 %vm3499_vm2, %v10093_v63  ;;  %v10155_v63 = vld [vmem:[%s15498_s7 + $0x68] sm:$0xff] }
 0x83f   :  { %13271 = vmatpush3.bf16.msra.mxu1 %v14573_v50  ;;  %12055 = vmatprep.mubr.msk.f32.mxu1 %vm3499_vm2, %v10104_v0 }
 0x840   :  { %13277 = vmatprep.subr.bf16.mxu1 %v14571_v49 }
 0x842   :  { %12056 = vmatmul.mubr.msk.f32.vlgmr.msra.gmra.mrb[40].mxu1 %vm3499_vm2, %v10105_v2 }
 0x843   :  { %13279 = vmatpush3.bf16.msra.mxu1 %v14571_v49  ;;  %12058 = vmatprep.mubr.msk.f32.mxu1 %vm3499_vm2, %v10106_v3  ;;  %v13308_v3 = vpack.c.bf16 %v10155_v63, %v10154_v62 }
 0x844   :  { %13281 = vmatprep.subr.bf16.mxu1 %v14573_v50 }
 0x846   :  { %12059 = vmatmul.mubr.msk.f32.gmra.mrb[42].mxu1 %vm3499_vm2, %v10107_v4 }
 0x847   :  { %13283 = vmatpush3.bf16.msra.mxu1 %v14573_v50  ;;  %12079 = vmatprep.mubr.msk.f32.mxu1 %vm3499_vm2, %v10118_v5 }
 0x848   :  { %13289 = vmatprep.subr.bf16.mxu1 %v14571_v49 }
 0x84a   :  { %12080 = vmatmul.mubr.msk.f32.vlgmr.msra.gmra.mrb[44].mxu1 %vm3499_vm2, %v10119_v6  ;;  %v10168_v6 = vld [vmem:[%s15498_s7 + $0x70] sm:$0xff] }
 0x84b   :  { %13291 = vmatpush3.bf16.msra.mxu1 %v14571_v49  ;;  %12082 = vmatprep.mubr.msk.f32.mxu1 %vm3499_vm2, %v10120_v7  ;;  %v10169_v7 = vld [vmem:[%s15498_s7 + $0x78] sm:$0xff] }
 0x84c   :  { %13293 = vmatprep.subr.bf16.mxu1 %v14573_v50 }
 0x84e   :  { %12083 = vmatmul.mubr.msk.f32.gmra.mrb[46].mxu1 %vm3499_vm2, %v10121_v9 }
 0x84f   :  { %13295 = vmatpush3.bf16.msra.mxu1 %v14573_v50  ;;  %12103 = vmatprep.mubr.msk.f32.mxu1 %vm3499_vm2, %v10132_v10 }
 0x850   :  { %13301 = vmatprep.subr.bf16.mxu1 %v14571_v49 }
 0x852   :  { %12104 = vmatmul.mubr.msk.f32.vlgmr.msra.gmra.mrb[48].mxu1 %vm3499_vm2, %v10133_v11  ;;  %v13320_v11 = vpack.c.bf16 %v10169_v7, %v10168_v6 }
 0x853   :  { %13303 = vmatpush3.bf16.msra.mxu1 %v14571_v49  ;;  %12106 = vmatprep.mubr.msk.f32.mxu1 %vm3499_vm2, %v10134_v12 }
 0x854   :  { %13305 = vmatprep.subr.bf16.mxu1 %v14573_v50 }
 0x856   :  { %12107 = vmatmul.mubr.msk.f32.gmra.mrb[50].mxu1 %vm3499_vm2, %v10135_v13 }
 0x857   :  { %13307 = vmatpush3.bf16.msra.mxu1 %v14573_v50  ;;  %12127 = vmatprep.mubr.msk.f32.mxu1 %vm3499_vm2, %v10146_v14  ;;  %v10182_v14 = vld [vmem:[%s15498_s7 + $0x80] sm:$0xff] }
 0x858   :  { %13313 = vmatprep.subr.bf16.mxu1 %v14571_v49 }
 0x85a   :  { %12128 = vmatmul.mubr.msk.f32.vlgmr.msra.gmra.mrb[52].mxu1 %vm3499_vm2, %v10147_v16  ;;  %v10183_v16 = vld [vmem:[%s15498_s7 + $0x88] sm:$0xff] }
 0x85b   :  { %13315 = vmatpush3.bf16.msra.mxu1 %v14571_v49  ;;  %12130 = vmatprep.mubr.msk.f32.mxu1 %vm3499_vm2, %v10148_v17 }
 0x85c   :  { %13317 = vmatprep.subr.bf16.mxu1 %v14573_v50 }
 0x85e   :  { %12131 = vmatmul.mubr.msk.f32.gmra.mrb[54].mxu1 %vm3499_vm2, %v10149_v18 }
 0x85f   :  { %13319 = vmatpush3.bf16.msra.mxu1 %v14573_v50  ;;  %12151 = vmatprep.mubr.msk.f32.mxu1 %vm3499_vm2, %v10160_v19  ;;  %v13332_v19 = vpack.c.bf16 %v10183_v16, %v10182_v14 }
 0x860   :  { %13325 = vmatprep.subr.bf16.mxu1 %v14571_v49 }
 0x862   :  { %12152 = vmatmul.mubr.msk.f32.vlgmr.msra.gmra.mrb[56].mxu1 %vm3499_vm2, %v10161_v20 }
 0x863   :  { %13327 = vmatpush3.bf16.msra.mxu1 %v14571_v49  ;;  %12154 = vmatprep.mubr.msk.f32.mxu1 %vm3499_vm2, %v10162_v22 }
 0x864   :  { %13329 = vmatprep.subr.bf16.mxu1 %v14573_v50 }
 0x866   :  { %12155 = vmatmul.mubr.msk.f32.gmra.mrb[58].mxu1 %vm3499_vm2, %v10163_v23 }
 0x867   :  { %13331 = vmatpush3.bf16.msra.mxu1 %v14573_v50  ;;  %12175 = vmatprep.mubr.msk.f32.mxu1 %vm3499_vm2, %v10174_v24  ;;  %v13284_v50 = vpack.c.bf16 %v10127_v47, %v10126_v46 }
 0x86a   :  { %12176 = vmatmul.mubr.msk.f32.vlgmr.msra.gmra.mrb[60].mxu1 %vm3499_vm2, %v10175_v25 }
 0x86b   :  { %12178 = vmatprep.mubr.msk.f32.mxu1 %vm3499_vm2, %v10176_v26 }
 0x86e   :  { %12179 = vmatmul.mubr.msk.f32.gmra.mrb[62].mxu1 %vm3499_vm2, %v10177_v27  ;;  %v5418_v27 = vld [vmem:[%s15499_s10] sm:$0xff] }
 0x86f   :  { %12199 = vmatprep.mubr.msk.f32.mxu1 %vm3499_vm2, %v5418_v27 }
 0x8fd   :  { %v11985_v34 = vpop.f32.mrb[28].mxu1 }
 0x8fe   :  { %v3578_v35 = vpop.f32.mrb[29].mxu1 }
 0x901   :  { %v11988_v37 = vpop.f32.mrb[30].mxu1 }
 0x902   :  { %v3588_v44 = vpop.f32.mrb[31].mxu1 }
 0x905   :  { %v11999_v1 = vpop.f32.mrb[32].mxu1 }
 0x906   :  { %v3682_v8 = vpop.f32.mrb[33].mxu1 }
 0x907   :  { %12007 = vmatprep.mubr.msk.f32.mxu0 %vm3415_vm3, %v3682_v8 }
 0x908   :  { %12008 = vmatmul.mubr.msk.f32.vlgmr.msra.gmra.mrb[56].mxu0 %vm3415_vm3, %v11999_v1 }
 0x909   :  { %v12002_v21 = vpop.f32.mrb[34].mxu1  ;;  %13251 = vmatpush3.bf16.msra.mxu0 %v13248_v33 }
 0x90a   :  { %v3692_v36 = vpop.f32.mrb[35].mxu1  ;;  %13261 = vmatprep.subr.bf16.mxu0 %v13260_v15 }
 0x90b   :  { %12010 = vmatprep.mubr.msk.f32.mxu0 %vm3415_vm3, %v3692_v36 }
 0x90c   :  { %12011 = vmatmul.mubr.msk.f32.gmra.mrb[58].mxu0 %vm3415_vm3, %v12002_v21 }
 0x90d   :  { %12017 = vmatprep.mubr.msk.f32.mxu0 %vm3415_vm3, %v3578_v35  ;;  %v12033_v40 = vpop.f32.mrb[36].mxu1 }
 0x90e   :  { %v3981_v41 = vpop.f32.mrb[37].mxu1 }
 0x910   :  { %12018 = vmatmul.mubr.msk.f32.vlgmr.msra.gmra.mrb[56].mxu0 %vm3415_vm3, %v11985_v34 }
 0x911   :  { %12020 = vmatprep.mubr.msk.f32.mxu0 %vm3415_vm3, %v3588_v44  ;;  %13263 = vmatpush3.bf16.msra.mxu0 %v13260_v15  ;;  %v12036_v43 = vpop.f32.mrb[38].mxu1 }
 0x912   :  { %v3991_v45 = vpop.f32.mrb[39].mxu1  ;;  %13273 = vmatprep.subr.bf16.mxu0 %v13272_v42 }
 0x914   :  { %12021 = vmatmul.mubr.msk.f32.gmra.mrb[58].mxu0 %vm3415_vm3, %v11988_v37 }
 0x915   :  { %12041 = vmatprep.mubr.msk.f32.mxu0 %vm3415_vm3, %v3981_v41  ;;  %v12057_v48 = vpop.f32.mrb[40].mxu1 }
 0x916   :  { %v4187_v49 = vpop.f32.mrb[41].mxu1 }
 0x918   :  { %12042 = vmatmul.mubr.msk.f32.vlgmr.msra.gmra.mrb[56].mxu0 %vm3415_vm3, %v12033_v40 }
 0x919   :  { %12044 = vmatprep.mubr.msk.f32.mxu0 %vm3415_vm3, %v3991_v45  ;;  %13275 = vmatpush3.bf16.msra.mxu0 %v13272_v42  ;;  %v12060_v52 = vpop.f32.mrb[42].mxu1 }
 0x91a   :  { %v4197_v53 = vpop.f32.mrb[43].mxu1  ;;  %13285 = vmatprep.subr.bf16.mxu0 %v13284_v50 }
 0x91c   :  { %12045 = vmatmul.mubr.msk.f32.gmra.mrb[58].mxu0 %vm3415_vm3, %v12036_v43 }
 0x91d   :  { %12065 = vmatprep.mubr.msk.f32.mxu0 %vm3415_vm3, %v4187_v49  ;;  %v12081_v56 = vpop.f32.mrb[44].mxu1 }
 0x91e   :  { %v4393_v57 = vpop.f32.mrb[45].mxu1 }
 0x920   :  { %12066 = vmatmul.mubr.msk.f32.vlgmr.msra.gmra.mrb[56].mxu0 %vm3415_vm3, %v12057_v48 }
 0x921   :  { %12068 = vmatprep.mubr.msk.f32.mxu0 %vm3415_vm3, %v4197_v53  ;;  %13287 = vmatpush3.bf16.msra.mxu0 %v13284_v50  ;;  %v12084_v60 = vpop.f32.mrb[46].mxu1 }
 0x922   :  { %v4403_v61 = vpop.f32.mrb[47].mxu1  ;;  %13297 = vmatprep.subr.bf16.mxu0 %v13296_v59 }
 0x924   :  { %12069 = vmatmul.mubr.msk.f32.gmra.mrb[58].mxu0 %vm3415_vm3, %v12060_v52 }
 0x925   :  { %12089 = vmatprep.mubr.msk.f32.mxu0 %vm3415_vm3, %v4393_v57  ;;  %v12105_v0 = vpop.f32.mrb[48].mxu1 }
 0x926   :  { %v4599_v2 = vpop.f32.mrb[49].mxu1 }
 0x928   :  { %12090 = vmatmul.mubr.msk.f32.vlgmr.msra.gmra.mrb[56].mxu0 %vm3415_vm3, %v12081_v56 }
 0x929   :  { %12092 = vmatprep.mubr.msk.f32.mxu0 %vm3415_vm3, %v4403_v61  ;;  %13299 = vmatpush3.bf16.msra.mxu0 %v13296_v59  ;;  %v12108_v4 = vpop.f32.mrb[50].mxu1 }
 0x92a   :  { %v4609_v5 = vpop.f32.mrb[51].mxu1  ;;  %13309 = vmatprep.subr.bf16.mxu0 %v13308_v3 }
 0x92c   :  { %12093 = vmatmul.mubr.msk.f32.gmra.mrb[58].mxu0 %vm3415_vm3, %v12084_v60 }
 0x92d   :  { %12113 = vmatprep.mubr.msk.f32.mxu0 %vm3415_vm3, %v4599_v2  ;;  %v12129_v9 = vpop.f32.mrb[52].mxu1 }
 0x92e   :  { %v4805_v10 = vpop.f32.mrb[53].mxu1 }
 0x930   :  { %12114 = vmatmul.mubr.msk.f32.vlgmr.msra.gmra.mrb[56].mxu0 %vm3415_vm3, %v12105_v0 }
 0x931   :  { %12116 = vmatprep.mubr.msk.f32.mxu0 %vm3415_vm3, %v4609_v5  ;;  %13311 = vmatpush3.bf16.msra.mxu0 %v13308_v3  ;;  %v12132_v12 = vpop.f32.mrb[54].mxu1  ;;  %v10188_v5 = vld [vmem:[%s15500_s8] ss:$0 sm:$0xff] }
 0x932   :  { %v4815_v13 = vpop.f32.mrb[55].mxu1  ;;  %13321 = vmatprep.subr.bf16.mxu0 %v13320_v11 }
 0x934   :  { %12117 = vmatmul.mubr.msk.f32.gmra.mrb[58].mxu0 %vm3415_vm3, %v12108_v4 }
 0x935   :  { %12137 = vmatprep.mubr.msk.f32.mxu0 %vm3415_vm3, %v4805_v10  ;;  %v12153_v17 = vpop.f32.mrb[56].mxu1 }
 0x936   :  { %v5011_v18 = vpop.f32.mrb[57].mxu1 }
 0x938   :  { %12138 = vmatmul.mubr.msk.f32.vlgmr.msra.gmra.mrb[56].mxu0 %vm3415_vm3, %v12129_v9 }
 0x939   :  { %12140 = vmatprep.mubr.msk.f32.mxu0 %vm3415_vm3, %v4815_v13  ;;  %13323 = vmatpush3.bf16.msra.mxu0 %v13320_v11  ;;  %v12156_v20 = vpop.f32.mrb[58].mxu1  ;;  %v10189_v11 = vld [vmem:[%s15501_s9] ss:$0 sm:$0xff] }
 0x93a   :  { %v5021_v22 = vpop.f32.mrb[59].mxu1  ;;  %13333 = vmatprep.subr.bf16.mxu0 %v13332_v19 }
 0x93c   :  { %12141 = vmatmul.mubr.msk.f32.gmra.mrb[58].mxu0 %vm3415_vm3, %v12132_v12 }
 0x93d   :  { %12161 = vmatprep.mubr.msk.f32.mxu0 %vm3415_vm3, %v5011_v18  ;;  %v12177_v23 = vpop.f32.mrb[60].mxu1 }
 0x93e   :  { %v5217_v24 = vpop.f32.mrb[61].mxu1 }
 0x940   :  { %12162 = vmatmul.mubr.msk.f32.vlgmr.msra.gmra.mrb[56].mxu0 %vm3415_vm3, %v12153_v17 }
 0x941   :  { %12164 = vmatprep.mubr.msk.f32.mxu0 %vm3415_vm3, %v5021_v22  ;;  %13335 = vmatpush3.bf16.msra.mxu0 %v13332_v19  ;;  %v12180_v25 = vpop.f32.mrb[62].mxu1 }
 0x942   :  { %v5227_v26 = vpop.f32.mrb[63].mxu1 }
 0x944   :  { %12165 = vmatmul.mubr.msk.f32.gmra.mrb[58].mxu0 %vm3415_vm3, %v12156_v20 }
 0x945   :  { %12185 = vmatprep.mubr.msk.f32.mxu0 %vm3415_vm3, %v5217_v24 }
 0x948   :  { %12186 = vmatmul.mubr.msk.f32.vlgmr.msra.gmra.mrb[56].mxu0 %vm3415_vm3, %v12177_v23 }
 0x949   :  { %12188 = vmatprep.mubr.msk.f32.mxu0 %vm3415_vm3, %v5227_v26 }
 0x94c   :  { %12189 = vmatmul.mubr.msk.f32.gmra.mrb[58].mxu0 %vm3415_vm3, %v12180_v25 }
 0xa1b   :  { %v12187_v28 = vpop.f32.mrb[56].mxu0 }
 0xa1c   :  { %v5341_v29 = vsel %vm3415_vm3, %v12187_v28, 0.0  ;;  %v5355_v30 = vmul.f32 %v12187_v28, %v12187_v28  ;;  %v5317_v31 = vpop.f32.mrb[57].mxu0 }
 0xa1d   :  { %v5340_v32 = vsel %vm3415_vm3, %v5317_v31, 0.0  ;;  %v5354_v33 = vmul.f32 %v5317_v31, %v5317_v31 }
 0xa1e   :  { %v5359_v34 = vsel %vm3415_vm3, %v5355_v30, 0.0  ;;  %v5342_v35 = vadd.f32 %v5341_v29, %v5340_v32  ;;  %v5419_v32 = vld [vmem:[%s15499_s10 + $0x8] sm:$0xff] }
 0xa1f   :  { %v5358_v37 = vsel %vm3415_vm3, %v5354_v33, 0.0  ;;  %v12190_v44 = vpop.f32.mrb[58].mxu0  ;;  %v5420_v33 = vld [vmem:[%s15499_s10 + $0x10] sm:$0xff] }
 0xa20   :  { %v5360_v51 = vadd.f32 %v5359_v34, %v5358_v37  ;;  %v5327_v58 = vpop.f32.mrb[59].mxu0  ;;  %v5357_v1 = vmul.f32 %v12190_v44, %v12190_v44  ;;  %v5345_v36 = vsel %vm3415_vm3, %v12190_v44, 0.0  ;;  %v5421_v34 = vld [vmem:[%s15499_s10 + $0x18] sm:$0xff]  ;;  %v10195_v37 = vld [vmem:[%s15499_s10 + $0x28] sm:$0xff] }
 0xa21   :  { %v5343_v8 = vsel %vm3415_vm3, %v5327_v58, 0.0  ;;  %v5356_v15 = vmul.f32 %v5327_v58, %v5327_v58 }
 0xa22   :  { %v5344_v21 = vadd.f32 %v5343_v8, %v5342_v35  ;;  %v5363_v41 = vsel %vm3415_vm3, %v5357_v1, 0.0  ;;  %v10194_v35 = vld [vmem:[%s15499_s10 + $0x20] sm:$0xff]  ;;  %v10213_v1 = vld [vmem:[%s15499_s10 + $0x48] sm:$0xff]  ;;  %v10214_v8 = vld [vmem:[%s15499_s10 + $0x50] sm:$0xff] }
 0xa23   :  { %v5361_v38 = vsel %vm3415_vm3, %v5356_v15, 0.0  ;;  %v10215_v15 = vld [vmem:[%s15499_s10 + $0x58] sm:$0xff] }
 0xa24   :  { %v5346_v39 = vadd.f32 %v5345_v36, %v5344_v21  ;;  %v5362_v40 = vadd.f32 %v5361_v38, %v5360_v51  ;;  %v10197_v51 = vld [vmem:[%s15499_s10 + $0x38] sm:$0xff]  ;;  %v10226_v21 = vld [vmem:[%s15499_s10 + $0x60] sm:$0xff]  ;;  %v10227_v36 = vld [vmem:[%s15499_s10 + $0x68] sm:$0xff] }
 0xa25   :  { %v10228_v38 = vld [vmem:[%s15499_s10 + $0x70] sm:$0xff] }
 0xa26   :  { %v5347_v42 = vrot.slane %v5346_v39, 4  ;;  %v5364_v43 = vadd.f32 %v5363_v41, %v5362_v40  ;;  %v10240_v40 = vld [vmem:[%s15499_s10 + $0x80] sm:$0xff]  ;;  %v10241_v41 = vld [vmem:[%s15499_s10 + $0x88] sm:$0xff] }
 0xa28   :  { %v5348_v45 = vadd.f32 %v5347_v42, %v5346_v39  ;;  %v5365_v46 = vrot.slane %v5364_v43, 4  ;;  %v10229_v39 = vld [vmem:[%s15499_s10 + $0x78] sm:$0xff]  ;;  %v10242_v42 = vld [vmem:[%s15499_s10 + $0x90] sm:$0xff] }
 0xa2a   :  { %v5349_v47 = vrot.slane %v5348_v45, 2  ;;  %v5366_v48 = vadd.f32 %v5365_v46, %v5364_v43  ;;  %v10243_v43 = vld [vmem:[%s15499_s10 + $0x98] sm:$0xff]  ;;  %v10255_v46 = vld [vmem:[%s15499_s10 + $0xa8] sm:$0xff] }
 0xa2c   :  { %v5350_v49 = vadd.f32 %v5349_v47, %v5348_v45  ;;  %v5367_v50 = vrot.slane %v5366_v48, 2  ;;  %v10254_v45 = vld [vmem:[%s15499_s10 + $0xa0] sm:$0xff]  ;;  %v10256_v47 = vld [vmem:[%s15499_s10 + $0xb0] sm:$0xff] }
 0xa2e   :  { %v5351_v52 = vrot.slane %v5350_v49, 1  ;;  %v5368_v53 = vadd.f32 %v5367_v50, %v5366_v48  ;;  %v10257_v48 = vld [vmem:[%s15499_s10 + $0xb8] sm:$0xff]  ;;  %v10269_v50 = vld [vmem:[%s15499_s10 + $0xc8] sm:$0xff] }
 0xa30   :  { %v5352_v54 = vadd.f32 %v5351_v52, %v5350_v49  ;;  %v5369_v55 = vrot.slane %v5368_v53, 1  ;;  %v10268_v49 = vld [vmem:[%s15499_s10 + $0xc0] sm:$0xff]  ;;  %v10270_v52 = vld [vmem:[%s15499_s10 + $0xd0] sm:$0xff] }
 0xa32   :  { %v5353_v56 = vmul.f32 0.03125, %v5352_v54  ;;  %v5370_v57 = vadd.f32 %v5369_v55, %v5368_v53  ;;  %v10271_v53 = vld [vmem:[%s15499_s10 + $0xd8] sm:$0xff]  ;;  %v10282_v54 = vld [vmem:[%s15499_s10 + $0xe0] sm:$0xff]  ;;  %v10283_v55 = vld [vmem:[%s15499_s10 + $0xe8] sm:$0xff] }
 0xa34   :  { %v5371_v59 = vmul.f32 0.03125, %v5370_v57  ;;  %v5372_v60 = vmul.f32 %v5353_v56, %v5353_v56  ;;  %v5374_v61 = vsub.f32 %v5317_v31, %v5353_v56  ;;  %v5375_v62 = vsub.f32 %v12187_v28, %v5353_v56  ;;  %v10285_v57 = vld [vmem:[%s15499_s10 + $0xf8] sm:$0xff] }
 0xa35   :  { %v5376_v63 = vsub.f32 %v5327_v58, %v5353_v56  ;;  %v5377_v0 = vsub.f32 %v12190_v44, %v5353_v56  ;;  %v10196_v44 = vld [vmem:[%s15499_s10 + $0x30] sm:$0xff]  ;;  %v10212_v58 = vld [vmem:[%s15499_s10 + $0x40] sm:$0xff] }
 0xa36   :  { %v5373_v2 = vsub.f32 %v5371_v59, %v5372_v60  ;;  %v10284_v56 = vld [vmem:[%s15499_s10 + $0xf0] sm:$0xff]  ;;  %v10296_v59 = vld [vmem:[%s15499_s10 + $0x100] sm:$0xff]  ;;  %v10297_v60 = vld [vmem:[%s15499_s10 + $0x108] sm:$0xff] }
 0xa38   :  { %v5378_v3 = vadd.f32 1e-05, %v5373_v2 }
 0xa3a   :  { %13747 = vrsqrt.f32 %v5378_v3  ;;  %v5519_v3 = vld [vmem:[%s15502_s11] sm:$0xff] }
 0xa44   :  { %v13748_v4 = vpop.eup %13747 }
 0xa45   :  { %v5380_v6 = vmul.f32 %v13748_v4, %v5374_v61  ;;  %v5381_v7 = vmul.f32 %v13748_v4, %v5375_v62  ;;  %v5382_v9 = vmul.f32 %v13748_v4, %v5376_v63  ;;  %v5383_v10 = vmul.f32 %v13748_v4, %v5377_v0  ;;  %v10298_v61 = vld [vmem:[%s15499_s10 + $0x110] sm:$0xff]  ;;  %v10299_v62 = vld [vmem:[%s15499_s10 + $0x118] sm:$0xff]  ;;  %v5520_v4 = vld [vmem:[%s15502_s11 + $0x8] sm:$0xff] }
 0xa46   :  { %v10202_v63 = vld [vmem:[%s15502_s11 + $0x10] sm:$0xff]  ;;  %v10203_v0 = vld [vmem:[%s15502_s11 + $0x18] sm:$0xff] }
 0xa47   :  { %v5391_v12 = vmul.f32 %v10188_v5, %v5380_v6  ;;  %v5392_v13 = vmul.f32 %v10188_v5, %v5381_v7  ;;  %v5393_v14 = vmul.f32 %v10188_v5, %v5382_v9  ;;  %v5394_v16 = vmul.f32 %v10188_v5, %v5383_v10 }
 0xa48   :  { %v13352_v2 = vpack.c.bf16 %v10203_v0, %v10202_v63  ;;  %v13356_v5 = vpack.c.bf16 %v5520_v4, %v5519_v3  ;;  %v13759_v63 = vmov 0.0  }
 0xa49   :  { %v5402_v17 = vadd.f32 %v10189_v11, %v5391_v12  ;;  %v5403_v18 = vadd.f32 %v10189_v11, %v5392_v13  ;;  %v5404_v19 = vadd.f32 %v10189_v11, %v5393_v14  ;;  %v5405_v20 = vadd.f32 %v10189_v11, %v5394_v16  ;;  %v10220_v11 = vld [vmem:[%s15502_s11 + $0x20] sm:$0xff]  ;;  %v10221_v12 = vld [vmem:[%s15502_s11 + $0x28] sm:$0xff] }
 0xa4a   :  { %13353 = vmatprep.subr.bf16.mxu0 %v13352_v2  ;;  %v13368_v16 = vpack.c.bf16 %v10221_v12, %v10220_v11 }
 0xa4b   :  { %vm5406_vm8 = vcmp.gt.f32.partialorder %v5402_v17, 0.0  ;;  %vm5407_vm9 = vcmp.gt.f32.partialorder %v5403_v18, 0.0  ;;  %vm5408_vm10 = vcmp.gt.f32.partialorder %v5404_v19, 0.0  ;;  %vm5409_vm11 = vcmp.gt.f32.partialorder %v5405_v20, 0.0  ;;  %13355 = vmatpush3.bf16.msra.mxu0 %v13352_v2 }
 0xa4c   :  { %v5410_v22 = vmul.f32 0.2, %v5402_v17  ;;  %v5411_v23 = vmul.f32 0.2, %v5403_v18  ;;  %v5412_v24 = vmul.f32 0.2, %v5404_v19  ;;  %13357 = vmatprep.subr.bf16.mxu0 %v13356_v5 }
 0xa4d   :  { %v5413_v25 = vmul.f32 0.2, %v5405_v20 }
 0xa4e   :  { %v5414_v26 = vsel %vm5406_vm8, %v5402_v17, %v5410_v22  ;;  %v5415_v27 = vsel %vm5407_vm9, %v5403_v18, %v5411_v23  ;;  %v5416_v28 = vsel %vm5408_vm10, %v5404_v19, %v5412_v24  ;;  %v10234_v19 = vld [vmem:[%s15502_s11 + $0x30] sm:$0xff] }
 0xa4f   :  { %v5417_v29 = vsel %vm5409_vm11, %v5405_v20, %v5413_v25  ;;  %v14859_v30 = vpack.c.bf16 %v5415_v27, %v5414_v26  ;;  %v10235_v20 = vld [vmem:[%s15502_s11 + $0x38] sm:$0xff]  ;;  %v10248_v27 = vld [vmem:[%s15502_s11 + $0x40] sm:$0xff] }
 0xa50   :  { %v14861_v31 = vpack.c.bf16 %v5417_v29, %v5416_v28  ;;  %v13380_v24 = vpack.c.bf16 %v10235_v20, %v10234_v19  ;;  %v10249_v28 = vld [vmem:[%s15502_s11 + $0x48] sm:$0xff] }
 0xa51   :  { %13337 = vmatprep.subr.bf16.mxu1 %v14859_v30 }
 0xa52   :  { %13339 = vmatpush3.bf16.msra.mxu1 %v14859_v30 }
 0xa53   :  { %13341 = vmatprep.subr.bf16.mxu1 %v14861_v31 }
 0xa56   :  { %13343 = vmatpush3.bf16.msra.mxu1 %v14861_v31 }
 0xa57   :  { %13345 = vmatprep.subr.bf16.mxu1 %v14859_v30 }
 0xa59   :  { %12200 = vmatmul.mubr.msk.f32.vlgmr.msra.gmra.mrb[64].mxu1 %vm3499_vm2, %v5419_v32 }
 0xa5a   :  { %13347 = vmatpush3.bf16.msra.mxu1 %v14859_v30  ;;  %12202 = vmatprep.mubr.msk.f32.mxu1 %vm3499_vm2, %v5420_v33 }
 0xa5b   :  { %13349 = vmatprep.subr.bf16.mxu1 %v14861_v31 }
 0xa5d   :  { %12203 = vmatmul.mubr.msk.f32.gmra.mrb[66].mxu1 %vm3499_vm2, %v5421_v34  ;;  %v10262_v34 = vld [vmem:[%s15502_s11 + $0x50] sm:$0xff] }
 0xa5e   :  { %13351 = vmatpush3.bf16.msra.mxu1 %v14861_v31  ;;  %12213 = vmatprep.mubr.msk.f32.mxu1 %vm3499_vm2, %v10194_v35  ;;  %v10263_v35 = vld [vmem:[%s15502_s11 + $0x58] sm:$0xff] }
 0xa5f   :  { %13361 = vmatprep.subr.bf16.mxu1 %v14859_v30 }
 0xa61   :  { %12214 = vmatmul.mubr.msk.f32.vlgmr.msra.gmra.mrb[68].mxu1 %vm3499_vm2, %v10195_v37 }
 0xa62   :  { %13363 = vmatpush3.bf16.msra.mxu1 %v14859_v30  ;;  %12216 = vmatprep.mubr.msk.f32.mxu1 %vm3499_vm2, %v10196_v44 }
 0xa63   :  { %13365 = vmatprep.subr.bf16.mxu1 %v14861_v31 }
 0xa65   :  { %12217 = vmatmul.mubr.msk.f32.gmra.mrb[70].mxu1 %vm3499_vm2, %v10197_v51  ;;  %v13404_v51 = vpack.c.bf16 %v10263_v35, %v10262_v34 }
 0xa66   :  { %13367 = vmatpush3.bf16.msra.mxu1 %v14861_v31  ;;  %12247 = vmatprep.mubr.msk.f32.mxu1 %vm3499_vm2, %v10212_v58 }
 0xa67   :  { %13373 = vmatprep.subr.bf16.mxu1 %v14859_v30 }
 0xa69   :  { %12248 = vmatmul.mubr.msk.f32.vlgmr.msra.gmra.mrb[72].mxu1 %vm3499_vm2, %v10213_v1 }
 0xa6a   :  { %13375 = vmatpush3.bf16.msra.mxu1 %v14859_v30  ;;  %12250 = vmatprep.mubr.msk.f32.mxu1 %vm3499_vm2, %v10214_v8  ;;  %v10276_v8 = vld [vmem:[%s15502_s11 + $0x60] sm:$0xff] }
 0xa6b   :  { %13377 = vmatprep.subr.bf16.mxu1 %v14861_v31 }
 0xa6d   :  { %12251 = vmatmul.mubr.msk.f32.gmra.mrb[74].mxu1 %vm3499_vm2, %v10215_v15  ;;  %v10277_v15 = vld [vmem:[%s15502_s11 + $0x68] sm:$0xff] }
 0xa6e   :  { %13379 = vmatpush3.bf16.msra.mxu1 %v14861_v31  ;;  %12271 = vmatprep.mubr.msk.f32.mxu1 %vm3499_vm2, %v10226_v21 }
 0xa6f   :  { %13385 = vmatprep.subr.bf16.mxu1 %v14859_v30 }
 0xa71   :  { %12272 = vmatmul.mubr.msk.f32.vlgmr.msra.gmra.mrb[76].mxu1 %vm3499_vm2, %v10227_v36 }
 0xa72   :  { %13387 = vmatpush3.bf16.msra.mxu1 %v14859_v30  ;;  %12274 = vmatprep.mubr.msk.f32.mxu1 %vm3499_vm2, %v10228_v38  ;;  %v13416_v38 = vpack.c.bf16 %v10277_v15, %v10276_v8 }
 0xa73   :  { %13389 = vmatprep.subr.bf16.mxu1 %v14861_v31 }
 0xa75   :  { %12275 = vmatmul.mubr.msk.f32.gmra.mrb[78].mxu1 %vm3499_vm2, %v10229_v39 }
 0xa76   :  { %13391 = vmatpush3.bf16.msra.mxu1 %v14861_v31  ;;  %12295 = vmatprep.mubr.msk.f32.mxu1 %vm3499_vm2, %v10240_v40 }
 0xa77   :  { %13397 = vmatprep.subr.bf16.mxu1 %v14859_v30 }
 0xa79   :  { %12296 = vmatmul.mubr.msk.f32.vlgmr.msra.gmra.mrb[80].mxu1 %vm3499_vm2, %v10241_v41  ;;  %v10290_v41 = vld [vmem:[%s15502_s11 + $0x70] sm:$0xff] }
 0xa7a   :  { %13399 = vmatpush3.bf16.msra.mxu1 %v14859_v30  ;;  %12298 = vmatprep.mubr.msk.f32.mxu1 %vm3499_vm2, %v10242_v42  ;;  %v10291_v42 = vld [vmem:[%s15502_s11 + $0x78] sm:$0xff] }
 0xa7b   :  { %13401 = vmatprep.subr.bf16.mxu1 %v14861_v31 }
 0xa7d   :  { %12299 = vmatmul.mubr.msk.f32.gmra.mrb[82].mxu1 %vm3499_vm2, %v10243_v43 }
 0xa7e   :  { %13403 = vmatpush3.bf16.msra.mxu1 %v14861_v31  ;;  %12319 = vmatprep.mubr.msk.f32.mxu1 %vm3499_vm2, %v10254_v45 }
 0xa7f   :  { %13409 = vmatprep.subr.bf16.mxu1 %v14859_v30 }
 0xa81   :  { %12320 = vmatmul.mubr.msk.f32.vlgmr.msra.gmra.mrb[84].mxu1 %vm3499_vm2, %v10255_v46  ;;  %v13428_v46 = vpack.c.bf16 %v10291_v42, %v10290_v41  ;;  %v10310_v41 = vld [vmem:[%s15503_s12] ss:$0 sm:$0xff] }
 0xa82   :  { %13411 = vmatpush3.bf16.msra.mxu1 %v14859_v30  ;;  %12322 = vmatprep.mubr.msk.f32.mxu1 %vm3499_vm2, %v10256_v47 }
 0xa83   :  { %13413 = vmatprep.subr.bf16.mxu1 %v14861_v31 }
 0xa85   :  { %12323 = vmatmul.mubr.msk.f32.gmra.mrb[86].mxu1 %vm3499_vm2, %v10257_v48 }
 0xa86   :  { %13415 = vmatpush3.bf16.msra.mxu1 %v14861_v31  ;;  %12343 = vmatprep.mubr.msk.f32.mxu1 %vm3499_vm2, %v10268_v49  ;;  %v10304_v49 = vld [vmem:[%s15502_s11 + $0x80] sm:$0xff] }
 0xa87   :  { %13421 = vmatprep.subr.bf16.mxu1 %v14859_v30 }
 0xa89   :  { %12344 = vmatmul.mubr.msk.f32.vlgmr.msra.gmra.mrb[88].mxu1 %vm3499_vm2, %v10269_v50  ;;  %v10305_v50 = vld [vmem:[%s15502_s11 + $0x88] sm:$0xff] }
 0xa8a   :  { %13423 = vmatpush3.bf16.msra.mxu1 %v14859_v30  ;;  %12346 = vmatprep.mubr.msk.f32.mxu1 %vm3499_vm2, %v10270_v52 }
 0xa8b   :  { %13425 = vmatprep.subr.bf16.mxu1 %v14861_v31 }
 0xa8d   :  { %12347 = vmatmul.mubr.msk.f32.gmra.mrb[90].mxu1 %vm3499_vm2, %v10271_v53 }
 0xa8e   :  { %13427 = vmatpush3.bf16.msra.mxu1 %v14861_v31  ;;  %12367 = vmatprep.mubr.msk.f32.mxu1 %vm3499_vm2, %v10282_v54  ;;  %v13440_v54 = vpack.c.bf16 %v10305_v50, %v10304_v49 }
 0xa8f   :  { %13433 = vmatprep.subr.bf16.mxu1 %v14859_v30 }
 0xa91   :  { %12368 = vmatmul.mubr.msk.f32.vlgmr.msra.gmra.mrb[92].mxu1 %vm3499_vm2, %v10283_v55 }
 0xa92   :  { %13435 = vmatpush3.bf16.msra.mxu1 %v14859_v30  ;;  %12370 = vmatprep.mubr.msk.f32.mxu1 %vm3499_vm2, %v10284_v56 }
 0xa93   :  { %13437 = vmatprep.subr.bf16.mxu1 %v14861_v31 }
 0xa95   :  { %12371 = vmatmul.mubr.msk.f32.gmra.mrb[94].mxu1 %vm3499_vm2, %v10285_v57 }
 0xa96   :  { %13439 = vmatpush3.bf16.msra.mxu1 %v14861_v31  ;;  %12391 = vmatprep.mubr.msk.f32.mxu1 %vm3499_vm2, %v10296_v59  ;;  %v13392_v31 = vpack.c.bf16 %v10249_v28, %v10248_v27 }
 0xa99   :  { %12392 = vmatmul.mubr.msk.f32.vlgmr.msra.gmra.mrb[96].mxu1 %vm3499_vm2, %v10297_v60 }
 0xa9a   :  { %12394 = vmatprep.mubr.msk.f32.mxu1 %vm3499_vm2, %v10298_v61 }
 0xa9d   :  { %12395 = vmatmul.mubr.msk.f32.gmra.mrb[98].mxu1 %vm3499_vm2, %v10299_v62  ;;  %v13757_v62 = vmov 0.0|0.0  }
 0xa9e   :  { %13444 = vmatprep.subr.bf16.mxu1 %v13757_v62  ;;  %12415 = vmatprep.mubr.msk.f32.mxu1 %vm13758_vm12, %v13759_v63 }
 0xb2c   :  { %v12201_v6 = vpop.f32.mrb[64].mxu1 }
 0xb2d   :  { %v5500_v7 = vpop.f32.mrb[65].mxu1 }
 0xb30   :  { %v12204_v9 = vpop.f32.mrb[66].mxu1 }
 0xb31   :  { %v5510_v10 = vpop.f32.mrb[67].mxu1 }
 0xb34   :  { %v12215_v13 = vpop.f32.mrb[68].mxu1 }
 0xb35   :  { %v5604_v14 = vpop.f32.mrb[69].mxu1 }
 0xb36   :  { %12223 = vmatprep.mubr.msk.f32.mxu0 %vm3415_vm3, %v5604_v14 }
 0xb37   :  { %12224 = vmatmul.mubr.msk.f32.vlgmr.msra.gmra.mrb[60].mxu0 %vm3415_vm3, %v12215_v13 }
 0xb38   :  { %v12218_v17 = vpop.f32.mrb[70].mxu1  ;;  %13359 = vmatpush3.bf16.msra.mxu0 %v13356_v5 }
 0xb39   :  { %v5614_v18 = vpop.f32.mrb[71].mxu1  ;;  %13369 = vmatprep.subr.bf16.mxu0 %v13368_v16 }
 0xb3a   :  { %12226 = vmatprep.mubr.msk.f32.mxu0 %vm3415_vm3, %v5614_v18 }
 0xb3b   :  { %12227 = vmatmul.mubr.msk.f32.gmra.mrb[62].mxu0 %vm3415_vm3, %v12218_v17 }
 0xb3c   :  { %12233 = vmatprep.mubr.msk.f32.mxu0 %vm3415_vm3, %v5500_v7  ;;  %v12249_v22 = vpop.f32.mrb[72].mxu1 }
 0xb3d   :  { %v5903_v23 = vpop.f32.mrb[73].mxu1 }
 0xb3f   :  { %12234 = vmatmul.mubr.msk.f32.vlgmr.msra.gmra.mrb[60].mxu0 %vm3415_vm3, %v12201_v6 }
 0xb40   :  { %12236 = vmatprep.mubr.msk.f32.mxu0 %vm3415_vm3, %v5510_v10  ;;  %13371 = vmatpush3.bf16.msra.mxu0 %v13368_v16  ;;  %v12252_v25 = vpop.f32.mrb[74].mxu1 }
 0xb41   :  { %v5913_v26 = vpop.f32.mrb[75].mxu1  ;;  %13381 = vmatprep.subr.bf16.mxu0 %v13380_v24 }
 0xb43   :  { %12237 = vmatmul.mubr.msk.f32.gmra.mrb[62].mxu0 %vm3415_vm3, %v12204_v9 }
 0xb44   :  { %12257 = vmatprep.mubr.msk.f32.mxu0 %vm3415_vm3, %v5903_v23  ;;  %v12273_v29 = vpop.f32.mrb[76].mxu1 }
 0xb45   :  { %v6109_v30 = vpop.f32.mrb[77].mxu1 }
 0xb47   :  { %12258 = vmatmul.mubr.msk.f32.vlgmr.msra.gmra.mrb[60].mxu0 %vm3415_vm3, %v12249_v22 }
 0xb48   :  { %12260 = vmatprep.mubr.msk.f32.mxu0 %vm3415_vm3, %v5913_v26  ;;  %13383 = vmatpush3.bf16.msra.mxu0 %v13380_v24  ;;  %v12276_v32 = vpop.f32.mrb[78].mxu1 }
 0xb49   :  { %v6119_v33 = vpop.f32.mrb[79].mxu1  ;;  %13393 = vmatprep.subr.bf16.mxu0 %v13392_v31 }
 0xb4b   :  { %12261 = vmatmul.mubr.msk.f32.gmra.mrb[62].mxu0 %vm3415_vm3, %v12252_v25 }
 0xb4c   :  { %12281 = vmatprep.mubr.msk.f32.mxu0 %vm3415_vm3, %v6109_v30  ;;  %v12297_v37 = vpop.f32.mrb[80].mxu1 }
 0xb4d   :  { %v6315_v44 = vpop.f32.mrb[81].mxu1 }
 0xb4f   :  { %12282 = vmatmul.mubr.msk.f32.vlgmr.msra.gmra.mrb[60].mxu0 %vm3415_vm3, %v12273_v29 }
 0xb50   :  { %12284 = vmatprep.mubr.msk.f32.mxu0 %vm3415_vm3, %v6119_v33  ;;  %13395 = vmatpush3.bf16.msra.mxu0 %v13392_v31  ;;  %v12300_v58 = vpop.f32.mrb[82].mxu1 }
 0xb51   :  { %v6325_v1 = vpop.f32.mrb[83].mxu1  ;;  %13405 = vmatprep.subr.bf16.mxu0 %v13404_v51 }
 0xb53   :  { %12285 = vmatmul.mubr.msk.f32.gmra.mrb[62].mxu0 %vm3415_vm3, %v12276_v32 }
 0xb54   :  { %12305 = vmatprep.mubr.msk.f32.mxu0 %vm3415_vm3, %v6315_v44  ;;  %v12321_v21 = vpop.f32.mrb[84].mxu1 }
 0xb55   :  { %v6521_v36 = vpop.f32.mrb[85].mxu1 }
 0xb57   :  { %12306 = vmatmul.mubr.msk.f32.vlgmr.msra.gmra.mrb[60].mxu0 %vm3415_vm3, %v12297_v37 }
 0xb58   :  { %12308 = vmatprep.mubr.msk.f32.mxu0 %vm3415_vm3, %v6325_v1  ;;  %13407 = vmatpush3.bf16.msra.mxu0 %v13404_v51  ;;  %v12324_v39 = vpop.f32.mrb[86].mxu1 }
 0xb59   :  { %v6531_v40 = vpop.f32.mrb[87].mxu1  ;;  %13417 = vmatprep.subr.bf16.mxu0 %v13416_v38 }
 0xb5b   :  { %12309 = vmatmul.mubr.msk.f32.gmra.mrb[62].mxu0 %vm3415_vm3, %v12300_v58 }
 0xb5c   :  { %12329 = vmatprep.mubr.msk.f32.mxu0 %vm3415_vm3, %v6521_v36  ;;  %v12345_v43 = vpop.f32.mrb[88].mxu1 }
 0xb5d   :  { %v6727_v45 = vpop.f32.mrb[89].mxu1 }
 0xb5f   :  { %12330 = vmatmul.mubr.msk.f32.vlgmr.msra.gmra.mrb[60].mxu0 %vm3415_vm3, %v12321_v21 }
 0xb60   :  { %12332 = vmatprep.mubr.msk.f32.mxu0 %vm3415_vm3, %v6531_v40  ;;  %13419 = vmatpush3.bf16.msra.mxu0 %v13416_v38  ;;  %v12348_v47 = vpop.f32.mrb[90].mxu1 }
 0xb61   :  { %v6737_v48 = vpop.f32.mrb[91].mxu1  ;;  %13429 = vmatprep.subr.bf16.mxu0 %v13428_v46 }
 0xb63   :  { %12333 = vmatmul.mubr.msk.f32.gmra.mrb[62].mxu0 %vm3415_vm3, %v12324_v39 }
 0xb64   :  { %12353 = vmatprep.mubr.msk.f32.mxu0 %vm3415_vm3, %v6727_v45  ;;  %v12369_v52 = vpop.f32.mrb[92].mxu1 }
 0xb65   :  { %v6933_v53 = vpop.f32.mrb[93].mxu1 }
 0xb67   :  { %12354 = vmatmul.mubr.msk.f32.vlgmr.msra.gmra.mrb[60].mxu0 %vm3415_vm3, %v12345_v43 }
 0xb68   :  { %12356 = vmatprep.mubr.msk.f32.mxu0 %vm3415_vm3, %v6737_v48  ;;  %13431 = vmatpush3.bf16.msra.mxu0 %v13428_v46  ;;  %v12372_v55 = vpop.f32.mrb[94].mxu1 }
 0xb69   :  { %v6943_v56 = vpop.f32.mrb[95].mxu1  ;;  %13441 = vmatprep.subr.bf16.mxu0 %v13440_v54 }
 0xb6b   :  { %12357 = vmatmul.mubr.msk.f32.gmra.mrb[62].mxu0 %vm3415_vm3, %v12348_v47  ;;  %v10311_v47 = vld [vmem:[%s15504_s13] ss:$0 sm:$0xff] }
 0xb6c   :  { %12377 = vmatprep.mubr.msk.f32.mxu0 %vm3415_vm3, %v6933_v53  ;;  %v12393_v57 = vpop.f32.mrb[96].mxu1 }
 0xb6d   :  { %v7139_v59 = vpop.f32.mrb[97].mxu1 }
 0xb6f   :  { %12378 = vmatmul.mubr.msk.f32.vlgmr.msra.gmra.mrb[60].mxu0 %vm3415_vm3, %v12369_v52 }
 0xb70   :  { %12380 = vmatprep.mubr.msk.f32.mxu0 %vm3415_vm3, %v6943_v56  ;;  %13443 = vmatpush3.bf16.msra.mxu0 %v13440_v54  ;;  %v12396_v60 = vpop.f32.mrb[98].mxu1 }
 0xb71   :  { %v7149_v61 = vpop.f32.mrb[99].mxu1  ;;  %13462 = vmatprep.subr.bf16.mxu0 %v13757_v62 }
 0xb73   :  { %12381 = vmatmul.mubr.msk.f32.gmra.mrb[62].mxu0 %vm3415_vm3, %v12372_v55 }
 0xb74   :  { %12401 = vmatprep.mubr.msk.f32.mxu0 %vm3415_vm3, %v7139_v59 }
 0xb77   :  { %12402 = vmatmul.mubr.msk.f32.vlgmr.msra.gmra.mrb[60].mxu0 %vm3415_vm3, %v12393_v57 }
 0xb78   :  { %12404 = vmatprep.mubr.msk.f32.mxu0 %vm3415_vm3, %v7149_v61 }
 0xb7b   :  { %12405 = vmatmul.mubr.msk.f32.gmra.mrb[62].mxu0 %vm3415_vm3, %v12396_v60 }
 0xb7c   :  { %12451 = vmatprep.mubr.msk.f32.mxu0 %vm13758_vm12, %v13759_v63 }
 0xc4a   :  { %v12403_v0 = vpop.f32.mrb[60].mxu0 }
 0xc4b   :  { %v7263_v2 = vsel %vm3415_vm3, %v12403_v0, 0.0  ;;  %v7277_v3 = vmul.f32 %v12403_v0, %v12403_v0  ;;  %v7239_v4 = vpop.f32.mrb[61].mxu0 }
 0xc4c   :  { %v7262_v5 = vsel %vm3415_vm3, %v7239_v4, 0.0  ;;  %v7276_v6 = vmul.f32 %v7239_v4, %v7239_v4 }
 0xc4d   :  { %v7281_v7 = vsel %vm3415_vm3, %v7277_v3, 0.0  ;;  %v7264_v9 = vadd.f32 %v7263_v2, %v7262_v5 }
 0xc4e   :  { %v7280_v10 = vsel %vm3415_vm3, %v7276_v6, 0.0  ;;  %v12406_v11 = vpop.f32.mrb[62].mxu0 }
 0xc4f   :  { %v7282_v12 = vadd.f32 %v7281_v7, %v7280_v10  ;;  %v7249_v13 = vpop.f32.mrb[63].mxu0  ;;  %v7279_v14 = vmul.f32 %v12406_v11, %v12406_v11  ;;  %v7267_v19 = vsel %vm3415_vm3, %v12406_v11, 0.0  ;;  %v7340_v7 = vld [vmem:[%s15505_s14] sm:$0xff]  ;;  %v10313_v10 = vld [vmem:[%s15505_s14 + $0x8] sm:$0xff] }
 0xc50   :  { %v7265_v16 = vsel %vm3415_vm3, %v7249_v13, 0.0  ;;  %v7278_v17 = vmul.f32 %v7249_v13, %v7249_v13 }
 0xc51   :  { %v7266_v18 = vadd.f32 %v7265_v16, %v7264_v9  ;;  %v7285_v24 = vsel %vm3415_vm3, %v7279_v14, 0.0  ;;  %v10319_v9 = vld [vmem:[%s15505_s14 + $0x10] sm:$0xff]  ;;  %v10344_v14 = vld [vmem:[%s15505_s14 + $0x38] sm:$0xff]  ;;  %v10349_v16 = vld [vmem:[%s15505_s14 + $0x40] sm:$0xff] }
 0xc52   :  { %v7283_v20 = vsel %vm3415_vm3, %v7278_v17, 0.0  ;;  %v10359_v17 = vld [vmem:[%s15505_s14 + $0x50] sm:$0xff] }
 0xc53   :  { %v7268_v22 = vadd.f32 %v7267_v19, %v7266_v18  ;;  %v7284_v23 = vadd.f32 %v7283_v20, %v7282_v12  ;;  %v10329_v12 = vld [vmem:[%s15505_s14 + $0x20] sm:$0xff]  ;;  %v10364_v18 = vld [vmem:[%s15505_s14 + $0x58] sm:$0xff]  ;;  %v10379_v20 = vld [vmem:[%s15505_s14 + $0x70] sm:$0xff] }
 0xc54   :  { %v10369_v19 = vld [vmem:[%s15505_s14 + $0x60] sm:$0xff] }
 0xc55   :  { %v7269_v25 = vrot.slane %v7268_v22, 4  ;;  %v7286_v26 = vadd.f32 %v7285_v24, %v7284_v23  ;;  %v10316_v23 = vld [vmem:[%s15506_s15 + $0x18] sm:$0xff] }
 0xc57   :  { %v7270_v27 = vadd.f32 %v7269_v25, %v7268_v22  ;;  %v7287_v28 = vrot.slane %v7286_v26, 4  ;;  %v10315_v22 = vld [vmem:[%s15506_s15 + $0x10] sm:$0xff] }
 0xc58   :  { %v13457_v24 = vpack.c.bf16 %v10316_v23, %v10315_v22 }
 0xc59   :  { %v7271_v29 = vrot.slane %v7270_v27, 2  ;;  %v7288_v30 = vadd.f32 %v7287_v28, %v7286_v26 }
 0xc5b   :  { %v7272_v31 = vadd.f32 %v7271_v29, %v7270_v27  ;;  %v7289_v32 = vrot.slane %v7288_v30, 2  ;;  %v7414_v29 = vld [vmem:[%s15506_s15] sm:$0xff] }
 0xc5d   :  { %v7273_v33 = vrot.slane %v7272_v31, 1  ;;  %v7290_v34 = vadd.f32 %v7289_v32, %v7288_v30  ;;  %v7415_v30 = vld [vmem:[%s15506_s15 + $0x8] sm:$0xff] }
 0xc5f   :  { %v7274_v35 = vadd.f32 %v7273_v33, %v7272_v31  ;;  %v7291_v37 = vrot.slane %v7290_v34, 1  ;;  %v13460_v31 = vpack.c.bf16 %v7415_v30, %v7414_v29  ;;  %v10376_v30 = vld [vmem:[%s15506_s15 + $0xd0] sm:$0xff] }
 0xc61   :  { %v7275_v44 = vmul.f32 0.03125, %v7274_v35  ;;  %v7292_v51 = vadd.f32 %v7291_v37, %v7290_v34  ;;  %v10321_v37 = vld [vmem:[%s15506_s15 + $0x20] sm:$0xff] }
 0xc63   :  { %v7293_v58 = vmul.f32 0.03125, %v7292_v51  ;;  %v7294_v1 = vmul.f32 %v7275_v44, %v7275_v44  ;;  %v7296_v8 = vsub.f32 %v7239_v4, %v7275_v44  ;;  %v7297_v15 = vsub.f32 %v12403_v0, %v7275_v44 }
 0xc64   :  { %v7298_v21 = vsub.f32 %v7249_v13, %v7275_v44  ;;  %v7299_v36 = vsub.f32 %v12406_v11, %v7275_v44  ;;  %v10324_v11 = vld [vmem:[%s15505_s14 + $0x18] sm:$0xff]  ;;  %v10339_v13 = vld [vmem:[%s15505_s14 + $0x30] sm:$0xff]  ;;  %v10322_v44 = vld [vmem:[%s15506_s15 + $0x28] sm:$0xff] }
 0xc65   :  { %v7295_v38 = vsub.f32 %v7293_v58, %v7294_v1  ;;  %v13469_v51 = vpack.c.bf16 %v10322_v44, %v10321_v37  ;;  %v10382_v44 = vld [vmem:[%s15506_s15 + $0xe8] sm:$0xff] }
 0xc67   :  { %v7300_v39 = vadd.f32 1e-05, %v7295_v38  ;;  %v10332_v38 = vld [vmem:[%s15506_s15 + $0x48] sm:$0xff] }
 0xc69   :  { %13749 = vrsqrt.f32 %v7300_v39 }
 0xc73   :  { %v13750_v40 = vpop.eup %13749 }
 0xc74   :  { %v7302_v42 = vmul.f32 %v13750_v40, %v7296_v8  ;;  %v7303_v43 = vmul.f32 %v13750_v40, %v7297_v15  ;;  %v7304_v45 = vmul.f32 %v13750_v40, %v7298_v21  ;;  %v7305_v46 = vmul.f32 %v13750_v40, %v7299_v36  ;;  %v10326_v8 = vld [vmem:[%s15506_s15 + $0x30] sm:$0xff]  ;;  %v10327_v15 = vld [vmem:[%s15506_s15 + $0x38] sm:$0xff]  ;;  %v10331_v36 = vld [vmem:[%s15506_s15 + $0x40] sm:$0xff] }
 0xc75   :  { %v13478_v21 = vpack.c.bf16 %v10327_v15, %v10326_v8  ;;  %v13487_v39 = vpack.c.bf16 %v10332_v38, %v10331_v36  ;;  %v10336_v40 = vld [vmem:[%s15506_s15 + $0x50] sm:$0xff]  ;;  %v10387_v15 = vld [vmem:[%s15506_s15 + $0xf8] sm:$0xff] }
 0xc76   :  { %v7313_v48 = vmul.f32 %v10310_v41, %v7302_v42  ;;  %v7314_v49 = vmul.f32 %v10310_v41, %v7303_v43  ;;  %v7315_v50 = vmul.f32 %v10310_v41, %v7304_v45  ;;  %v7316_v52 = vmul.f32 %v10310_v41, %v7305_v46  ;;  %v10337_v41 = vld [vmem:[%s15506_s15 + $0x58] sm:$0xff]  ;;  %v10334_v42 = vld [vmem:[%s15505_s14 + $0x28] sm:$0xff]  ;;  %v10386_v8 = vld [vmem:[%s15506_s15 + $0xf0] sm:$0xff] }
 0xc77   :  { %v13496_v43 = vpack.c.bf16 %v10337_v41, %v10336_v40 }
 0xc78   :  { %v7324_v53 = vadd.f32 %v10311_v47, %v7313_v48  ;;  %v7325_v54 = vadd.f32 %v10311_v47, %v7314_v49  ;;  %v7326_v55 = vadd.f32 %v10311_v47, %v7315_v50  ;;  %v7327_v56 = vadd.f32 %v10311_v47, %v7316_v52  ;;  %v10341_v52 = vld [vmem:[%s15506_s15 + $0x60] sm:$0xff] }
 0xc7a   :  { %vm7328_vm13 = vcmp.gt.f32.partialorder %v7324_v53, 0.0  ;;  %vm7329_vm14 = vcmp.gt.f32.partialorder %v7325_v54, 0.0  ;;  %vm7330_vm15 = vcmp.gt.f32.partialorder %v7326_v55, 0.0  ;;  %vm7331_vm0 = vcmp.gt.f32.partialorder %v7327_v56, 0.0 }
 0xc7b   :  { %v7332_v57 = vmul.f32 0.2, %v7324_v53  ;;  %v7333_v59 = vmul.f32 0.2, %v7325_v54  ;;  %v7334_v60 = vmul.f32 0.2, %v7326_v55 }
 0xc7c   :  { %v7335_v61 = vmul.f32 0.2, %v7327_v56 }
 0xc7d   :  { %v7336_v0 = vsel %vm7328_vm13, %v7324_v53, %v7332_v57  ;;  %v7337_v2 = vsel %vm7329_vm14, %v7325_v54, %v7333_v59  ;;  %v7338_v3 = vsel %vm7330_vm15, %v7326_v55, %v7334_v60  ;;  %v10342_v53 = vld [vmem:[%s15506_s15 + $0x68] sm:$0xff]  ;;  %v10346_v57 = vld [vmem:[%s15506_s15 + $0x70] sm:$0xff]  ;;  %v10347_v59 = vld [vmem:[%s15506_s15 + $0x78] sm:$0xff] }
 0xc7e   :  { %v7339_v4 = vsel %vm7331_vm0, %v7327_v56, %v7335_v61  ;;  %v15149_v5 = vpack.c.bf16 %v7337_v2, %v7336_v0  ;;  %v13505_v54 = vpack.c.bf16 %v10342_v53, %v10341_v52  ;;  %v13514_v60 = vpack.c.bf16 %v10347_v59, %v10346_v57  ;;  %v10351_v61 = vld [vmem:[%s15506_s15 + $0x80] sm:$0xff]  ;;  %v10352_v0 = vld [vmem:[%s15506_s15 + $0x88] sm:$0xff] }
 0xc7f   :  { %v15151_v6 = vpack.c.bf16 %v7339_v4, %v7338_v3  ;;  %v13523_v2 = vpack.c.bf16 %v10352_v0, %v10351_v61  ;;  %v10356_v3 = vld [vmem:[%s15506_s15 + $0x90] sm:$0xff]  ;;  %v10357_v4 = vld [vmem:[%s15506_s15 + $0x98] sm:$0xff]  ;;  %v10389_v0 = vld [vmem:[%s15507_s16] ss:$0 sm:$0xff] }
 0xc80   :  { %13446 = vmatpush3.bf16.msra.mxu1 %v15149_v5  ;;  %13464 = vmatpush3.bf16.msra.mxu0 %v15149_v5 }
 0xc81   :  { %13447 = vmatprep.subr.bf16.mxu1 %v13757_v62  ;;  %13465 = vmatprep.subr.bf16.mxu0 %v13757_v62 }
 0xc84   :  { %13449 = vmatpush3.bf16.msra.mxu1 %v15151_v6  ;;  %13467 = vmatpush3.bf16.msra.mxu0 %v15151_v6 }
 0xc85   :  { %13450 = vmatprep.subr.bf16.mxu1 %v13757_v62  ;;  %13471 = vmatprep.subr.bf16.mxu0 %v13757_v62 }
 0xc87   :  { %12416 = vmatmul.mubr.msk.f32.vlgmr.msra.gmra.mrb[100].mxu1 %vm3499_vm2, %v7340_v7  ;;  %12452 = vmatmul.mubr.msk.f32.vlgmr.msra.gmra.mrb[64].mxu0 %vm3499_vm2, %v10319_v9  ;;  %v10354_v7 = vld [vmem:[%s15505_s14 + $0x48] sm:$0xff]  ;;  %v13532_v9 = vpack.c.bf16 %v10357_v4, %v10356_v3  ;;  %v10390_v3 = vld [vmem:[%s15508_s17] ss:$0 sm:$0xff] }
 0xc88   :  { %13452 = vmatpush3.bf16.msra.mxu1 %v15149_v5  ;;  %13473 = vmatpush3.bf16.msra.mxu0 %v15149_v5 }
 0xc89   :  { %13453 = vmatprep.subr.bf16.mxu1 %v13757_v62  ;;  %13474 = vmatprep.subr.bf16.mxu0 %v13757_v62 }
 0xc8a   :  { %12426 = vmatprep.mubr.msk.f32.mxu1 %vm13758_vm12, %v13759_v63  ;;  %12469 = vmatprep.mubr.msk.f32.mxu0 %vm13758_vm12, %v13759_v63 }
 0xc8c   :  { %13455 = vmatpush3.bf16.msra.mxu1 %v15151_v6  ;;  %13476 = vmatpush3.bf16.msra.mxu0 %v15151_v6 }
 0xc8d   :  { %13480 = vmatprep.subr.bf16.mxu0 %v13757_v62  ;;  %13456 = vmatprep.subr.bf16.mxu1 %v13757_v62 }
 0xc8f   :  { %12427 = vmatmul.mubr.msk.f32.vlgmr.msra.gmra.mrb[102].mxu1 %vm3499_vm2, %v10313_v10  ;;  %12470 = vmatmul.mubr.msk.f32.vlgmr.msra.gmra.mrb[66].mxu0 %vm3499_vm2, %v10324_v11 }
 0xc90   :  { %13482 = vmatpush3.bf16.msra.mxu0 %v15149_v5  ;;  %12487 = vmatprep.mubr.msk.f32.mxu0 %vm13758_vm12, %v13759_v63 }
 0xc91   :  { %13483 = vmatprep.subr.bf16.mxu0 %v13757_v62  ;;  %12433 = vmatprep.mubr.msk.f32.mxu1 %vm13758_vm12, %v13759_v63 }
 0xc92   :  { %13458 = vmatpush3.bf16.msra.mxu1 %v13457_v24  ;;  %v10366_v24 = vld [vmem:[%s15506_s15 + $0xb0] sm:$0xff] }
 0xc93   :  { %13459 = vmatprep.subr.bf16.mxu1 %v13757_v62 }
 0xc94   :  { %13485 = vmatpush3.bf16.msra.mxu0 %v15151_v6 }
 0xc95   :  { %13498 = vmatprep.subr.bf16.mxu0 %v13757_v62 }
 0xc97   :  { %12488 = vmatmul.mubr.msk.f32.vlgmr.msra.gmra.mrb[68].mxu0 %vm3499_vm2, %v10329_v12 }
 0xc98   :  { %13500 = vmatpush3.bf16.msra.mxu0 %v15149_v5  ;;  %12523 = vmatprep.mubr.msk.f32.mxu0 %vm13758_vm12, %v13759_v63 }
 0xc99   :  { %13501 = vmatprep.subr.bf16.mxu0 %v13757_v62 }
 0xc9c   :  { %13503 = vmatpush3.bf16.msra.mxu0 %v15151_v6 }
 0xc9d   :  { %13507 = vmatprep.subr.bf16.mxu0 %v13757_v62 }
 0xc9f   :  { %12524 = vmatmul.mubr.msk.f32.vlgmr.msra.gmra.mrb[70].mxu0 %vm3499_vm2, %v10339_v13 }
 0xca0   :  { %13509 = vmatpush3.bf16.msra.mxu0 %v15149_v5  ;;  %12541 = vmatprep.mubr.msk.f32.mxu0 %vm13758_vm12, %v13759_v63 }
 0xca1   :  { %13510 = vmatprep.subr.bf16.mxu0 %v13757_v62 }
 0xca4   :  { %13512 = vmatpush3.bf16.msra.mxu0 %v15151_v6 }
 0xca5   :  { %13516 = vmatprep.subr.bf16.mxu0 %v13757_v62 }
 0xca7   :  { %12542 = vmatmul.mubr.msk.f32.vlgmr.msra.gmra.mrb[72].mxu0 %vm3499_vm2, %v10344_v14 }
 0xca8   :  { %13518 = vmatpush3.bf16.msra.mxu0 %v15149_v5  ;;  %12559 = vmatprep.mubr.msk.f32.mxu0 %vm13758_vm12, %v13759_v63 }
 0xca9   :  { %13519 = vmatprep.subr.bf16.mxu0 %v13757_v62 }
 0xcac   :  { %13521 = vmatpush3.bf16.msra.mxu0 %v15151_v6 }
 0xcad   :  { %13534 = vmatprep.subr.bf16.mxu0 %v13757_v62 }
 0xcaf   :  { %12560 = vmatmul.mubr.msk.f32.vlgmr.msra.gmra.mrb[74].mxu0 %vm3499_vm2, %v10349_v16 }
 0xcb0   :  { %13536 = vmatpush3.bf16.msra.mxu0 %v15149_v5  ;;  %12595 = vmatprep.mubr.msk.f32.mxu0 %vm13758_vm12, %v13759_v63 }
 0xcb1   :  { %13537 = vmatprep.subr.bf16.mxu0 %v13757_v62 }
 0xcb4   :  { %13539 = vmatpush3.bf16.msra.mxu0 %v15151_v6 }
 0xcb5   :  { %13543 = vmatprep.subr.bf16.mxu0 %v13757_v62 }
 0xcb7   :  { %12596 = vmatmul.mubr.msk.f32.vlgmr.msra.gmra.mrb[76].mxu0 %vm3499_vm2, %v10359_v17  ;;  %v10384_v17 = vld [vmem:[%s15505_s14 + $0x78] sm:$0xff] }
 0xcb8   :  { %13545 = vmatpush3.bf16.msra.mxu0 %v15149_v5  ;;  %12613 = vmatprep.mubr.msk.f32.mxu0 %vm13758_vm12, %v13759_v63 }
 0xcb9   :  { %13546 = vmatprep.subr.bf16.mxu0 %v13757_v62 }
 0xcbc   :  { %13548 = vmatpush3.bf16.msra.mxu0 %v15151_v6 }
 0xcbd   :  { %13552 = vmatprep.subr.bf16.mxu0 %v13757_v62 }
 0xcbf   :  { %12614 = vmatmul.mubr.msk.f32.vlgmr.msra.gmra.mrb[78].mxu0 %vm3499_vm2, %v10364_v18  ;;  %v10361_v18 = vld [vmem:[%s15506_s15 + $0xa0] sm:$0xff] }
 0xcc0   :  { %13554 = vmatpush3.bf16.msra.mxu0 %v15149_v5  ;;  %12631 = vmatprep.mubr.msk.f32.mxu0 %vm13758_vm12, %v13759_v63 }
 0xcc1   :  { %13555 = vmatprep.subr.bf16.mxu0 %v13757_v62 }
 0xcc4   :  { %13557 = vmatpush3.bf16.msra.mxu0 %v15151_v6 }
 0xcc5   :  { %13570 = vmatprep.subr.bf16.mxu0 %v13757_v62 }
 0xcc7   :  { %12632 = vmatmul.mubr.msk.f32.vlgmr.msra.gmra.mrb[80].mxu0 %vm3499_vm2, %v10369_v19  ;;  %v10362_v19 = vld [vmem:[%s15506_s15 + $0xa8] sm:$0xff] }
 0xcc8   :  { %13572 = vmatpush3.bf16.msra.mxu0 %v15149_v5  ;;  %12667 = vmatprep.mubr.msk.f32.mxu0 %vm13758_vm12, %v13759_v63 }
 0xcc9   :  { %13573 = vmatprep.subr.bf16.mxu0 %v13757_v62 }
 0xccc   :  { %13575 = vmatpush3.bf16.msra.mxu0 %v15151_v6 }
 0xccd   :  { %13579 = vmatprep.subr.bf16.mxu0 %v13757_v62 }
 0xccf   :  { %12668 = vmatmul.mubr.msk.f32.vlgmr.msra.gmra.mrb[82].mxu0 %vm3499_vm2, %v10379_v20  ;;  %v13541_v20 = vpack.c.bf16 %v10362_v19, %v10361_v18 }
 0xcd0   :  { %13581 = vmatpush3.bf16.msra.mxu0 %v15149_v5  ;;  %12685 = vmatprep.mubr.msk.f32.mxu0 %vm13758_vm12, %v13759_v63 }
 0xcd1   :  { %13582 = vmatprep.subr.bf16.mxu0 %v13757_v62 }
 0xcd4   :  { %13584 = vmatpush3.bf16.msra.mxu0 %v15151_v6 }
 0xcd5   :  { %12695 = vmatprep.subr.mxu0 %v13759_v63 }
 0xcd7   :  { %12686 = vmatmul.mubr.msk.f32.vlgmr.msra.gmra.mrb[84].mxu0 %vm3499_vm2, %v10384_v17 }
 0xcd8   :  { %12697 = vmatprep.mubr.msk.f32.mxu0 %vm13758_vm12, %v13759_v63 }
 0xd5a   :  { %v7410_v25 = vpop.f32.mrb[100].mxu1  ;;  %v7711_v26 = vpop.f32.mrb[64].mxu0 }
 0xd5b   :  { %v12417_v27 = vpop.f32.mrb[101].mxu1  ;;  %v12453_v28 = vpop.f32.mrb[65].mxu0 }
 0xd5c   :  { %v10371_v27 = vld [vmem:[%s15506_s15 + $0xc0] sm:$0xff]  ;;  %v10372_v28 = vld [vmem:[%s15506_s15 + $0xc8] sm:$0xff] }
 0xd5d   :  { %v13559_v29 = vpack.c.bf16 %v10372_v28, %v10371_v27 }
 0xd62   :  { %v7487_v32 = vpop.f32.mrb[102].mxu1  ;;  %v7863_v33 = vpop.f32.mrb[66].mxu0 }
 0xd63   :  { %v12428_v34 = vpop.f32.mrb[103].mxu1  ;;  %12434 = vmatmul.mubr.msk.f32.vlgmr.msra.gmra.mrb[104].mxu1 %vm3415_vm3, %v7487_v32  ;;  %v12471_v35 = vpop.f32.mrb[67].mxu0  ;;  %v10374_v32 = vld [vmem:[%s15505_s14 + $0x68] sm:$0xff] }
 0xd64   :  { %13461 = vmatpush3.bf16.msra.mxu1 %v13460_v31  ;;  %12440 = vmatprep.mubr.msk.f32.mxu1 %vm13758_vm12, %v13759_v63  ;;  %v10377_v31 = vld [vmem:[%s15506_s15 + $0xd8] sm:$0xff] }
 0xd65   :  { %13468 = vmatprep.subr.bf16.mxu1 %v13757_v62 }
 0xd6a   :  { %v8015_v58 = vpop.f32.mrb[68].mxu0 }
 0xd6b   :  { %12441 = vmatmul.mubr.msk.f32.vlgmr.msra.gmra.mrb[104].mxu1 %vm3415_vm3, %v7410_v25  ;;  %v12489_v1 = vpop.f32.mrb[69].mxu0  ;;  %v10367_v25 = vld [vmem:[%s15506_s15 + $0xb8] sm:$0xff] }
 0xd6c   :  { %13470 = vmatpush3.bf16.msra.mxu1 %v13469_v51  ;;  %12458 = vmatprep.mubr.msk.f32.mxu1 %vm13758_vm12, %v13759_v63 }
 0xd6d   :  { %13477 = vmatprep.subr.bf16.mxu1 %v13757_v62 }
 0xd72   :  { %v8319_v45 = vpop.f32.mrb[70].mxu0 }
 0xd73   :  { %12459 = vmatmul.mubr.msk.f32.vlgmr.msra.gmra.mrb[104].mxu1 %vm3415_vm3, %v7711_v26  ;;  %v12525_v46 = vpop.f32.mrb[71].mxu0  ;;  %v13550_v26 = vpack.c.bf16 %v10367_v25, %v10366_v24 }
 0xd74   :  { %13479 = vmatpush3.bf16.msra.mxu1 %v13478_v21  ;;  %12476 = vmatprep.mubr.msk.f32.mxu1 %vm13758_vm12, %v13759_v63  ;;  %v13586_v21 = vpack.c.bf16 %v10387_v15, %v10386_v8 }
 0xd75   :  { %13486 = vmatprep.subr.bf16.mxu1 %v13757_v62 }
 0xd7a   :  { %v8471_v47 = vpop.f32.mrb[72].mxu0 }
 0xd7b   :  { %12477 = vmatmul.mubr.msk.f32.vlgmr.msra.gmra.mrb[104].mxu1 %vm3415_vm3, %v7863_v33  ;;  %v12543_v48 = vpop.f32.mrb[73].mxu0 }
 0xd7c   :  { %13488 = vmatpush3.bf16.msra.mxu1 %v13487_v39  ;;  %12494 = vmatprep.mubr.msk.f32.mxu1 %vm13758_vm12, %v13759_v63 }
 0xd7d   :  { %13489 = vmatprep.subr.bf16.mxu1 %v13757_v62 }
 0xd82   :  { %v8623_v49 = vpop.f32.mrb[74].mxu0 }
 0xd83   :  { %12495 = vmatmul.mubr.msk.f32.vlgmr.msra.gmra.mrb[104].mxu1 %vm3415_vm3, %v8015_v58  ;;  %v12561_v50 = vpop.f32.mrb[75].mxu0 }
 0xd84   :  { %13491 = vmatpush3.bf16.msra.mxu1 %v15149_v5  ;;  %12505 = vmatprep.mubr.msk.f32.mxu1 %vm13758_vm12, %v13759_v63 }
 0xd85   :  { %13492 = vmatprep.subr.bf16.mxu1 %v13757_v62 }
 0xd88   :  { %13494 = vmatpush3.bf16.msra.mxu1 %v15151_v6 }
 0xd89   :  { %13495 = vmatprep.subr.bf16.mxu1 %v13757_v62 }
 0xd8a   :  { %v8927_v10 = vpop.f32.mrb[76].mxu0 }
 0xd8b   :  { %12506 = vmatmul.mubr.msk.f32.vlgmr.msra.gmra.mrb[106].mxu1 %vm3499_vm2, %v10334_v42  ;;  %v12597_v11 = vpop.f32.mrb[77].mxu0 }
 0xd8c   :  { %13497 = vmatpush3.bf16.msra.mxu1 %v13496_v43  ;;  %12512 = vmatprep.mubr.msk.f32.mxu1 %vm13758_vm12, %v13759_v63 }
 0xd8d   :  { %13504 = vmatprep.subr.bf16.mxu1 %v13757_v62 }
 0xd92   :  { %v9079_v12 = vpop.f32.mrb[78].mxu0 }
 0xd93   :  { %v12615_v13 = vpop.f32.mrb[79].mxu0 }
 0xd94   :  { %v9813_v13 = vld [vmem:[%s15510_s19] sm:$0x3] }
 0xd9a   :  { %v9231_v14 = vpop.f32.mrb[80].mxu0 }
 0xd9b   :  { %v12633_v16 = vpop.f32.mrb[81].mxu0 }
 0xda2   :  { %v9535_v33 = vpop.f32.mrb[82].mxu0 }
 0xda3   :  { %v12669_v34 = vpop.f32.mrb[83].mxu0 }
 0xdaa   :  { %v9687_v35 = vpop.f32.mrb[84].mxu0 }
 0xdab   :  { %v12687_v37 = vpop.f32.mrb[85].mxu0 }
 0xe5e   :  { %v8167_v55 = vpop.f32.mrb[106].mxu1 }
 0xe5f   :  { %v12507_v56 = vpop.f32.mrb[107].mxu1  ;;  %12513 = vmatmul.mubr.msk.f32.vlgmr.msra.gmra.mrb[104].mxu1 %vm3415_vm3, %v8167_v55 }
 0xe60   :  { %13506 = vmatpush3.bf16.msra.mxu1 %v13505_v54  ;;  %12530 = vmatprep.mubr.msk.f32.mxu1 %vm13758_vm12, %v13759_v63 }
 0xe61   :  { %13513 = vmatprep.subr.bf16.mxu1 %v13757_v62 }
 0xe67   :  { %12531 = vmatmul.mubr.msk.f32.vlgmr.msra.gmra.mrb[104].mxu1 %vm3415_vm3, %v8319_v45 }
 0xe68   :  { %13515 = vmatpush3.bf16.msra.mxu1 %v13514_v60  ;;  %12548 = vmatprep.mubr.msk.f32.mxu1 %vm13758_vm12, %v13759_v63 }
 0xe69   :  { %13522 = vmatprep.subr.bf16.mxu1 %v13757_v62 }
 0xe6f   :  { %12549 = vmatmul.mubr.msk.f32.vlgmr.msra.gmra.mrb[104].mxu1 %vm3415_vm3, %v8471_v47 }
 0xe70   :  { %13524 = vmatpush3.bf16.msra.mxu1 %v13523_v2  ;;  %12566 = vmatprep.mubr.msk.f32.mxu1 %vm13758_vm12, %v13759_v63 }
 0xe71   :  { %13525 = vmatprep.subr.bf16.mxu1 %v13757_v62 }
 0xe77   :  { %12567 = vmatmul.mubr.msk.f32.vlgmr.msra.gmra.mrb[104].mxu1 %vm3415_vm3, %v8623_v49 }
 0xe78   :  { %13527 = vmatpush3.bf16.msra.mxu1 %v15149_v5  ;;  %12577 = vmatprep.mubr.msk.f32.mxu1 %vm13758_vm12, %v13759_v63 }
 0xe79   :  { %13528 = vmatprep.subr.bf16.mxu1 %v13757_v62 }
 0xe7c   :  { %13530 = vmatpush3.bf16.msra.mxu1 %v15151_v6 }
 0xe7d   :  { %13531 = vmatprep.subr.bf16.mxu1 %v13757_v62 }
 0xe7f   :  { %12578 = vmatmul.mubr.msk.f32.vlgmr.msra.gmra.mrb[108].mxu1 %vm3499_vm2, %v10354_v7 }
 0xe80   :  { %13533 = vmatpush3.bf16.msra.mxu1 %v13532_v9  ;;  %12584 = vmatprep.mubr.msk.f32.mxu1 %vm13758_vm12, %v13759_v63 }
 0xe81   :  { %13540 = vmatprep.subr.bf16.mxu1 %v13757_v62 }
 0xf52   :  { %v8775_v22 = vpop.f32.mrb[108].mxu1 }
 0xf53   :  { %v12579_v23 = vpop.f32.mrb[109].mxu1  ;;  %12585 = vmatmul.mubr.msk.f32.vlgmr.msra.gmra.mrb[104].mxu1 %vm3415_vm3, %v8775_v22 }
 0xf54   :  { %13542 = vmatpush3.bf16.msra.mxu1 %v13541_v20  ;;  %12602 = vmatprep.mubr.msk.f32.mxu1 %vm13758_vm12, %v13759_v63 }
 0xf55   :  { %13549 = vmatprep.subr.bf16.mxu1 %v13757_v62 }
 0xf5b   :  { %12603 = vmatmul.mubr.msk.f32.vlgmr.msra.gmra.mrb[104].mxu1 %vm3415_vm3, %v8927_v10  ;;  %v9811_v10 = vld [vmem:[%s15509_s18] sm:$0xff] }
 0xf5c   :  { %13551 = vmatpush3.bf16.msra.mxu1 %v13550_v26  ;;  %12620 = vmatprep.mubr.msk.f32.mxu1 %vm13758_vm12, %v13759_v63 }
 0xf5d   :  { %13558 = vmatprep.subr.bf16.mxu1 %v13757_v62 }
 0xf63   :  { %12621 = vmatmul.mubr.msk.f32.vlgmr.msra.gmra.mrb[104].mxu1 %vm3415_vm3, %v9079_v12 }
 0xf64   :  { %13560 = vmatpush3.bf16.msra.mxu1 %v13559_v29  ;;  %12638 = vmatprep.mubr.msk.f32.mxu1 %vm13758_vm12, %v13759_v63 }
 0xf65   :  { %13561 = vmatprep.subr.bf16.mxu1 %v13757_v62 }
 0xf6b   :  { %12639 = vmatmul.mubr.msk.f32.vlgmr.msra.gmra.mrb[104].mxu1 %vm3415_vm3, %v9231_v14  ;;  %v26_v14 = vstv %s15511_s20 }
 0xf6c   :  { %13563 = vmatpush3.bf16.msra.mxu1 %v15149_v5  ;;  %12649 = vmatprep.mubr.msk.f32.mxu1 %vm13758_vm12, %v13759_v63  ;;  %v13568_v5 = vpack.c.bf16 %v10377_v31, %v10376_v30  ;;  %27 = vst [vmem:[#allocation2] sm:$0x1] %v26_v14 }
 0xf6d   :  { %13564 = vmatprep.subr.bf16.mxu1 %v13757_v62 }
 0xf70   :  { %13566 = vmatpush3.bf16.msra.mxu1 %v15151_v6  ;;  %v10381_v6 = vld [vmem:[%s15506_s15 + $0xe0] sm:$0xff] }
 0xf71   :  { %13567 = vmatprep.subr.bf16.mxu1 %v13757_v62  ;;  %v13577_v51 = vpack.c.bf16 %v10382_v44, %v10381_v6 }
 0xf73   :  { %12650 = vmatmul.mubr.msk.f32.vlgmr.msra.gmra.mrb[110].mxu1 %vm3499_vm2, %v10374_v32  ;;  %v10392_v19 = vld [vmem:[#allocation2] ss:$0 sm:$0xff] }
 0xf74   :  { %13569 = vmatpush3.bf16.msra.mxu1 %v13568_v5  ;;  %12656 = vmatprep.mubr.msk.f32.mxu1 %vm13758_vm12, %v13759_v63 }
 0xf75   :  { %13576 = vmatprep.subr.bf16.mxu1 %v13757_v62 }
0x1046   :  { %v9383_v58 = vpop.f32.mrb[110].mxu1 }
0x1047   :  { %v12651_v1 = vpop.f32.mrb[111].mxu1  ;;  %12657 = vmatmul.mubr.msk.f32.vlgmr.msra.gmra.mrb[104].mxu1 %vm3415_vm3, %v9383_v58 }
0x1048   :  { %13578 = vmatpush3.bf16.msra.mxu1 %v13577_v51  ;;  %12674 = vmatprep.mubr.msk.f32.mxu1 %vm13758_vm12, %v13759_v63 }
0x1049   :  { %13585 = vmatprep.subr.bf16.mxu1 %v13757_v62 }
0x104f   :  { %12675 = vmatmul.mubr.msk.f32.vlgmr.msra.gmra.mrb[104].mxu1 %vm3415_vm3, %v9535_v33 }
0x1050   :  { %13587 = vmatpush3.bf16.msra.mxu1 %v13586_v21  ;;  %12692 = vmatprep.mubr.msk.f32.mxu1 %vm13758_vm12, %v13759_v63 }
0x1057   :  { %12693 = vmatmul.mubr.msk.f32.vlgmr.msra.gmra.mrb[104].mxu1 %vm3415_vm3, %v9687_v35 }
0x112a   :  { %v9763_v36 = vpop.f32.mrb[104].mxu1 }
0x112b   :  { %v9768_v62 = vsel %vm3415_vm3, %v9763_v36, 0.0  ;;  %v9777_v38 = vmul.f32 %v9763_v36, %v9763_v36  ;;  %v12694_v39 = vpop.f32.mrb[105].mxu1 }
0x112c   :  { %v9769_v40 = vrot.slane %v9768_v62, 4 }
0x112d   :  { %v9778_v41 = vsel %vm3415_vm3, %v9777_v38, 0.0  ;;  %vm9887_vm3 = vcmask 123904  }
0x112e   :  { %v9770_v42 = vadd.f32 %v9769_v40, %v9768_v62  ;;  %v9779_v43 = vrot.slane %v9778_v41, 4 }
0x1130   :  { %v9771_v45 = vrot.slane %v9770_v42, 2  ;;  %v9780_v46 = vadd.f32 %v9779_v43, %v9778_v41 }
0x1132   :  { %v9772_v47 = vadd.f32 %v9771_v45, %v9770_v42  ;;  %v9781_v48 = vrot.slane %v9780_v46, 2 }
0x1134   :  { %v9773_v49 = vrot.slane %v9772_v47, 1  ;;  %v9782_v50 = vadd.f32 %v9781_v48, %v9780_v46 }
0x1136   :  { %v9774_v52 = vadd.f32 %v9773_v49, %v9772_v47  ;;  %v9783_v63 = vrot.slane %v9782_v50, 1 }
0x1138   :  { %v9776_v53 = vmul.f32 0.125, %v9774_v52  ;;  %v9784_v54 = vadd.f32 %v9783_v63, %v9782_v50 }
0x113a   :  { %v9785_v55 = vmul.f32 0.125, %v9784_v54  ;;  %v9786_v56 = vmul.f32 %v9776_v53, %v9776_v53  ;;  %v9788_v60 = vsub.f32 %v9763_v36, %v9776_v53 }
0x113c   :  { %v9787_v57 = vsub.f32 %v9785_v55, %v9786_v56 }
0x113e   :  { %v9789_v59 = vadd.f32 1e-05, %v9787_v57 }
0x1140   :  { %13751 = vrsqrt.f32 %v9789_v59 }
0x114a   :  { %v13752_v61 = vpop.eup %13751 }
0x114b   :  { %v9791_v2 = vmul.f32 %v13752_v61, %v9788_v60 }
0x114d   :  { %v9799_v4 = vmul.f32 %v10389_v0, %v9791_v2 }
0x114f   :  { %v9807_v7 = vadd.f32 %v10390_v3, %v9799_v4 }
0x1151   :  { %vm9808_vm2 = vcmp.gt.f32.partialorder %v9807_v7, 0.0  ;;  %v9809_v9 = vmul.f32 0.2, %v9807_v7 }
0x1153   :  { %v9810_v11 = vsel %vm9808_vm2, %v9807_v7, %v9809_v9 }
0x1154   :  { %v9812_v12 = vmul.f32 %v9811_v10, %v9810_v11 }
0x1156   :  { %12696 = vmatpush3.msra.mxu0 %v9812_v12 }
0x1157   :  { %12698 = vmatmul.mubr.msk.f32.vlgmr.msra.gmra.mrb[86].mxu0 %vm518_vm1, %v9813_v13  ;;  %vm9905_vm1 = vcmask 1024  }
0x122a   :  { %v9883_v16 = vpop.f32.mrb[86].mxu0 }
0x122b   :  { %v12699_v17 = vpop.f32.mrb[87].mxu0  ;;  %v9888_v18 = vsel %vm9887_vm3, %v9883_v16, 0.0 }
0x122c   :  { %9889 = vadd.xlane.f32.xlu0 %v9888_v18 }
0x12b9   :  { %v9890_v20 = vpop.xlane.xlu0 %9889 }
0x12ba   :  { %v9898_v22 = vadd.f32 %v10392_v19, %v9890_v20 }
0x12bc   :  { %v9899_v23 = vsub.f32 0.0, %v9898_v22 }
0x12be   :  { %v9900_v24 = vmul.f32 1.442695, %v9899_v23 }
0x12c0   :  { %13753 = vpow2.f32 %v9900_v24 }
0x12ca   :  { %v13754_v25 = vpop.eup %13753 }
0x12cb   :  { %v9902_v26 = vadd.f32 1.0, %v13754_v25 }
0x12cd   :  { %13755 = vrcp.f32 %v9902_v26 }
0x12d7   :  { %v13756_v27 = vpop.eup %13755 }
0x12d8   :  { %9906 = vst.msk [vmem:[%s15512_s21] sm:$0x3] %vm9905_vm1, %v13756_v27 }

</bundles_post_ra>
